<compile_context>
chip_gen: v7x
topology: tpu7x:2x2x1
jax: 0.10.0
libtpu: 0.0.40
codegen_flags: <defaults>
</compile_context>

<pallas_src>
import functools

import numpy as np
import jax
import jax.numpy as jnp
from jax.experimental import pallas as pl
from jax.experimental.pallas import tpu as pltpu


# ------------------------------------------------------------------ helpers
def get_position_encoding(sentence_size, embedding_size):
    """MemN2N-style position encoding, shape (sentence_size, embedding_size)."""
    enc = np.ones((embedding_size, sentence_size), dtype=np.float32)
    ls = sentence_size + 1
    le = embedding_size + 1
    for i in range(1, le):
        for j in range(1, ls):
            enc[i - 1, j - 1] = (i - (embedding_size + 1) / 2) * (
                j - (sentence_size + 1) / 2
            )
    enc = 1 + 4 * enc / embedding_size / sentence_size
    return np.transpose(enc).astype(np.float32)


# ------------------------------------------------------------------ kernel
def kvatt_kernel(qe_ref, qm_ref, pe_q_ref,
                 ke_ref, km_ref, pe_k_ref,
                 pm_ref, v_ref,
                 y_ref, vi_ref, att_ref,
                 *, average_embs: bool):
    # Per grid step (one batch tile of Tb rows):
    #   qe (Tb,Lq,E)  qm (Tb,Lq)  pe_q (Lq,E)
    #   ke (Tb,S,Lk,E) km (Tb,S,Lk) pe_k (Lk,E)
    #   pm (Tb,S) v (Tb,S) -> y (Tb,O_pad) vi (Tb,1) att (Tb,S)
    f32 = jnp.float32
    # Upcast immediately: embeddings may arrive as bf16 (bandwidth), all
    # accumulation / norm / softmax math stays in f32 (v5e has no bf16 VPU).
    qe = qe_ref[...].astype(f32)                                 # (Tb,Lq,E)
    ke = ke_ref[...].astype(f32)                                 # (Tb,S,Lk,E)
    qm = qm_ref[...]                                             # (Tb,Lq)
    km = km_ref[...]                                             # (Tb,S,Lk)
    pm = pm_ref[...]                                             # (Tb,S)

    # ---- query representation: PE * mask, sum over query tokens
    # TODO(synk): for production sizes (E>=128, Lk>=128) route these masked
    # token reductions and the cosine dot through einsum/dot_general so they
    # hit the MXU; at E=32, Lk=6 the VPU/XLU path is cheaper.
    q = qe * pe_q_ref[...][None, :, :] * qm[:, :, None]
    q_rep = jnp.sum(q, axis=1)                                   # (Tb, E)
    if average_embs:
        qd = jnp.sum(qm, axis=1, keepdims=True)                  # (Tb, 1)
        qd = jnp.where(qd == 0.0, jnp.inf, qd)
        q_rep = q_rep / qd

    # ---- memory (key) embedding: PE * mask, sum over sentence tokens
    k = ke * pe_k_ref[...][None, None, :, :] * km[..., None]
    mem = jnp.sum(k, axis=2)                                     # (Tb, S, E)
    if average_embs:
        kd = jnp.sum(km, axis=2)                                 # (Tb, S)
        kd = jnp.where(kd == 0.0, jnp.inf, kd)
        mem = mem / kd[..., None]

    # ---- cosine similarity along the embedding axis (eps = 1e-8)
    # rsqrt lands on the EUP (its own bundle slot) instead of sqrt+divide on
    # the VALU critical path.  The 1e-8 denominator clamp is folded in as
    # 1/max(nm*nq, 1e-8) == min(rsqrt(nm2)*rsqrt(nq2), 1e8).
    dot = jnp.sum(mem * q_rep[:, None, :], axis=-1)              # (Tb, S)
    nm2 = jnp.sum(mem * mem, axis=-1)                            # (Tb, S)
    nq2 = jnp.sum(q_rep * q_rep, axis=-1)                        # (Tb,)
    inv = (jax.lax.rsqrt(jnp.maximum(nm2, 1e-38))
           * jax.lax.rsqrt(jnp.maximum(nq2, 1e-38))[:, None])
    inv = jnp.minimum(inv, jnp.float32(1e8))
    cos = dot * inv                                              # (Tb, S)

    # ---- masked log-softmax over the story axis.
    # Additive -1e30 mask instead of log(pm + 1e-45): 1e-45 is subnormal and
    # may flush to 0 on TPU (-> -inf and NaN on fully masked rows, e.g. the
    # batch-padding rows).
    logits = cos + jnp.where(pm > 0.0, jnp.float32(0.0), jnp.float32(-1e30))
    m = jnp.max(logits, axis=1, keepdims=True)
    lse = m + jnp.log(jnp.sum(jnp.exp(logits - m), axis=1, keepdims=True))
    att = logits - lse                                           # (Tb, S)

    # ---- max over memories, gather matching value id, scatter into y
    Tb, S = att.shape
    probs_out = jnp.max(att, axis=1)                             # (Tb,)
    iota_s = jax.lax.broadcasted_iota(jnp.int32, (Tb, S), 1)
    idx_out = jnp.min(
        jnp.where(att == probs_out[:, None], iota_s, jnp.int32(S)), axis=1)
    val_idx = jnp.sum(
        jnp.where(iota_s == idx_out[:, None], v_ref[...], jnp.int32(0)), axis=1)

    # y is built at a lane-dense (128-multiple) width; wrapper slices it.
    O = y_ref.shape[1]
    iota_o = jax.lax.broadcasted_iota(jnp.int32, (Tb, O), 1)
    y_ref[...] = jnp.where(iota_o == val_idx[:, None],
                           probs_out[:, None], jnp.float32(-100.0))
    vi_ref[...] = val_idx[:, None]
    # TODO(synk): for large S, pad att's last dim to 128 (lane-dense store)
    # and/or switch to an online logsumexp if S itself has to be tiled.
    att_ref[...] = att


# ------------------------------------------------------------------ wrapper
def kvatt_forward(A1, trainK, trainV, trainQ, trainVM, trainPM, trainKM,
                  trainQM, *, output_size, positional=True,
                  average_embs=False, block_batch=8,
                  embed_dtype=jnp.float32):
    """Pallas implementation of KVAtt.forward (attention_sum=False path)."""
    del trainVM  # unused by the reference forward
    # TODO(synk): attention_sum=True path (max_of_attention_sum) uses Python
    # dict accumulation over entity ids; only the default (False) path is
    # implemented here.
    Q = jnp.squeeze(trainQ, 1)                       # (B, Lq)
    B, S, Lk = trainK.shape
    Lq = Q.shape[1]
    E = A1.shape[1]

    # ---- batch tile: multiple of 8 (sublane alignment for the 2-D blocks),
    # auto-shrunk so ~2x double-buffered blocks stay well under v7x VMEM.
    Tb = int(max(8, 8 * pl.cdiv(int(block_batch), 8)))
    O_pad = int(128 * pl.cdiv(int(output_size), 128))      # lane-dense y
    emb_itemsize = jnp.dtype(embed_dtype).itemsize
    row_bytes = ((Lq * E + S * Lk * E) * emb_itemsize
                 + (Lq + S * Lk + 2 * S) * 4
                 + (O_pad + 1 + S) * 4)
    while Tb > 8 and 4 * Tb * row_bytes > 24 * 2**20:
        Tb -= 8
    B_pad = int(Tb * pl.cdiv(B, Tb))
    pad_b = B_pad - B

    # ---- embedding gather in JAX glue.  Casting the table to bf16 halves
    # the dominant HBM traffic of the gathered key tensor; the kernel
    # upcasts to f32 on load.
    # TODO(synk): fully fusing the gather (ids via scalar prefetch + A1 in
    # pl.ANY with manual row DMAs) would remove the HBM round-trip entirely.
    A1c = A1.astype(embed_dtype)
    q_emb = jnp.take(A1c, Q, axis=0)                 # (B, Lq, E)
    k_emb = jnp.take(A1c, trainK, axis=0)            # (B, S, Lk, E)

    if positional:
        pe_q = jnp.asarray(get_position_encoding(Lq, E))
        pe_k = jnp.asarray(get_position_encoding(Lk, E))
    else:
        pe_q = jnp.ones((Lq, E), jnp.float32)
        pe_k = jnp.ones((Lk, E), jnp.float32)

    qm = trainQM.astype(jnp.float32)
    km = trainKM.astype(jnp.float32)
    pm = trainPM.astype(jnp.float32)
    v = trainV.astype(jnp.int32)

    if pad_b:
        q_emb = jnp.pad(q_emb, ((0, pad_b), (0, 0), (0, 0)))
        k_emb = jnp.pad(k_emb, ((0, pad_b), (0, 0), (0, 0), (0, 0)))
        qm = jnp.pad(qm, ((0, pad_b), (0, 0)))
        km = jnp.pad(km, ((0, pad_b), (0, 0), (0, 0)))
        pm = jnp.pad(pm, ((0, pad_b), (0, 0)))
        v = jnp.pad(v, ((0, pad_b), (0, 0)))

    block_bytes = Tb * row_bytes + (Lq * E + Lk * E) * 4
    vmem_limit = int(min(48 * 2**20, max(16 * 2**20, 4 * block_bytes)))

    kernel = functools.partial(kvatt_kernel, average_embs=average_embs)
    y, vi, att = pl.pallas_call(
        kernel,
        grid=(B_pad // Tb,),
        in_specs=[
            pl.BlockSpec((Tb, Lq, E), lambda b: (b, 0, 0)),
            pl.BlockSpec((Tb, Lq), lambda b: (b, 0)),
            pl.BlockSpec((Lq, E), lambda b: (0, 0)),        # resident
            pl.BlockSpec((Tb, S, Lk, E), lambda b: (b, 0, 0, 0)),
            pl.BlockSpec((Tb, S, Lk), lambda b: (b, 0, 0)),
            pl.BlockSpec((Lk, E), lambda b: (0, 0)),        # resident
            pl.BlockSpec((Tb, S), lambda b: (b, 0)),
            pl.BlockSpec((Tb, S), lambda b: (b, 0)),
        ],
        out_specs=(
            pl.BlockSpec((Tb, O_pad), lambda b: (b, 0)),
            pl.BlockSpec((Tb, 1), lambda b: (b, 0)),
            pl.BlockSpec((Tb, S), lambda b: (b, 0)),
        ),
        out_shape=(
            jax.ShapeDtypeStruct((B_pad, O_pad), jnp.float32),
            jax.ShapeDtypeStruct((B_pad, 1), jnp.int32),
            jax.ShapeDtypeStruct((B_pad, S), jnp.float32),
        ),
        compiler_params=pltpu.CompilerParams(
            dimension_semantics=("parallel",),      # megacore-shardable on v7x
            vmem_limit_bytes=vmem_limit),
    )(q_emb, qm, pe_q, k_emb, km, pe_k, pm, v)

    return y[:B, :output_size], vi[:B, 0], att[:B]


# ------------------------------------------------------------------ reference
def kvatt_reference(A1, trainK, trainV, trainQ, trainPM, trainKM, trainQM,
                    *, output_size, positional=True, average_embs=False):
    Q = jnp.squeeze(trainQ, 1)
    B, S, Lk = trainK.shape
    Lq = Q.shape[1]
    E = A1.shape[1]
    q_emb = jnp.take(A1, Q, axis=0)
    if positional:
        q_emb = q_emb * get_position_encoding(Lq, E)[None]
    q_emb = q_emb * trainQM[:, :, None]
    q_rep = q_emb.sum(1)
    if average_embs:
        qd = trainQM.sum(1, keepdims=True)
        q_rep = q_rep / jnp.where(qd == 0.0, jnp.inf, qd)
    k_emb = jnp.take(A1, trainK, axis=0)
    if positional:
        k_emb = k_emb * get_position_encoding(Lk, E)[None, None]
    k_emb = k_emb * trainKM[..., None]
    mem = k_emb.sum(2)
    if average_embs:
        kd = trainKM.sum(2)
        mem = mem / jnp.where(kd == 0.0, jnp.inf, kd)[..., None]
    dot = (mem * q_rep[:, None]).sum(-1)
    denom = jnp.maximum(jnp.linalg.norm(mem, axis=-1)
                        * jnp.linalg.norm(q_rep, axis=-1)[:, None], 1e-8)
    logits = dot / denom + jnp.log(trainPM + jnp.finfo(jnp.float32).tiny)
    att = jax.nn.log_softmax(logits, axis=1)
    probs_out = att.max(1)
    idx_out = att.argmax(1)
    val_idx = trainV[jnp.arange(B), idx_out]
    y = jnp.full((B, output_size), -100.0, jnp.float32)
    y = y.at[jnp.arange(B), val_idx].set(probs_out)
    return y, val_idx, att


# ------------------------------------------------------------------ main
if __name__ == "__main__":
    B, S, Lk, Lq = 20, 8, 6, 5         # batch, story_size, sent_len, query_len
    E, VOCAB, OUT = 32, 20, 24         # embed_size, vocab_size, output_size

    key = jax.random.PRNGKey(0)
    k1, k2, k3, k4, k5, k6, k7 = jax.random.split(key, 7)

    # Embedding table init ~ N(0, 0.1), as in the module's __init__.
    A1 = jax.random.normal(k1, (VOCAB, E), jnp.float32) * 0.1

    trainK = jax.random.randint(k2, (B, S, Lk), 0, VOCAB, jnp.int32)
    trainV = jax.random.randint(k3, (B, S), 1, OUT, jnp.int32)
    trainQ = jax.random.randint(k4, (B, 1, Lq), 0, VOCAB, jnp.int32)
    trainVM = jnp.ones((B, OUT), jnp.float32)          # unused by forward
    trainPM = (jax.random.uniform(k5, (B, S)) > 0.3).astype(jnp.float32)
    trainPM = trainPM.at[:, 0].set(1.0)                # >=1 valid memory/row
    trainKM = (jax.random.uniform(k6, (B, S, Lk)) > 0.2).astype(jnp.float32)
    trainQM = (jax.random.uniform(k7, (B, Lq)) > 0.2).astype(jnp.float32)
    trainQM = trainQM.at[:, 0].set(1.0)

    valid = np.asarray(trainPM) > 0     # compare att only at unmasked slots

    # ---- f32 embedding path (exact vs reference) --------------------------
    y, val_idx, att = kvatt_forward(
        A1, trainK, trainV, trainQ, trainVM, trainPM, trainKM, trainQM,
        output_size=OUT, positional=True, average_embs=False,
        embed_dtype=jnp.float32)
    jax.block_until_ready((y, val_idx, att))

    y_ref, vi_ref, att_ref = kvatt_reference(
        A1, trainK, trainV, trainQ, trainPM, trainKM, trainQM,
        output_size=OUT, positional=True, average_embs=False)

    np.testing.assert_array_equal(np.asarray(val_idx), np.asarray(vi_ref))
    np.testing.assert_allclose(np.asarray(y), np.asarray(y_ref),
                               rtol=1e-4, atol=1e-4)
    np.testing.assert_allclose(np.asarray(att)[valid],
                               np.asarray(att_ref)[valid],
                               rtol=1e-4, atol=1e-4)

    # ---- bf16 embedding path (half the dominant HBM traffic) --------------
    y16, vi16, att16 = kvatt_forward(
        A1, trainK, trainV, trainQ, trainVM, trainPM, trainKM, trainQM,
        output_size=OUT, positional=True, average_embs=False,
        embed_dtype=jnp.bfloat16)
    jax.block_until_ready((y16, vi16, att16))

    A1q = A1.astype(jnp.bfloat16).astype(jnp.float32)
    y_r16, vi_r16, att_r16 = kvatt_reference(
        A1q, trainK, trainV, trainQ, trainPM, trainKM, trainQM,
        output_size=OUT, positional=True, average_embs=False)

    np.testing.assert_array_equal(np.asarray(vi16), np.asarray(vi_r16))
    np.testing.assert_allclose(np.asarray(y16), np.asarray(y_r16),
                               rtol=1e-3, atol=1e-3)
    np.testing.assert_allclose(np.asarray(att16)[valid],
                               np.asarray(att_r16)[valid],
                               rtol=1e-3, atol=1e-3)

    print("KERNEL_OK")
</pallas_src>

<mosaic_0001>
module attributes {stable_mosaic.version = 11 : i64} {
  func.func @kvatt_kernel(%arg0: i32, %arg1: memref<8x5x32xf32, #tpu.memory_space<vmem>>, %arg2: memref<8x5xf32, #tpu.memory_space<vmem>>, %arg3: memref<5x32xf32, #tpu.memory_space<vmem>>, %arg4: memref<8x8x6x32xf32, #tpu.memory_space<vmem>>, %arg5: memref<8x8x6xf32, #tpu.memory_space<vmem>>, %arg6: memref<6x32xf32, #tpu.memory_space<vmem>>, %arg7: memref<8x8xf32, #tpu.memory_space<vmem>>, %arg8: memref<8x8xi32, #tpu.memory_space<vmem>>, %arg9: memref<8x128xf32, #tpu.memory_space<vmem>>, %arg10: memref<8x1xi32, #tpu.memory_space<vmem>>, %arg11: memref<8x8xf32, #tpu.memory_space<vmem>>) attributes {dimension_semantics = [#tpu.dimension_semantics<parallel>], iteration_bounds = array<i64: 3>, scalar_prefetch = 0 : i64, scratch_operands = 0 : i64, tpu.core_type = #tpu.core_type<tc>, window_params = [{transform_indices = @transform_0, window_bounds = array<i64: 8, 5, 32>}, {transform_indices = @transform_1, window_bounds = array<i64: 8, 5>}, {pipeline_mode = #tpu.pipeline_mode<synchronous>, transform_indices = @transform_2, window_bounds = array<i64: 5, 32>}, {transform_indices = @transform_3, window_bounds = array<i64: 8, 8, 6, 32>}, {transform_indices = @transform_4, window_bounds = array<i64: 8, 8, 6>}, {pipeline_mode = #tpu.pipeline_mode<synchronous>, transform_indices = @transform_5, window_bounds = array<i64: 6, 32>}, {transform_indices = @transform_6, window_bounds = array<i64: 8, 8>}, {transform_indices = @transform_7, window_bounds = array<i64: 8, 8>}, {transform_indices = @transform_8, window_bounds = array<i64: 8, 128>}, {transform_indices = @transform_9, window_bounds = array<i64: 8, 1>}, {transform_indices = @transform_10, window_bounds = array<i64: 8, 8>}]} {
    %c0 = arith.constant 0 : index
    %c0_0 = arith.constant 0 : index
    %c0_1 = arith.constant 0 : index
    %0 = vector.load %arg1[%c0, %c0_0, %c0_1] : memref<8x5x32xf32, #tpu.memory_space<vmem>>, vector<8x5x32xf32>
    %c0_2 = arith.constant 0 : index
    %c0_3 = arith.constant 0 : index
    %c0_4 = arith.constant 0 : index
    %c0_5 = arith.constant 0 : index
    %1 = vector.load %arg4[%c0_2, %c0_3, %c0_4, %c0_5] : memref<8x8x6x32xf32, #tpu.memory_space<vmem>>, vector<8x8x6x32xf32>
    %c0_6 = arith.constant 0 : index
    %c0_7 = arith.constant 0 : index
    %2 = vector.load %arg2[%c0_6, %c0_7] : memref<8x5xf32, #tpu.memory_space<vmem>>, vector<8x5xf32>
    %c0_8 = arith.constant 0 : index
    %c0_9 = arith.constant 0 : index
    %c0_10 = arith.constant 0 : index
    %3 = vector.load %arg5[%c0_8, %c0_9, %c0_10] : memref<8x8x6xf32, #tpu.memory_space<vmem>>, vector<8x8x6xf32>
    %c0_11 = arith.constant 0 : index
    %c0_12 = arith.constant 0 : index
    %4 = vector.load %arg7[%c0_11, %c0_12] : memref<8x8xf32, #tpu.memory_space<vmem>>, vector<8x8xf32>
    %c0_13 = arith.constant 0 : index
    %c0_14 = arith.constant 0 : index
    %5 = vector.load %arg3[%c0_13, %c0_14] : memref<5x32xf32, #tpu.memory_space<vmem>>, vector<5x32xf32>
    %6 = vector.shape_cast %5 : vector<5x32xf32> to vector<1x5x32xf32>
    %7 = vector.broadcast %6 : vector<1x5x32xf32> to vector<8x5x32xf32>
    %8 = arith.mulf %0, %7 : vector<8x5x32xf32>
    %9 = vector.shape_cast %2 : vector<8x5xf32> to vector<8x5x1xf32>
    %10 = vector.broadcast %9 : vector<8x5x1xf32> to vector<8x5x32xf32>
    %11 = arith.mulf %8, %10 : vector<8x5x32xf32>
    %cst = arith.constant dense<0.000000e+00> : vector<8x32xf32>
    %12 = vector.multi_reduction <add>, %11, %cst [1] : vector<8x5x32xf32> to vector<8x32xf32>
    %c0_15 = arith.constant 0 : index
    %c0_16 = arith.constant 0 : index
    %13 = vector.load %arg6[%c0_15, %c0_16] : memref<6x32xf32, #tpu.memory_space<vmem>>, vector<6x32xf32>
    %14 = vector.shape_cast %13 : vector<6x32xf32> to vector<1x1x6x32xf32>
    %15 = vector.broadcast %14 : vector<1x1x6x32xf32> to vector<8x8x6x32xf32>
    %16 = arith.mulf %1, %15 : vector<8x8x6x32xf32>
    %17 = vector.shape_cast %3 : vector<8x8x6xf32> to vector<8x8x6x1xf32>
    %18 = vector.broadcast %17 : vector<8x8x6x1xf32> to vector<8x8x6x32xf32>
    %19 = arith.mulf %16, %18 : vector<8x8x6x32xf32>
    %cst_17 = arith.constant dense<0.000000e+00> : vector<8x8x32xf32>
    %20 = vector.multi_reduction <add>, %19, %cst_17 [2] : vector<8x8x6x32xf32> to vector<8x8x32xf32>
    %21 = vector.shape_cast %12 : vector<8x32xf32> to vector<8x1x32xf32>
    %22 = vector.broadcast %21 : vector<8x1x32xf32> to vector<8x8x32xf32>
    %23 = arith.mulf %20, %22 : vector<8x8x32xf32>
    %cst_18 = arith.constant dense<0.000000e+00> : vector<8x8xf32>
    %24 = vector.multi_reduction <add>, %23, %cst_18 [2] : vector<8x8x32xf32> to vector<8x8xf32>
    %25 = arith.mulf %20, %20 : vector<8x8x32xf32>
    %cst_19 = arith.constant dense<0.000000e+00> : vector<8x8xf32>
    %26 = vector.multi_reduction <add>, %25, %cst_19 [2] : vector<8x8x32xf32> to vector<8x8xf32>
    %27 = arith.mulf %12, %12 : vector<8x32xf32>
    %cst_20 = arith.constant dense<0.000000e+00> : vector<8xf32>
    %28 = vector.multi_reduction <add>, %27, %cst_20 [1] : vector<8x32xf32> to vector<8xf32>
    %cst_21 = arith.constant 9.99999935E-39 : f32
    %29 = vector.broadcast %cst_21 : f32 to vector<8x8xf32>
    %30 = arith.maximumf %26, %29 : vector<8x8xf32>
    %31 = math.rsqrt %30 : vector<8x8xf32>
    %cst_22 = arith.constant 9.99999935E-39 : f32
    %32 = vector.broadcast %cst_22 : f32 to vector<8xf32>
    %33 = arith.maximumf %28, %32 : vector<8xf32>
    %34 = math.rsqrt %33 : vector<8xf32>
    %35 = vector.shape_cast %34 : vector<8xf32> to vector<8x1xf32>
    %36 = vector.broadcast %35 : vector<8x1xf32> to vector<8x8xf32>
    %37 = arith.mulf %31, %36 : vector<8x8xf32>
    %cst_23 = arith.constant 1.000000e+08 : f32
    %38 = vector.broadcast %cst_23 : f32 to vector<8x8xf32>
    %39 = arith.minimumf %37, %38 : vector<8x8xf32>
    %40 = arith.mulf %24, %39 : vector<8x8xf32>
    %cst_24 = arith.constant 0.000000e+00 : f32
    %41 = vector.broadcast %cst_24 : f32 to vector<8x8xf32>
    %42 = arith.cmpf ogt, %4, %41 : vector<8x8xf32>
    %cst_25 = arith.constant 0.000000e+00 : f32
    %cst_26 = arith.constant -1.000000e+30 : f32
    %43 = vector.broadcast %cst_25 : f32 to vector<8x8xf32>
    %44 = vector.broadcast %cst_26 : f32 to vector<8x8xf32>
    %45 = arith.select %42, %43, %44 : vector<8x8xi1>, vector<8x8xf32>
    %46 = arith.addf %40, %45 : vector<8x8xf32>
    %cst_27 = arith.constant dense<0xFF800000> : vector<8xf32>
    %47 = vector.multi_reduction <maximumf>, %46, %cst_27 [1] : vector<8x8xf32> to vector<8xf32>
    %48 = vector.shape_cast %47 : vector<8xf32> to vector<8x1xf32>
    %49 = vector.broadcast %48 : vector<8x1xf32> to vector<8x8xf32>
    %50 = arith.subf %46, %49 : vector<8x8xf32>
    %51 = math.exp %50 : vector<8x8xf32>
    %cst_28 = arith.constant dense<0.000000e+00> : vector<8xf32>
    %52 = vector.multi_reduction <add>, %51, %cst_28 [1] : vector<8x8xf32> to vector<8xf32>
    %53 = vector.shape_cast %52 : vector<8xf32> to vector<8x1xf32>
    %54 = math.log %53 : vector<8x1xf32>
    %55 = arith.addf %48, %54 : vector<8x1xf32>
    %56 = vector.broadcast %55 : vector<8x1xf32> to vector<8x8xf32>
    %57 = arith.subf %46, %56 : vector<8x8xf32>
    %cst_29 = arith.constant dense<0xFF800000> : vector<8xf32>
    %58 = vector.multi_reduction <maximumf>, %57, %cst_29 [1] : vector<8x8xf32> to vector<8xf32>
    %59 = tpu.iota {dimensions = array<i32: 1>} : vector<8x8xi32>
    %60 = vector.shape_cast %58 : vector<8xf32> to vector<8x1xf32>
    %61 = vector.broadcast %60 : vector<8x1xf32> to vector<8x8xf32>
    %62 = arith.cmpf oeq, %57, %61 : vector<8x8xf32>
    %c8_i32 = arith.constant 8 : i32
    %63 = vector.broadcast %c8_i32 : i32 to vector<8x8xi32>
    %64 = arith.select %62, %59, %63 : vector<8x8xi1>, vector<8x8xi32>
    %cst_30 = arith.constant dense<2147483647> : vector<8xi32>
    %65 = vector.multi_reduction <minsi>, %64, %cst_30 [1] : vector<8x8xi32> to vector<8xi32>
    %66 = vector.shape_cast %65 : vector<8xi32> to vector<8x1xi32>
    %67 = vector.broadcast %66 : vector<8x1xi32> to vector<8x8xi32>
    %68 = arith.cmpi eq, %59, %67 : vector<8x8xi32>
    %c0_31 = arith.constant 0 : index
    %c0_32 = arith.constant 0 : index
    %69 = vector.load %arg8[%c0_31, %c0_32] : memref<8x8xi32, #tpu.memory_space<vmem>>, vector<8x8xi32>
    %c0_i32 = arith.constant 0 : i32
    %70 = vector.broadcast %c0_i32 : i32 to vector<8x8xi32>
    %71 = arith.select %68, %69, %70 : vector<8x8xi1>, vector<8x8xi32>
    %cst_33 = arith.constant dense<0> : vector<8xi32>
    %72 = vector.multi_reduction <add>, %71, %cst_33 [1] : vector<8x8xi32> to vector<8xi32>
    %73 = tpu.iota {dimensions = array<i32: 1>} : vector<8x128xi32>
    %74 = vector.shape_cast %72 : vector<8xi32> to vector<8x1xi32>
    %75 = vector.broadcast %74 : vector<8x1xi32> to vector<8x128xi32>
    %76 = arith.cmpi eq, %73, %75 : vector<8x128xi32>
    %77 = vector.shape_cast %58 : vector<8xf32> to vector<8x1xf32>
    %cst_34 = arith.constant -1.000000e+02 : f32
    %78 = vector.shape_cast %77 : vector<8x1xf32> to vector<8x1xf32>
    %79 = vector.broadcast %78 : vector<8x1xf32> to vector<8x128xf32>
    %80 = vector.broadcast %cst_34 : f32 to vector<8x128xf32>
    %81 = arith.select %76, %79, %80 : vector<8x128xi1>, vector<8x128xf32>
    %c0_35 = arith.constant 0 : index
    %c0_36 = arith.constant 0 : index
    %82 = vector.load %arg9[%c0_35, %c0_36] : memref<8x128xf32, #tpu.memory_space<vmem>>, vector<8x128xf32>
    tpu.vector_store %arg9[%c0_35, %c0_36], %81 {strides = array<i32>} : memref<8x128xf32, #tpu.memory_space<vmem>>, vector<8x128xf32>,
    %83 = vector.shape_cast %72 : vector<8xi32> to vector<8x1xi32>
    %c0_37 = arith.constant 0 : index
    %c0_38 = arith.constant 0 : index
    %84 = vector.load %arg10[%c0_37, %c0_38] : memref<8x1xi32, #tpu.memory_space<vmem>>, vector<8x1xi32>
    tpu.vector_store %arg10[%c0_37, %c0_38], %83 {strides = array<i32>} : memref<8x1xi32, #tpu.memory_space<vmem>>, vector<8x1xi32>,
    %c0_39 = arith.constant 0 : index
    %c0_40 = arith.constant 0 : index
    %85 = vector.load %arg11[%c0_39, %c0_40] : memref<8x8xf32, #tpu.memory_space<vmem>>, vector<8x8xf32>
    tpu.vector_store %arg11[%c0_39, %c0_40], %57 {strides = array<i32>} : memref<8x8xf32, #tpu.memory_space<vmem>>, vector<8x8xf32>,
    return
  }
  func.func @transform_0(%arg0: i32) -> (i32, i32, i32) {
    %c0_i32 = arith.constant 0 : i32
    %c0_i32_0 = arith.constant 0 : i32
    %c0_i32_1 = arith.constant 0 : i32
    return %arg0, %c0_i32, %c0_i32_0 : i32, i32, i32
  }
  func.func @transform_1(%arg0: i32) -> (i32, i32) {
    %c0_i32 = arith.constant 0 : i32
    %c0_i32_0 = arith.constant 0 : i32
    return %arg0, %c0_i32 : i32, i32
  }
  func.func @transform_2(%arg0: i32) -> (i32, i32) {
    %c0_i32 = arith.constant 0 : i32
    %c0_i32_0 = arith.constant 0 : i32
    %c0_i32_1 = arith.constant 0 : i32
    return %c0_i32, %c0_i32_0 : i32, i32
  }
  func.func @transform_3(%arg0: i32) -> (i32, i32, i32, i32) {
    %c0_i32 = arith.constant 0 : i32
    %c0_i32_0 = arith.constant 0 : i32
    %c0_i32_1 = arith.constant 0 : i32
    %c0_i32_2 = arith.constant 0 : i32
    return %arg0, %c0_i32, %c0_i32_0, %c0_i32_1 : i32, i32, i32, i32
  }
  func.func @transform_4(%arg0: i32) -> (i32, i32, i32) {
    %c0_i32 = arith.constant 0 : i32
    %c0_i32_0 = arith.constant 0 : i32
    %c0_i32_1 = arith.constant 0 : i32
    return %arg0, %c0_i32, %c0_i32_0 : i32, i32, i32
  }
  func.func @transform_5(%arg0: i32) -> (i32, i32) {
    %c0_i32 = arith.constant 0 : i32
    %c0_i32_0 = arith.constant 0 : i32
    %c0_i32_1 = arith.constant 0 : i32
    return %c0_i32, %c0_i32_0 : i32, i32
  }
  func.func @transform_6(%arg0: i32) -> (i32, i32) {
    %c0_i32 = arith.constant 0 : i32
    %c0_i32_0 = arith.constant 0 : i32
    return %arg0, %c0_i32 : i32, i32
  }
  func.func @transform_7(%arg0: i32) -> (i32, i32) {
    %c0_i32 = arith.constant 0 : i32
    %c0_i32_0 = arith.constant 0 : i32
    return %arg0, %c0_i32 : i32, i32
  }
  func.func @transform_8(%arg0: i32) -> (i32, i32) {
    %c0_i32 = arith.constant 0 : i32
    %c0_i32_0 = arith.constant 0 : i32
    return %arg0, %c0_i32 : i32, i32
  }
  func.func @transform_9(%arg0: i32) -> (i32, i32) {
    %c0_i32 = arith.constant 0 : i32
    %c0_i32_0 = arith.constant 0 : i32
    return %arg0, %c0_i32 : i32, i32
  }
  func.func @transform_10(%arg0: i32) -> (i32, i32) {
    %c0_i32 = arith.constant 0 : i32
    %c0_i32_0 = arith.constant 0 : i32
    return %arg0, %c0_i32 : i32, i32
  }
}

</mosaic_0001>

<bundles_post_ra>
// kernel: tpu_custom_call.1
= control target key start
LH: loop header
LB: loop body
LE: loop exit
PB: predicated region body
PF: predicated region fallthrough
CT: control target
= control target key end

     0   :  { %s4922_s0 = inlined_call_operand.vmem [shape: f32[24,5,32], index: 0, kind: input, shape index: {}]   ;;  %s4923_s1 = inlined_call_operand.vmem [shape: f32[24,5], index: 1, kind: input, shape index: {}]   ;;  %s4924_s2 = inlined_call_operand.vmem [shape: f32[5,32], index: 2, kind: input, shape index: {}]   ;;  %s4925_s3 = inlined_call_operand.vmem [shape: f32[24,8,6,32], index: 3, kind: input, shape index: {}]   ;;  %s4926_s4 = inlined_call_operand.vmem [shape: f32[24,8,6], index: 4, kind: input, shape index: {}]   ;;  %s4927_s5 = inlined_call_operand.vmem [shape: f32[6,32], index: 5, kind: input, shape index: {}]   ;;  %s4928_s6 = inlined_call_operand.vmem [shape: f32[24,8], index: 6, kind: input, shape index: {}]   ;;  %s4929_s7 = inlined_call_operand.vmem [shape: s32[24,8], index: 7, kind: input, shape index: {}]   ;;  %s4930_s8 = inlined_call_operand.hbm [shape: f32[24,128], index: 8, kind: output, shape index: {0}]   ;;  %s4931_s9 = inlined_call_operand.vmem [shape: s32[24,1], index: 9, kind: output, shape index: {1}]   ;;  %s4932_s10 = inlined_call_operand.vmem [shape: f32[24,8], index: 10, kind: output, shape index: {2}]  }
   0x1   :  { %4983 = sst [smem:[#allocation55_spill]] %s4923_s1 }
   0x2   :  { %16 = vsyncpa [#allocation3], 0 }
   0x3   :  { %18 = vsyncpa [#allocation3 + $0x1], 0  ;;  %s3322_s13 = smov 0   ;;  %s3324_s14 = smov 0  }
   0x4   :  { %s3326_s15 = smov 0   ;;  %s3328_s16 = smov 0  }
   0x5 LB: > { %s3343_s17 = sadd.s32 4294967295, %s3262_s16   ;;  %s3098_s18 = sadd.s32 4294967294, %s3262_s16   ;;  %s3262_s16 = sphi %s3328_s16, %s5152_s16   ;;  %s3258_s15 = sphi %s3326_s15, %s5151_s15   ;;  %s3254_s14 = sphi %s3324_s14, %s5150_s14   ;;  %s3250_s13 = sphi %s3322_s13, %s5149_s13  }
   0x6   : > { %s3347_s19 = sadd.s32 1, %s3262_s16   ;;  %s229_s20 = sadd.s32 1, %s3258_s15 }
   0x7   : > { %s226_s21 = ssub.s32 %s3262_s16, %s3347_s19  ;;  %p239_p0 = scmp.ne.s32.totalorder %s3258_s15, %s3254_s14 }
   0x8   : > { %p227_p1 = scmp.eq.s32.totalorder %s226_s21, 0  ;;  %p240_p2 = scmp.eq.s32.totalorder %s3343_s17, 2 }
   0x9   : > { %p245_p3 = scmp.ne.s32.totalorder %s3254_s14, %s3250_s13  ;;  %p246_p4 = scmp.eq.s32.totalorder %s3098_s18, 2 }
   0xa   : > { %s3358_s22 = scalar_select %p227_p1, %s3258_s15, %s229_s20  }
   0xb   : > { %p3360_p5 = por %p240_p2, %p239_p0  ;;  %p3364_p6 = por %p246_p4, %p245_p3 }
   0xc   : > { %p3101_p7 = scmp.ge.s32.totalorder %s3262_s16, 1  ;;  %p371_p8 = scmp.lt.s32.totalorder %s3262_s16, 4 }
   0xe   : > { %p372_p9 = pnand %p3101_p7, %p371_p8 }
  0x10   : > { %375 = sbr.rel (%p372_p9) target bundleno = 2095 (0x82f), region = 52 }
  0x17   : > { %p446_p10 = scmp.lt.s32.totalorder %s3343_s17, 2  ;;  %v4933_v0 = vlaneseq  ;;  %s3103_s25 = sshll.u32 %s3343_s17, 3  ;;  %vm634_vm0 = vcmask 258048   ;;  %vm1268_vm1 = vcmask 259072   ;;  %vm1846_vm2 = vcmask 1041409  }
  0x18   : > { %p441_p11 = scmp.lt.s32.totalorder %s3103_s25, 23  ;;  %s4989_s1 = sld [smem:[#allocation55_spill]]  ;;  %vm1849_vm3 = vcmask 1042434   ;;  %vm1852_vm4 = vcmask 1043459   ;;  %vm1855_vm5 = vcmask 1044484   ;;  %vm1858_vm6 = vcmask 1045509  }
  0x19   : > { %s447_s26 = scalar_select %p446_p10, %s3343_s17, 2  ;;  %v3374_v1 = vshrl.u32 %v4933_v0, 7  ;;  %vm1861_vm7 = vcmask 1046534   ;;  %vm1864_vm8 = vcmask 1047559   ;;  %vm1972_vm9 = vcmask 261120  }
  0x1a   : > { %s5154_s25 = smov (!%p441_p11, %s3103_s25), 23  ;;  %vm2472_vm11 = vcmask 64512  }
  0x1b   : > { %4986 = vst [vmem:[#allocation5_spill] sm:$0xff] %v3374_v1  ;;  %s3378_s27 = sshll.u32 %s447_s26, 3  ;;  %v3381_v2 = vsub.s32 2, %v3374_v1  ;;  %v3384_v3 = vsub.s32 0, %v3374_v1  ;;  %v3391_v4 = vsub.s32 3, %v3374_v1  ;;  %v3394_v5 = vsub.s32 1, %v3374_v1 }
  0x1c   : > { %s3104_s11 = sshll.u32 %s5154_s25, 3  ;;  %v3429_v17 = vsub.s32 4, %v3374_v1  ;;  %v3443_v23 = vsub.s32 5, %v3374_v1  ;;  %v3461_v31 = vsub.s32 6, %v3374_v1  ;;  %v3483_v41 = vsub.s32 7, %v3374_v1  ;;  %s3119_s21 = sshll.u32 %s5154_s25, 6 }
  0x1d   : > { %4987 = vst [vmem:[#allocation6_spill] sm:$0xff] %v3381_v2  ;;  %4988 = vst [vmem:[#allocation7_spill] sm:$0xff] %v3384_v3  ;;  %s3408_s20 = scalar_lea.vmem %s4926_s4, %s3104_s11  ;;  %s3552_s29 = scalar_lea.vmem %s4922_s0, %s3104_s11 }
  0x1e   : > { %s449_s30 = scalar_lea.vmem %s4989_s1, %s3378_s27  ;;  %4990 = vst [vmem:[#allocation8_spill] sm:$0xff] %v3391_v4  ;;  %4991 = vst [vmem:[#allocation9_spill] sm:$0xff] %v3394_v5  ;;  %v3415_v11 = vld [vmem:[%s3408_s20] sm:$0xff]  ;;  %v3422_v14 = vld [vmem:[%s3408_s20 + $0x8] sm:$0xff]  ;;  %s3557_s18 = scalar_lea.vmem %s4925_s3, %s3119_s21 }
  0x1f   : > { %v3397_v6 = vld [vmem:[%s449_s30] sm:$0xff]  ;;  %v766_v12 = vrot.slane %v3415_v11, %v3394_v5  ;;  %v759_v13 = vrot.slane %v3415_v11, %v3384_v3  ;;  %v822_v15 = vrot.slane %v3422_v14, %v3394_v5  ;;  %v815_v16 = vrot.slane %v3422_v14, %v3384_v3  ;;  %4992 = vst [vmem:[#allocation10_spill] sm:$0xff] %v3429_v17  ;;  %v3436_v20 = vld [vmem:[%s3408_s20 + $0x10] sm:$0xff]  ;;  %v3454_v28 = vld [vmem:[%s3408_s20 + $0x18] sm:$0xff]  ;;  %s470_s25 = scalar_lea.vmem %s4929_s7, %s3378_s27  ;;  %s425_s11 = sand.u32 1, %s3254_s14  }
  0x20   : > { %v587_v7 = vrot.slane %v3397_v6, %v3381_v2  ;;  %v573_v8 = vrot.slane %v3397_v6, %v3384_v3  ;;  %v594_v9 = vrot.slane %v3397_v6, %v3391_v4  ;;  %v580_v10 = vrot.slane %v3397_v6, %v3394_v5  ;;  %4993 = vst [vmem:[#allocation11_spill] sm:$0xff] %v3443_v23  ;;  %v3476_v38 = vld [vmem:[%s3408_s20 + $0x20] sm:$0xff]  ;;  %v3498_v48 = vld [vmem:[%s3408_s20 + $0x28] sm:$0xff]  ;;  %v3517_v57 = vld [vmem:[%s3408_s20 + $0x30] sm:$0xff]  ;;  %s3102_s21 = sshll.u32 %s425_s11, 3  ;;  %s3116_s30 = sshll.u32 %s3343_s17, 7 }
  0x21   : > { %v773_v18 = vrot.slane %v3415_v11, %v3381_v2  ;;  %v601_v19 = vrot.slane %v3397_v6, %v3429_v17  ;;  %v871_v21 = vrot.slane %v3436_v20, %v3384_v3  ;;  %v829_v22 = vrot.slane %v3422_v14, %v3381_v2  ;;  %4994 = vst [vmem:[#allocation12_spill] sm:$0xff] %v3461_v31  ;;  %v507_v0 = vld [vmem:[%s3557_s18 + $0xa0] sm:$0x3f]  ;;  %v502_v1 = vld [vmem:[%s3557_s18 + $0x78] sm:$0x3f]  ;;  %s427_s12 = scalar_lea.vmem [#allocation2], %s3102_s21 }
  0x22   : > { %589 = vbcast.lane.b32.xlu1 %v587_v7, 256  ;;  %575 = vbcast.lane.b32.xlu0 %v573_v8, 256  ;;  %v608_v24 = vrot.slane %v3397_v6, %v3443_v23  ;;  %v878_v25 = vrot.slane %v3436_v20, %v3394_v5  ;;  %v836_v26 = vrot.slane %v3422_v14, %v3391_v4  ;;  %v3536_v8 = vld [vmem:[%s3408_s20 + $0x38] sm:$0xff]  ;;  %s2904_s17 = scalar_lea.sflag [#allocation3], %s425_s11  ;;  %s3266_s21 = smov [#allocation2]  }
  0x23   : > { %v780_v27 = vrot.slane %v3415_v11, %v3391_v4  ;;  %v927_v29 = vrot.slane %v3454_v28, %v3384_v3  ;;  %v885_v30 = vrot.slane %v3436_v20, %v3381_v2  ;;  %v615_v32 = vrot.slane %v3397_v6, %v3461_v31  ;;  %4995 = vst [vmem:[#allocation13_spill] sm:$0xff] %v3483_v41  ;;  %s3204_s26 = sshll.u32 %s3266_s21, 4  ;;  %s3205_s26 = int_to_ptr.vmem [resolvable:$false] %s3204_s26 }
  0x24   : > { %v934_v33 = vrot.slane %v3454_v28, %v3394_v5  ;;  %v843_v34 = vrot.slane %v3422_v14, %v3429_v17  ;;  %v787_v35 = vrot.slane %v3415_v11, %v3429_v17  ;;  %v941_v36 = vrot.slane %v3454_v28, %v3381_v2  ;;  %s3206_s28 = scalar_lea.vmem %s3205_s26, 256 }
  0x25   : > { %v892_v37 = vrot.slane %v3436_v20, %v3391_v4  ;;  %v990_v39 = vrot.slane %v3476_v38, %v3394_v5  ;;  %v983_v40 = vrot.slane %v3476_v38, %v3384_v3  ;;  %v794_v42 = vrot.slane %v3415_v11, %v3443_v23 }
  0x26   : > { %596 = vbcast.lane.b32.xlu1 %v594_v9, 256  ;;  %582 = vbcast.lane.b32.xlu0 %v580_v10, 256  ;;  %v622_v43 = vrot.slane %v3397_v6, %v3483_v41  ;;  %v899_v44 = vrot.slane %v3436_v20, %v3429_v17  ;;  %v850_v45 = vrot.slane %v3422_v14, %v3443_v23 }
  0x27   : > { %v997_v46 = vrot.slane %v3476_v38, %v3381_v2  ;;  %v948_v47 = vrot.slane %v3454_v28, %v3391_v4  ;;  %v1046_v49 = vrot.slane %v3498_v48, %v3394_v5  ;;  %v1039_v50 = vrot.slane %v3498_v48, %v3384_v3 }
  0x28   : > { %v857_v51 = vrot.slane %v3422_v14, %v3461_v31  ;;  %v801_v52 = vrot.slane %v3415_v11, %v3461_v31  ;;  %v955_v53 = vrot.slane %v3454_v28, %v3429_v17  ;;  %v906_v54 = vrot.slane %v3436_v20, %v3443_v23 }
  0x29   : > { %v1053_v55 = vrot.slane %v3498_v48, %v3381_v2  ;;  %v1004_v56 = vrot.slane %v3476_v38, %v3391_v4  ;;  %v1102_v58 = vrot.slane %v3517_v57, %v3394_v5  ;;  %v1095_v59 = vrot.slane %v3517_v57, %v3384_v3 }
  0x2a   : > { %768 = vbcast.lane.b32.xlu1 %v766_v12, 256  ;;  %761 = vbcast.lane.b32.xlu0 %v759_v13, 256  ;;  %v864_v60 = vrot.slane %v3422_v14, %v3483_v41  ;;  %v808_v61 = vrot.slane %v3415_v11, %v3483_v41  ;;  %v962_v62 = vrot.slane %v3454_v28, %v3443_v23  ;;  %v3562_v13 = vld [vmem:[%s4924_s2] sm:$0x1f] }
  0x2b   : > { %v913_v63 = vrot.slane %v3436_v20, %v3461_v31  ;;  %v1060_v6 = vrot.slane %v3498_v48, %v3391_v4  ;;  %v1011_v7 = vrot.slane %v3476_v38, %v3429_v17  ;;  %v1151_v9 = vrot.slane %v3536_v8, %v3384_v3 }
  0x2c   : > { %v1109_v10 = vrot.slane %v3517_v57, %v3381_v2  ;;  %v920_v11 = vrot.slane %v3436_v20, %v3483_v41  ;;  %v1158_v12 = vrot.slane %v3536_v8, %v3394_v5  ;;  %v1018_v14 = vrot.slane %v3476_v38, %v3443_v23 }
  0x2d   : > { %v1116_v20 = vrot.slane %v3517_v57, %v3391_v4 }
  0x2e   : > { %824 = vbcast.lane.b32.xlu1 %v822_v15, 256  ;;  %817 = vbcast.lane.b32.xlu0 %v815_v16, 256  ;;  %v969_v15 = vrot.slane %v3454_v28, %v3461_v31  ;;  %v481_v16 = vld [vmem:[%s3552_s29 + $0x10] sm:$0x1f] }
  0x32   : > { %775 = vbcast.lane.b32.xlu1 %v773_v18, 256  ;;  %603 = vbcast.lane.b32.xlu0 %v601_v19, 256  ;;  %v479_v18 = vld [vmem:[%s3552_s29] sm:$0x1f]  ;;  %v482_v19 = vld [vmem:[%s3552_s29 + $0x18] sm:$0x1f] }
  0x36   : > { %873 = vbcast.lane.b32.xlu1 %v871_v21, 256  ;;  %831 = vbcast.lane.b32.xlu0 %v829_v22, 256  ;;  %v1067_v21 = vrot.slane %v3498_v48, %v3429_v17  ;;  %v480_v22 = vld [vmem:[%s3552_s29 + $0x8] sm:$0x1f] }
  0x3a   : > { %610 = vbcast.lane.b32.xlu1 %v608_v24, 256  ;;  %880 = vbcast.lane.b32.xlu0 %v878_v25, 256  ;;  %v488_v24 = vld [vmem:[%s3557_s18 + $0x8] sm:$0x3f]  ;;  %v3580_v25 = vld [vmem:[%s4927_s5] sm:$0x3f] }
  0x3e   : > { %838 = vbcast.lane.b32.xlu1 %v836_v26, 256  ;;  %782 = vbcast.lane.b32.xlu0 %v780_v27, 256  ;;  %v976_v26 = vrot.slane %v3454_v28, %v3483_v41  ;;  %v1165_v27 = vrot.slane %v3536_v8, %v3381_v2  ;;  %v1025_v28 = vrot.slane %v3476_v38, %v3461_v31 }
  0x42   : > { %929 = vbcast.lane.b32.xlu1 %v927_v29, 256  ;;  %887 = vbcast.lane.b32.xlu0 %v885_v30, 256  ;;  %v3587_v29 = vmul.f32 %v3562_v13, %v481_v16  ;;  %v3590_v30 = vmul.f32 %v3562_v13, %v479_v18  ;;  %v499_v16 = vld [vmem:[%s3557_s18 + $0x60] sm:$0x3f] }
  0x43   : > { %v491_v18 = vld [vmem:[%s3557_s18 + $0x20] sm:$0x3f] }
  0x46   : > { %617 = vbcast.lane.b32.xlu1 %v615_v32, 256  ;;  %936 = vbcast.lane.b32.xlu0 %v934_v33, 256  ;;  %v487_v32 = vld [vmem:[%s3557_s18] sm:$0x3f]  ;;  %v496_v33 = vld [vmem:[%s3557_s18 + $0x48] sm:$0x3f] }
  0x4a   : > { %845 = vbcast.lane.b32.xlu1 %v843_v34, 256  ;;  %789 = vbcast.lane.b32.xlu0 %v787_v35, 256  ;;  %v1074_v34 = vrot.slane %v3498_v48, %v3443_v23  ;;  %v3599_v35 = vmul.f32 %v3562_v13, %v482_v19  ;;  %v513_v19 = vld [vmem:[%s3557_s18 + $0xd0] sm:$0x3f] }
  0x4e   : > { %943 = vbcast.lane.b32.xlu1 %v941_v36, 256  ;;  %894 = vbcast.lane.b32.xlu0 %v892_v37, 256  ;;  %v495_v36 = vld [vmem:[%s3557_s18 + $0x40] sm:$0x3f]  ;;  %v489_v37 = vld [vmem:[%s3557_s18 + $0x10] sm:$0x3f] }
  0x52   : > { %992 = vbcast.lane.b32.xlu1 %v990_v39, 256  ;;  %985 = vbcast.lane.b32.xlu0 %v983_v40, 256  ;;  %v3604_v39 = vmul.f32 %v3562_v13, %v480_v22  ;;  %v3704_v22 = vmul.f32 %v3580_v25, %v491_v18 }
  0x56   : > { %796 = vbcast.lane.b32.xlu1 %v794_v42, 256  ;;  %624 = vbcast.lane.b32.xlu0 %v622_v43, 256  ;;  %v3611_v43 = vmul.f32 %v3580_v25, %v488_v24  ;;  %v500_v24 = vld [vmem:[%s3557_s18 + $0x68] sm:$0x3f] }
  0x5a   : > { %901 = vbcast.lane.b32.xlu1 %v899_v44, 256  ;;  %852 = vbcast.lane.b32.xlu0 %v850_v45, 256  ;;  %v483_v44 = vld [vmem:[%s3552_s29 + $0x20] sm:$0x1f] }
  0x5b   : > { %v503_v45 = vld [vmem:[%s3557_s18 + $0x80] sm:$0x3f] }
  0x5e   : > { %999 = vbcast.lane.b32.xlu1 %v997_v46, 256  ;;  %950 = vbcast.lane.b32.xlu0 %v948_v47, 256  ;;  %v497_v46 = vld [vmem:[%s3557_s18 + $0x50] sm:$0x3f]  ;;  %v3617_v47 = vmul.f32 %v3580_v25, %v487_v32  ;;  %v506_v32 = vld [vmem:[%s3557_s18 + $0x98] sm:$0x3f] }
  0x62   : > { %1048 = vbcast.lane.b32.xlu1 %v1046_v49, 256  ;;  %1041 = vbcast.lane.b32.xlu0 %v1039_v50, 256  ;;  %v515_v49 = vld [vmem:[%s3557_s18 + $0xe0] sm:$0x3f] }
  0x63   : > { %v3769_v40 = vmul.f32 %v3580_v25, %v515_v49  ;;  %v5001_v49 = vrot.slane %v3536_v8, %v3391_v4 }
  0x65   : > { %4997 = vst [vmem:[#allocation15_spill] sm:$0xff] %v3769_v40 }
  0x66   : > { %859 = vbcast.lane.b32.xlu1 %v857_v51, 256  ;;  %803 = vbcast.lane.b32.xlu0 %v801_v52, 256  ;;  %v3624_v51 = vmul.f32 %v3580_v25, %v496_v33  ;;  %v484_v52 = vld [vmem:[%s3552_s29 + $0x28] sm:$0x1f] }
  0x67   : > { %v520_v33 = vld [vmem:[%s3557_s18 + $0x108] sm:$0x3f] }
  0x6a   : > { %957 = vbcast.lane.b32.xlu1 %v955_v53, 256  ;;  %908 = vbcast.lane.b32.xlu0 %v906_v54, 256  ;;  %v504_v53 = vld [vmem:[%s3557_s18 + $0x88] sm:$0x3f]  ;;  %v498_v54 = vld [vmem:[%s3557_s18 + $0x58] sm:$0x3f] }
  0x6e   : > { %1055 = vbcast.lane.b32.xlu1 %v1053_v55, 256  ;;  %1006 = vbcast.lane.b32.xlu0 %v1004_v56, 256  ;;  %v3630_v55 = vmul.f32 %v3580_v25, %v495_v36  ;;  %v519_v36 = vld [vmem:[%s3557_s18 + $0x100] sm:$0x3f] }
  0x6f   : > { %v3719_v18 = vmul.f32 %v3580_v25, %v519_v36  ;;  %v3735_v36 = vmul.f32 %v3580_v25, %v500_v24 }
  0x72   : > { %1104 = vbcast.lane.b32.xlu1 %v1102_v58, 256  ;;  %1097 = vbcast.lane.b32.xlu0 %v1095_v59, 256  ;;  %v3637_v59 = vmul.f32 %v3580_v25, %v489_v37  ;;  %v3678_v37 = vmul.f32 %v3580_v25, %v498_v54  ;;  %v493_v58 = vld [vmem:[%s3557_s18 + $0x30] sm:$0x3f] }
  0x76   : > { %866 = vbcast.lane.b32.xlu1 %v864_v60, 256  ;;  %810 = vbcast.lane.b32.xlu0 %v808_v61, 256  ;;  %v490_v60 = vld [vmem:[%s3557_s18 + $0x18] sm:$0x3f]  ;;  %v511_v61 = vld [vmem:[%s3557_s18 + $0xc0] sm:$0x3f] }
  0x7a   : > { %964 = vbcast.lane.b32.xlu1 %v962_v62, 256  ;;  %915 = vbcast.lane.b32.xlu0 %v913_v63, 256  ;;  %v505_v62 = vld [vmem:[%s3557_s18 + $0x90] sm:$0x3f]  ;;  %v3643_v63 = vmul.f32 %v3562_v13, %v483_v44  ;;  %v3681_v44 = vmul.f32 %v3580_v25, %v490_v60 }
  0x7e   : > { %1062 = vbcast.lane.b32.xlu1 %v1060_v6, 256  ;;  %1013 = vbcast.lane.b32.xlu0 %v1011_v7, 256  ;;  %v501_v6 = vld [vmem:[%s3557_s18 + $0x70] sm:$0x3f] }
  0x82   : > { %1153 = vbcast.lane.b32.xlu1 %v1151_v9, 256  ;;  %1111 = vbcast.lane.b32.xlu0 %v1109_v10, 256  ;;  %v485_v9 = vld [vmem:[%s3552_s29 + $0x30] sm:$0x1f]  ;;  %v512_v10 = vld [vmem:[%s3557_s18 + $0xc8] sm:$0x3f] }
  0x83   : > { %v3693_v54 = vmul.f32 %v3562_v13, %v485_v9  ;;  %v3696_v60 = vmul.f32 %v3580_v25, %v512_v10  ;;  %v514_v9 = vld [vmem:[%s3557_s18 + $0xd8] sm:$0x3f]  ;;  %v528_v10 = vld [vmem:[%s3557_s18 + $0x148] sm:$0x3f] }
  0x86   : > { %922 = vbcast.lane.b32.xlu1 %v920_v11, 256  ;;  %1160 = vbcast.lane.b32.xlu0 %v1158_v12, 256  ;;  %v3652_v11 = vmul.f32 %v3580_v25, %v503_v45  ;;  %v3655_v12 = vmul.f32 %v3580_v25, %v497_v46  ;;  %v3684_v45 = vmul.f32 %v3580_v25, %v511_v61 }
  0x87   : > { %v3687_v46 = vmul.f32 %v3580_v25, %v505_v62  ;;  %v3699_v61 = vmul.f32 %v3580_v25, %v499_v16  ;;  %v521_v62 = vld [vmem:[%s3557_s18 + $0x110] sm:$0x3f]  ;;  %v527_v16 = vld [vmem:[%s3557_s18 + $0x140] sm:$0x3f] }
  0x8a   : > { %1020 = vbcast.lane.b32.xlu1 %v1018_v14, 256  ;;  %971 = vbcast.lane.b32.xlu0 %v969_v15, 256  ;;  %v3707_v15 = vmul.f32 %v3580_v25, %v513_v19 }
  0x8e   : > { %1118 = vbcast.lane.b32.xlu1 %v1116_v20, 256  ;;  %1069 = vbcast.lane.b32.xlu0 %v1067_v21, 256  ;;  %v3665_v20 = vmul.f32 %v3562_v13, %v484_v52  ;;  %v3668_v21 = vmul.f32 %v3580_v25, %v504_v53  ;;  %v492_v52 = vld [vmem:[%s3557_s18 + $0x28] sm:$0x3f]  ;;  %v486_v53 = vld [vmem:[%s3552_s29 + $0x38] sm:$0x1f]  ;;  %s466_s29 = scalar_lea.vmem %s4928_s6, %s3378_s27 }
  0x8f   : > { %v3722_v19 = vmul.f32 %v3580_v25, %v492_v52  ;;  %v3738_v52 = vmul.f32 %v3580_v25, %v521_v62  ;;  %v536_v62 = vld [vmem:[%s3557_s18 + $0x188] sm:$0x3f] }
  0x92   : > { %978 = vbcast.lane.b32.xlu1 %v976_v26, 256  ;;  %1167 = vbcast.lane.b32.xlu0 %v1165_v27, 256  ;;  %v3710_v26 = vmul.f32 %v3580_v25, %v506_v32  ;;  %v3713_v27 = vmul.f32 %v3580_v25, %v520_v33  ;;  %v3725_v32 = vmul.f32 %v3562_v13, %v486_v53  ;;  %v508_v13 = vld [vmem:[%s3557_s18 + $0xa8] sm:$0x3f] }
  0x93   : > { %v3728_v33 = vmul.f32 %v3580_v25, %v507_v0  ;;  %v3749_v0 = vmul.f32 %v3580_v25, %v514_v9  ;;  %v3762_v53 = vmul.f32 %v3580_v25, %v501_v6 }
  0x94   : > { %v590_v14 = vpop.permute.xlu1 %589  ;;  %v576_v7 = vpop.permute.xlu0 %575 }
  0x95   : > { %v628_v56 = vmul.f32 %v590_v14, %v3587_v29  ;;  %v626_v50 = vmul.f32 %v576_v7, %v3590_v30  ;;  %v3752_v29 = vmul.f32 %v3580_v25, %v528_v10  ;;  %v3755_v30 = vmul.f32 %v3580_v25, %v527_v16  ;;  %v529_v7 = vld [vmem:[%s3557_s18 + $0x150] sm:$0x3f]  ;;  %v522_v14 = vld [vmem:[%s3557_s18 + $0x118] sm:$0x3f] }
  0x96   : > { %1076 = vbcast.lane.b32.xlu1 %v1074_v34, 256  ;;  %1027 = vbcast.lane.b32.xlu0 %v1025_v28, 256  ;;  %v3765_v28 = vmul.f32 %v3580_v25, %v493_v58  ;;  %v3779_v2 = vmul.f32 %v3580_v25, %v529_v7  ;;  %v3782_v5 = vmul.f32 %v3580_v25, %v522_v14 }
  0x97   : > { %v649_v24 = vsel %vm634_vm0, %v628_v56, 0.0  ;;  %v635_v34 = vsel %vm634_vm0, %v626_v50, 0.0  ;;  %v3772_v56 = vmul.f32 %v3580_v25, %v508_v13  ;;  %v535_v50 = vld [vmem:[%s3557_s18 + $0x180] sm:$0x3f]  ;;  %v5002_v13 = vrot.slane %v3517_v57, %v3429_v17 }
  0x98   : > { %4996 = vst [vmem:[#allocation14_spill] sm:$0xff] %v3765_v28  ;;  %v650_v9 = vrot.slane %v649_v24, 4  ;;  %v636_v10 = vrot.slane %v635_v34, 4  ;;  %v597_v42 = vpop.permute.xlu1 %596  ;;  %v583_v16 = vpop.permute.xlu0 %582  ;;  %4999 = vst [vmem:[#allocation17_spill] sm:$0xff] %v3779_v2 }
  0x99   : > { %4998 = vst [vmem:[#allocation16_spill] sm:$0xff] %v3772_v56  ;;  %v629_v6 = vmul.f32 %v597_v42, %v3599_v35  ;;  %v627_v58 = vmul.f32 %v583_v16, %v3604_v39  ;;  %5000 = vst [vmem:[#allocation18_spill] sm:$0xff] %v3782_v5  ;;  %v3791_v35 = vmul.f32 %v3580_v25, %v536_v62  ;;  %v494_v39 = vld [vmem:[%s3557_s18 + $0x38] sm:$0x3f]  ;;  %v516_v42 = vld [vmem:[%s3557_s18 + $0xe8] sm:$0x3f] }
  0x9a   : > { %v651_v3 = vadd.f32 %v650_v9, %v649_v24  ;;  %v637_v28 = vadd.f32 %v636_v10, %v635_v34  ;;  %1174 = vbcast.lane.b32.xlu1 %v5001_v49, 256  ;;  %1125 = vbcast.lane.b32.xlu0 %v5002_v13, 256  ;;  %v3798_v24 = vmul.f32 %v3580_v25, %v535_v50  ;;  %v509_v9 = vld [vmem:[%s3557_s18 + $0xb0] sm:$0x3f] }
  0x9b   : > { %5003 = vst [vmem:[#allocation19_spill] sm:$0xff] %v3791_v35  ;;  %v656_v7 = vsel %vm634_vm0, %v629_v6, 0.0  ;;  %v642_v14 = vsel %vm634_vm0, %v627_v58, 0.0  ;;  %v3801_v34 = vmul.f32 %v3580_v25, %v502_v1  ;;  %v530_v35 = vld [vmem:[%s3557_s18 + $0x158] sm:$0x3f]  ;;  %v3808_v58 = vmul.f32 %v3580_v25, %v494_v39 }
  0x9c   : > { %5004 = vst [vmem:[#allocation20_spill] sm:$0xff] %v3798_v24  ;;  %v652_v10 = vrot.slane %v651_v3, 2  ;;  %v638_v16 = vrot.slane %v637_v28, 2  ;;  %v657_v49 = vrot.slane %v656_v7, 4  ;;  %v643_v13 = vrot.slane %v642_v14, 4  ;;  %v769_v4 = vpop.permute.xlu1 %768  ;;  %v762_v62 = vpop.permute.xlu0 %761 }
  0x9d   : > { %5005 = vst [vmem:[#allocation21_spill] sm:$0xff] %v3801_v34  ;;  %v1205_v5 = vmul.f32 %v769_v4, %v3611_v43  ;;  %v1204_v6 = vmul.f32 %v762_v62, %v3617_v47  ;;  %v3811_v50 = vmul.f32 %v3580_v25, %v516_v42  ;;  %v5006_v56 = vrot.slane %v3498_v48, %v3461_v31 }
  0x9e   : > { %v653_v1 = vadd.f32 %v652_v10, %v651_v3  ;;  %v639_v34 = vadd.f32 %v638_v16, %v637_v28  ;;  %v658_v24 = vadd.f32 %v657_v49, %v656_v7  ;;  %v644_v2 = vadd.f32 %v643_v13, %v642_v14 }
  0x9f   : > { %1083 = vbcast.lane.b32.xlu1 %v5006_v56, 256  ;;  %v1276_v40 = vsel %vm1268_vm1, %v1205_v5, 0.0  ;;  %v1269_v4 = vsel %vm1268_vm1, %v1204_v6, 0.0  ;;  %v5007_v43 = vrot.slane %v3476_v38, %v3483_v41  ;;  %v3822_v47 = vmul.f32 %v3580_v25, %v509_v9 }
  0xa0   : > { %v3825_v3 = vmul.f32 %v3580_v25, %v530_v35  ;;  %v654_v28 = vrot.slane %v653_v1, 1  ;;  %v640_v39 = vrot.slane %v639_v34, 1  ;;  %v659_v42 = vrot.slane %v658_v24, 2  ;;  %v825_v14 = vpop.permute.xlu1 %824  ;;  %v818_v56 = vpop.permute.xlu0 %817 }
  0xa1   : > { %1034 = vbcast.lane.b32.xlu0 %v5007_v43, 256  ;;  %v645_v7 = vrot.slane %v644_v2, 2  ;;  %v1277_v10 = vrot.slane %v1276_v40, 4  ;;  %v1270_v5 = vrot.slane %v1269_v4, 4  ;;  %v1213_v16 = vmul.f32 %v825_v14, %v3624_v51 }
  0xa2   : > { %5008 = vst [vmem:[#allocation22_spill] sm:$0xff] %v3825_v3  ;;  %v1212_v49 = vmul.f32 %v818_v56, %v3630_v55  ;;  %v3829_v38 = vadd.f32 %v654_v28, %v653_v1  ;;  %v3831_v13 = vadd.f32 %v640_v39, %v639_v34  ;;  %v660_v9 = vadd.f32 %v659_v42, %v658_v24 }
  0xa3   : > { %v646_v62 = vadd.f32 %v645_v7, %v644_v2  ;;  %v5011_v25 = vrot.slane %v3536_v8, %v3429_v17  ;;  %v1278_v35 = vadd.f32 %v1277_v10, %v1276_v40  ;;  %v1271_v6 = vadd.f32 %v1270_v5, %v1269_v4 }
  0xa4   : > { %5009 = vst [vmem:[#allocation23_spill] sm:$0xff] %v3829_v38  ;;  %5010 = vst [vmem:[#allocation24_spill] sm:$0xff] %v3831_v13  ;;  %v1332_v43 = vsel %vm1268_vm1, %v1213_v16, 0.0  ;;  %v1325_v3 = vsel %vm1268_vm1, %v1212_v49, 0.0  ;;  %v5012_v51 = vrot.slane %v3517_v57, %v3443_v23  ;;  %v661_v55 = vrot.slane %v660_v9, 1  ;;  %v776_v24 = vpop.permute.xlu1 %775  ;;  %v604_v2 = vpop.permute.xlu0 %603 }
  0xa5   : > { %1181 = vbcast.lane.b32.xlu1 %v5011_v25, 256  ;;  %v647_v1 = vrot.slane %v646_v62, 1  ;;  %v1333_v34 = vrot.slane %v1332_v43, 4  ;;  %v1326_v28 = vrot.slane %v1325_v3, 4  ;;  %v1279_v39 = vrot.slane %v1278_v35, 2 }
  0xa6   : > { %1132 = vbcast.lane.b32.xlu0 %v5012_v51, 256  ;;  %v1272_v42 = vrot.slane %v1271_v6, 2  ;;  %v1206_v7 = vmul.f32 %v776_v24, %v3637_v59  ;;  %v630_v40 = vmul.f32 %v604_v2, %v3643_v63  ;;  %v3843_v4 = vadd.f32 %v661_v55, %v660_v9 }
  0xa7   : > { %v3845_v14 = vadd.f32 %v647_v1, %v646_v62  ;;  %v1334_v56 = vadd.f32 %v1333_v34, %v1332_v43  ;;  %v1327_v10 = vadd.f32 %v1326_v28, %v1325_v3  ;;  %v5015_v5 = vrot.slane %v3517_v57, %v3461_v31 }
  0xa8   : > { %5013 = vst [vmem:[#allocation25_spill] sm:$0xff] %v3843_v4  ;;  %v1280_v16 = vadd.f32 %v1279_v39, %v1278_v35  ;;  %v1273_v49 = vadd.f32 %v1272_v42, %v1271_v6  ;;  %v1283_v25 = vsel %vm1268_vm1, %v1206_v7, 0.0  ;;  %v663_v51 = vsel %vm634_vm0, %v630_v40, 0.0  ;;  %v874_v43 = vpop.permute.xlu1 %873  ;;  %v832_v3 = vpop.permute.xlu0 %831 }
  0xa9   : > { %5014 = vst [vmem:[#allocation26_spill] sm:$0xff] %v3845_v14  ;;  %1139 = vbcast.lane.b32.xlu1 %v5015_v5, 256  ;;  %v5016_v59 = vrot.slane %v3498_v48, %v3483_v41  ;;  %v1335_v63 = vrot.slane %v1334_v56, 2  ;;  %v1328_v9 = vrot.slane %v1327_v10, 2  ;;  %v1284_v62 = vrot.slane %v1283_v25, 4 }
  0xaa   : > { %v664_v55 = vrot.slane %v663_v51, 4  ;;  %v1281_v1 = vrot.slane %v1280_v16, 1  ;;  %v1274_v34 = vrot.slane %v1273_v49, 1  ;;  %v1220_v28 = vmul.f32 %v874_v43, %v3652_v11 }
  0xab   : > { %1090 = vbcast.lane.b32.xlu0 %v5016_v59, 256  ;;  %v1214_v35 = vmul.f32 %v832_v3, %v3655_v12  ;;  %v1336_v6 = vadd.f32 %v1335_v63, %v1334_v56  ;;  %v1329_v24 = vadd.f32 %v1328_v9, %v1327_v10  ;;  %v1285_v2 = vadd.f32 %v1284_v62, %v1283_v25 }
  0xac   : > { %v665_v39 = vadd.f32 %v664_v55, %v663_v51  ;;  %v5017_v48 = vrot.slane %v3517_v57, %v3483_v41  ;;  %v1282_v42 = vadd.f32 %v1281_v1, %v1280_v16  ;;  %v1275_v7 = vadd.f32 %v1274_v34, %v1273_v49  ;;  %v611_v25 = vpop.permute.xlu1 %610  ;;  %v881_v51 = vpop.permute.xlu0 %880 }
  0xad   : > { %v1381_v40 = vsel %vm1268_vm1, %v1220_v28, 0.0  ;;  %v1339_v5 = vsel %vm1268_vm1, %v1214_v35, 0.0  ;;  %v5018_v59 = vrot.slane %v3536_v8, %v3443_v23  ;;  %v1337_v11 = vrot.slane %v1336_v6, 1 }
  0xae   : > { %1146 = vbcast.lane.b32.xlu1 %v5017_v48, 256  ;;  %v1330_v12 = vrot.slane %v1329_v24, 1  ;;  %v1286_v56 = vrot.slane %v1285_v2, 2  ;;  %v666_v10 = vrot.slane %v665_v39, 2  ;;  %v3866_v63 = vmul.f32 %v1282_v42, %v3831_v13 }
  0xaf   : > { %1188 = vbcast.lane.b32.xlu0 %v5018_v59, 256  ;;  %v3868_v57 = vmul.f32 %v1282_v42, %v1282_v42  ;;  %v3871_v16 = vmul.f32 %v1275_v7, %v3831_v13  ;;  %v3873_v49 = vmul.f32 %v1275_v7, %v1275_v7  ;;  %v1338_v9 = vadd.f32 %v1337_v11, %v1336_v6 }
  0xb0   : > { %5019 = vst [vmem:[#allocation27_spill] sm:$0xff] %v3866_v63  ;;  %v1331_v62 = vadd.f32 %v1330_v12, %v1329_v24  ;;  %v1287_v55 = vadd.f32 %v1286_v56, %v1285_v2  ;;  %v667_v43 = vadd.f32 %v666_v10, %v665_v39  ;;  %v5021_v3 = vrot.slane %v3536_v8, %v3483_v41  ;;  %v839_v39 = vpop.permute.xlu1 %838  ;;  %v783_v7 = vpop.permute.xlu0 %782 }
  0xb1   : > { %5020 = vst [vmem:[#allocation28_spill] sm:$0xff] %v3871_v16  ;;  %v1382_v34 = vrot.slane %v1381_v40, 4  ;;  %v1340_v28 = vrot.slane %v1339_v5, 4  ;;  %v631_v35 = vmul.f32 %v611_v25, %v3665_v20  ;;  %v5022_v48 = vrot.slane %v3536_v8, %v3461_v31  ;;  %v5053_v16 = vld [vmem:[#allocation20_spill] sm:$0xff] }
  0xb2   : > { %1202 = vbcast.lane.b32.xlu1 %v5021_v3, 256  ;;  %v3884_v42 = vmul.f32 %v1338_v9, %v3845_v14  ;;  %v3886_v6 = vmul.f32 %v1338_v9, %v1338_v9  ;;  %v3889_v24 = vmul.f32 %v1331_v62, %v3845_v14  ;;  %v3891_v2 = vmul.f32 %v1331_v62, %v1331_v62 }
  0xb3   : > { %1195 = vbcast.lane.b32.xlu0 %v5022_v48, 256  ;;  %v1288_v59 = vrot.slane %v1287_v55, 1  ;;  %v668_v11 = vrot.slane %v667_v43, 1  ;;  %v1383_v12 = vadd.f32 %v1382_v34, %v1381_v40  ;;  %v1341_v20 = vadd.f32 %v1340_v28, %v1339_v5 }
  0xb4   : > { %5023 = vst [vmem:[#allocation29_spill] sm:$0xff] %v3884_v42  ;;  %5024 = vst [vmem:[#allocation30_spill] sm:$0xff] %v3889_v24  ;;  %v670_v8 = vsel %vm634_vm0, %v631_v35, 0.0  ;;  %v1221_v10 = vmul.f32 %v881_v51, %v3668_v21  ;;  %v1215_v25 = vmul.f32 %v839_v39, %v3678_v37  ;;  %v1207_v40 = vmul.f32 %v783_v7, %v3681_v44  ;;  %v930_v5 = vpop.permute.xlu1 %929  ;;  %v888_v34 = vpop.permute.xlu0 %887 }
  0xb5   : > { %v1289_v9 = vadd.f32 %v1288_v59, %v1287_v55  ;;  %v3897_v3 = vadd.f32 %v668_v11, %v667_v43  ;;  %v1384_v48 = vrot.slane %v1383_v12, 2  ;;  %v1342_v62 = vrot.slane %v1341_v20, 2 }
  0xb6   : > { %v671_v1 = vrot.slane %v670_v8, 4  ;;  %v1388_v31 = vsel %vm1268_vm1, %v1221_v10, 0.0  ;;  %v1346_v41 = vsel %vm1268_vm1, %v1215_v25, 0.0  ;;  %v1290_v39 = vsel %vm1268_vm1, %v1207_v40, 0.0 }
  0xb7   : > { %v3903_v28 = vmul.f32 %v1289_v9, %v3831_v13  ;;  %v3905_v21 = vmul.f32 %v1289_v9, %v1289_v9  ;;  %v1385_v37 = vadd.f32 %v1384_v48, %v1383_v12  ;;  %v1343_v51 = vadd.f32 %v1342_v62, %v1341_v20 }
  0xb8   : > { %v672_v55 = vadd.f32 %v671_v1, %v670_v8  ;;  %v1389_v43 = vrot.slane %v1388_v31, 4  ;;  %v1347_v35 = vrot.slane %v1346_v41, 4  ;;  %v1291_v25 = vrot.slane %v1290_v39, 4  ;;  %v618_v23 = vpop.permute.xlu1 %617  ;;  %v937_v9 = vpop.permute.xlu0 %936 }
  0xb9   : > { %5025 = vst [vmem:[#allocation31_spill] sm:$0xff] %v3903_v28  ;;  %v1386_v11 = vrot.slane %v1385_v37, 1  ;;  %v1344_v10 = vrot.slane %v1343_v51, 1  ;;  %v1228_v17 = vmul.f32 %v930_v5, %v3684_v45  ;;  %v1222_v1 = vmul.f32 %v888_v34, %v3687_v46 }
  0xba   : > { %v673_v44 = vrot.slane %v672_v55, 2  ;;  %v1390_v7 = vadd.f32 %v1389_v43, %v1388_v31  ;;  %v1348_v56 = vadd.f32 %v1347_v35, %v1346_v41  ;;  %v1292_v20 = vadd.f32 %v1291_v25, %v1290_v39 }
  0xbb   : > { %v1387_v42 = vadd.f32 %v1386_v11, %v1385_v37  ;;  %v1345_v12 = vadd.f32 %v1344_v10, %v1343_v51  ;;  %v1437_v40 = vsel %vm1268_vm1, %v1228_v17, 0.0  ;;  %v1395_v17 = vsel %vm1268_vm1, %v1222_v1, 0.0 }
  0xbc   : > { %v674_v8 = vadd.f32 %v673_v44, %v672_v55  ;;  %v1391_v48 = vrot.slane %v1390_v7, 2  ;;  %v1349_v62 = vrot.slane %v1348_v56, 2  ;;  %v1293_v51 = vrot.slane %v1292_v20, 2  ;;  %v846_v46 = vpop.permute.xlu1 %845  ;;  %v790_v34 = vpop.permute.xlu0 %789 }
  0xbd   : > { %v3913_v59 = vmul.f32 %v1387_v42, %v3829_v38  ;;  %v3915_v24 = vmul.f32 %v1387_v42, %v1387_v42  ;;  %v3918_v31 = vmul.f32 %v1345_v12, %v3845_v14  ;;  %v3920_v41 = vmul.f32 %v1345_v12, %v1345_v12 }
  0xbe   : > { %v675_v45 = vrot.slane %v674_v8, 1  ;;  %v1392_v5 = vadd.f32 %v1391_v48, %v1390_v7  ;;  %v1350_v37 = vadd.f32 %v1349_v62, %v1348_v56  ;;  %v1438_v43 = vrot.slane %v1437_v40, 4 }
  0xbf   : > { %5026 = vst [vmem:[#allocation32_spill] sm:$0xff] %v3913_v59  ;;  %5027 = vst [vmem:[#allocation33_spill] sm:$0xff] %v3918_v31  ;;  %v632_v35 = vmul.f32 %v618_v23, %v3693_v54  ;;  %v1294_v10 = vadd.f32 %v1293_v51, %v1292_v20  ;;  %v1396_v44 = vrot.slane %v1395_v17, 4  ;;  %v1229_v56 = vmul.f32 %v937_v9, %v3696_v60 }
  0xc0   : > { %v3925_v42 = vadd.f32 %v675_v45, %v674_v8  ;;  %v1393_v39 = vrot.slane %v1392_v5, 1  ;;  %v1351_v11 = vrot.slane %v1350_v37, 1  ;;  %v1439_v25 = vadd.f32 %v1438_v43, %v1437_v40  ;;  %v944_v31 = vpop.permute.xlu1 %943  ;;  %v895_v59 = vpop.permute.xlu0 %894 }
  0xc1   : > { %v677_v7 = vsel %vm634_vm0, %v632_v35, 0.0  ;;  %v1295_v62 = vrot.slane %v1294_v10, 1  ;;  %v1397_v28 = vadd.f32 %v1396_v44, %v1395_v17  ;;  %v1444_v23 = vsel %vm1268_vm1, %v1229_v56, 0.0 }
  0xc2   : > { %v1394_v12 = vadd.f32 %v1393_v39, %v1392_v5  ;;  %v1352_v48 = vadd.f32 %v1351_v11, %v1350_v37  ;;  %v678_v55 = vrot.slane %v677_v7, 4  ;;  %v1440_v1 = vrot.slane %v1439_v25, 2 }
  0xc3   : > { %v1216_v54 = vmul.f32 %v846_v46, %v3699_v61  ;;  %v1296_v9 = vadd.f32 %v1295_v62, %v1294_v10  ;;  %v1398_v5 = vrot.slane %v1397_v28, 2  ;;  %v1445_v17 = vrot.slane %v1444_v23, 4 }
  0xc4   : > { %v3932_v20 = vmul.f32 %v1394_v12, %v3829_v38  ;;  %v3934_v8 = vmul.f32 %v1394_v12, %v1394_v12  ;;  %v3937_v40 = vmul.f32 %v1352_v48, %v3845_v14  ;;  %v3939_v60 = vmul.f32 %v1352_v48, %v1352_v48  ;;  %v993_v46 = vpop.permute.xlu1 %992  ;;  %v986_v35 = vpop.permute.xlu0 %985 }
  0xc5   : > { %v1441_v45 = vadd.f32 %v1440_v1, %v1439_v25  ;;  %v679_v37 = vadd.f32 %v678_v55, %v677_v7  ;;  %v1353_v61 = vsel %vm1268_vm1, %v1216_v54, 0.0  ;;  %v3945_v39 = vmul.f32 %v1296_v9, %v3831_v13 }
  0xc6   : > { %5028 = vst [vmem:[#allocation34_spill] sm:$0xff] %v3932_v20  ;;  %5029 = vst [vmem:[#allocation35_spill] sm:$0xff] %v3937_v40  ;;  %v3947_v11 = vmul.f32 %v1296_v9, %v1296_v9  ;;  %v1399_v56 = vadd.f32 %v1398_v5, %v1397_v28  ;;  %v1446_v25 = vadd.f32 %v1445_v17, %v1444_v23  ;;  %v1354_v12 = vrot.slane %v1353_v61, 4 }
  0xc7   : > { %5030 = vst [vmem:[#allocation36_spill] sm:$0xff] %v3945_v39  ;;  %v1442_v44 = vrot.slane %v1441_v45, 1  ;;  %v680_v10 = vrot.slane %v679_v37, 2  ;;  %v1208_v55 = vmul.f32 %v790_v34, %v3704_v22  ;;  %v1230_v1 = vmul.f32 %v944_v31, %v3707_v15 }
  0xc8   : > { %v1400_v62 = vrot.slane %v1399_v56, 1  ;;  %v1447_v43 = vrot.slane %v1446_v25, 2  ;;  %v1355_v51 = vadd.f32 %v1354_v12, %v1353_v61  ;;  %v797_v9 = vpop.permute.xlu1 %796 }
  0xc9   : > { %v1443_v48 = vadd.f32 %v1442_v44, %v1441_v45  ;;  %v681_v54 = vadd.f32 %v680_v10, %v679_v37  ;;  %v1297_v40 = vsel %vm1268_vm1, %v1208_v55, 0.0  ;;  %v1451_v45 = vsel %vm1268_vm1, %v1230_v1, 0.0  ;;  %v625_v44 = vpop.permute.xlu0 %624 }
  0xca   : > { %v1401_v5 = vadd.f32 %v1400_v62, %v1399_v56  ;;  %v1298_v23 = vrot.slane %v1297_v40, 4  ;;  %v1448_v22 = vadd.f32 %v1447_v43, %v1446_v25  ;;  %v1356_v34 = vrot.slane %v1355_v51, 2 }
  0xcb   : > { %v1741_v20 = vmul.f32 %v1443_v48, %v3843_v4  ;;  %v2021_v28 = vmul.f32 %v1443_v48, %v1443_v48  ;;  %v682_v17 = vrot.slane %v681_v54, 1  ;;  %v1452_v61 = vrot.slane %v1451_v45, 4 }
  0xcc   : > { %v3956_v15 = vmul.f32 %v1401_v5, %v3829_v38  ;;  %v3958_v31 = vmul.f32 %v1401_v5, %v1401_v5  ;;  %v1299_v37 = vadd.f32 %v1298_v23, %v1297_v40  ;;  %v1449_v12 = vrot.slane %v1448_v22, 1  ;;  %v902_v40 = vpop.permute.xlu1 %901 }
  0xcd   : > { %v3960_v10 = vadd.f32 %v682_v17, %v681_v54  ;;  %v1357_v55 = vadd.f32 %v1356_v34, %v1355_v51  ;;  %v1223_v56 = vmul.f32 %v895_v59, %v3710_v26  ;;  %v1453_v25 = vadd.f32 %v1452_v61, %v1451_v45  ;;  %v853_v45 = vpop.permute.xlu0 %852 }
  0xce   : > { %5031 = vst [vmem:[#allocation37_spill] sm:$0xff] %v3956_v15  ;;  %v1300_v43 = vrot.slane %v1299_v37, 2  ;;  %v1237_v62 = vmul.f32 %v993_v46, %v3713_v27  ;;  %v1450_v1 = vadd.f32 %v1449_v12, %v1448_v22  ;;  %v1236_v5 = vmul.f32 %v986_v35, %v3719_v18 }
  0xcf   : > { %v1358_v7 = vrot.slane %v1357_v55, 1  ;;  %v1402_v39 = vsel %vm1268_vm1, %v1223_v56, 0.0  ;;  %v1454_v54 = vrot.slane %v1453_v25, 2 }
  0xd0   : > { %v1301_v23 = vadd.f32 %v1300_v43, %v1299_v37  ;;  %v1403_v17 = vrot.slane %v1402_v39, 4  ;;  %v1500_v51 = vsel %vm1268_vm1, %v1237_v62, 0.0  ;;  %v1742_v26 = vmul.f32 %v1450_v1, %v3843_v4 }
  0xd1   : > { %v2022_v59 = vmul.f32 %v1450_v1, %v1450_v1  ;;  %v1359_v34 = vadd.f32 %v1358_v7, %v1357_v55  ;;  %v1501_v48 = vrot.slane %v1500_v51, 4  ;;  %v1455_v27 = vadd.f32 %v1454_v54, %v1453_v25 }
  0xd2   : > { %v1302_v61 = vrot.slane %v1301_v23, 1  ;;  %v1404_v46 = vadd.f32 %v1403_v17, %v1402_v39  ;;  %v1493_v22 = vsel %vm1268_vm1, %v1236_v5, 0.0  ;;  %v1894_v12 = vrot.slane %v1742_v26, 7  ;;  %v1000_v5 = vpop.permute.xlu1 %999 }
  0xd3   : > { %v3971_v18 = vsel %vm1846_vm2, %v2022_v59, %v2021_v28  ;;  %v3974_v35 = vmul.f32 %v1359_v34, %v3845_v14  ;;  %v3976_v37 = vmul.f32 %v1359_v34, %v1359_v34  ;;  %v1456_v43 = vrot.slane %v1455_v27, 1 }
  0xd4   : > { %v1303_v56 = vadd.f32 %v1302_v61, %v1301_v23  ;;  %v1405_v62 = vrot.slane %v1404_v46, 2  ;;  %v1502_v7 = vadd.f32 %v1501_v48, %v1500_v51  ;;  %v3979_v55 = vsel %vm1846_vm2, %v1894_v12, %v1741_v20  ;;  %v951_v51 = vpop.permute.xlu0 %950 }
  0xd5   : > { %5032 = vst [vmem:[#allocation38_spill] sm:$0xff] %v3974_v35  ;;  %5033 = vst [vmem:[#allocation39_spill] sm:$0xff] %v3979_v55  ;;  %v1494_v25 = vrot.slane %v1493_v22, 4  ;;  %v1209_v1 = vmul.f32 %v797_v9, %v3722_v19  ;;  %v1457_v17 = vadd.f32 %v1456_v43, %v1455_v27  ;;  %v633_v20 = vmul.f32 %v625_v44, %v3725_v32 }
  0xd6   : > { %v3984_v28 = vmul.f32 %v1303_v56, %v3831_v13  ;;  %v3986_v54 = vmul.f32 %v1303_v56, %v1303_v56  ;;  %v1406_v26 = vadd.f32 %v1405_v62, %v1404_v46  ;;  %v1503_v23 = vrot.slane %v1502_v7, 2  ;;  %v1049_v34 = vpop.permute.xlu1 %1048 }
  0xd7   : > { %v1495_v59 = vadd.f32 %v1494_v25, %v1493_v22  ;;  %v1304_v48 = vsel %vm1268_vm1, %v1209_v1, 0.0  ;;  %v3992_v61 = vmul.f32 %v1457_v17, %v3843_v4  ;;  %v3994_v19 = vmul.f32 %v1457_v17, %v1457_v17 }
  0xd8   : > { %5034 = vst [vmem:[#allocation40_spill] sm:$0xff] %v3984_v28  ;;  %v1407_v9 = vrot.slane %v1406_v26, 1  ;;  %v1504_v12 = vadd.f32 %v1503_v23, %v1502_v7  ;;  %v1305_v39 = vrot.slane %v1304_v48, 4  ;;  %v684_v27 = vsel %vm634_vm0, %v633_v20, 0.0 }
  0xd9   : > { %5035 = vst [vmem:[#allocation41_spill] sm:$0xff] %v3992_v61  ;;  %v1496_v56 = vrot.slane %v1495_v59, 2  ;;  %v685_v43 = vrot.slane %v684_v27, 4  ;;  %v1224_v32 = vmul.f32 %v902_v40, %v3728_v33  ;;  %v1217_v1 = vmul.f32 %v853_v45, %v3735_v36  ;;  %v1042_v61 = vpop.permute.xlu0 %1041 }
  0xda   : > { %v1408_v22 = vadd.f32 %v1407_v9, %v1406_v26  ;;  %v1505_v44 = vrot.slane %v1504_v12, 1  ;;  %v1306_v25 = vadd.f32 %v1305_v39, %v1304_v48  ;;  %v1238_v36 = vmul.f32 %v1000_v5, %v3738_v52 }
  0xdb   : > { %v1497_v62 = vadd.f32 %v1496_v56, %v1495_v59  ;;  %v686_v23 = vadd.f32 %v685_v43, %v684_v27  ;;  %v1409_v20 = vsel %vm1268_vm1, %v1224_v32, 0.0  ;;  %v1360_v39 = vsel %vm1268_vm1, %v1217_v1, 0.0 }
  0xdc   : > { %v4001_v17 = vmul.f32 %v1408_v22, %v3829_v38  ;;  %v4003_v7 = vmul.f32 %v1408_v22, %v1408_v22  ;;  %v1506_v55 = vadd.f32 %v1505_v44, %v1504_v12  ;;  %v1307_v26 = vrot.slane %v1306_v25, 2 }
  0xdd   : > { %v1498_v46 = vrot.slane %v1497_v62, 1  ;;  %v1410_v9 = vrot.slane %v1409_v20, 4  ;;  %v687_v40 = vrot.slane %v686_v23, 2  ;;  %v1361_v43 = vrot.slane %v1360_v39, 4 }
  0xde   : > { %5036 = vst [vmem:[#allocation42_spill] sm:$0xff] %v4001_v17  ;;  %v1750_v45 = vmul.f32 %v1506_v55, %v3897_v3  ;;  %v2030_v59 = vmul.f32 %v1506_v55, %v1506_v55  ;;  %v1308_v56 = vadd.f32 %v1307_v26, %v1306_v25  ;;  %v1507_v12 = vsel %vm1268_vm1, %v1238_v36, 0.0  ;;  %v860_v17 = vpop.permute.xlu1 %859  ;;  %v804_v25 = vpop.permute.xlu0 %803 }
  0xdf   : > { %v1499_v48 = vadd.f32 %v1498_v46, %v1497_v62  ;;  %v688_v27 = vadd.f32 %v687_v40, %v686_v23  ;;  %v1411_v22 = vadd.f32 %v1410_v9, %v1409_v20  ;;  %v1362_v28 = vadd.f32 %v1361_v43, %v1360_v39 }
  0xe0   : > { %v1908_v32 = vrot.slane %v1750_v45, 7  ;;  %v1309_v33 = vrot.slane %v1308_v56, 1  ;;  %v1508_v52 = vrot.slane %v1507_v12, 4  ;;  %v1231_v62 = vmul.f32 %v951_v51, %v3749_v0 }
  0xe1   : > { %v1749_v44 = vmul.f32 %v1499_v48, %v3897_v3  ;;  %v2029_v35 = vmul.f32 %v1499_v48, %v1499_v48  ;;  %v689_v15 = vrot.slane %v688_v27, 1  ;;  %v1412_v1 = vrot.slane %v1411_v22, 2 }
  0xe2   : > { %v4018_v46 = vadd.f32 %v1309_v33, %v1308_v56  ;;  %v1363_v26 = vrot.slane %v1362_v28, 2  ;;  %v1509_v9 = vadd.f32 %v1508_v52, %v1507_v12  ;;  %v1458_v39 = vsel %vm1268_vm1, %v1231_v62, 0.0  ;;  %v5039_v56 = vld [vmem:[#allocation14_spill] sm:$0xff] }
  0xe3   : > { %v4013_v5 = vsel %vm1846_vm2, %v1908_v32, %v1749_v44  ;;  %v4016_v55 = vsel %vm1846_vm2, %v2030_v59, %v2029_v35  ;;  %v4021_v23 = vadd.f32 %v689_v15, %v688_v27  ;;  %v1413_v20 = vadd.f32 %v1412_v1, %v1411_v22  ;;  %v958_v22 = vpop.permute.xlu1 %957 }
  0xe4   : > { %5037 = vst [vmem:[#allocation43_spill] sm:$0xff] %v4013_v5  ;;  %v4025_v40 = vmul.f32 %v4018_v46, %v3831_v13  ;;  %v1245_v36 = vmul.f32 %v1049_v34, %v3752_v29  ;;  %v1244_v35 = vmul.f32 %v1042_v61, %v3755_v30  ;;  %v1364_v45 = vadd.f32 %v1363_v26, %v1362_v28  ;;  %v909_v61 = vpop.permute.xlu0 %908 }
  0xe5   : > { %v1414_v33 = vrot.slane %v1413_v20, 1  ;;  %v1510_v59 = vrot.slane %v1509_v9, 2  ;;  %v1459_v0 = vrot.slane %v1458_v39, 4  ;;  %v1218_v48 = vmul.f32 %v860_v17, %v3762_v53 }
  0xe6   : > { %5038 = vst [vmem:[#allocation44_spill] sm:$0xff] %v4025_v40  ;;  %v1556_v15 = vsel %vm1268_vm1, %v1245_v36, 0.0  ;;  %v1549_v51 = vsel %vm1268_vm1, %v1244_v35, 0.0  ;;  %v1210_v27 = vmul.f32 %v804_v25, %v5039_v56  ;;  %v1365_v12 = vrot.slane %v1364_v45, 1 }
  0xe7   : > { %v1415_v43 = vadd.f32 %v1414_v33, %v1413_v20  ;;  %v1511_v32 = vadd.f32 %v1510_v59, %v1509_v9  ;;  %v1460_v44 = vadd.f32 %v1459_v0, %v1458_v39  ;;  %v1557_v29 = vrot.slane %v1556_v15, 4  ;;  %v4047_v56 = vpop.permute.xlu1 %1055 }
  0xe8   : > { %v1550_v34 = vrot.slane %v1549_v51, 4  ;;  %v1367_v30 = vsel %vm1268_vm1, %v1218_v48, 0.0  ;;  %v1311_v28 = vsel %vm1268_vm1, %v1210_v27, 0.0  ;;  %v1366_v53 = vadd.f32 %v1365_v12, %v1364_v45 }
  0xe9   : > { %v4037_v1 = vmul.f32 %v1415_v43, %v3829_v38  ;;  %v4039_v52 = vmul.f32 %v1415_v43, %v1415_v43  ;;  %v1512_v17 = vrot.slane %v1511_v32, 1  ;;  %v1461_v62 = vrot.slane %v1460_v44, 2 }
  0xea   : > { %v1558_v25 = vadd.f32 %v1557_v29, %v1556_v15  ;;  %v1551_v20 = vadd.f32 %v1550_v34, %v1549_v51  ;;  %v1368_v26 = vrot.slane %v1367_v30, 4  ;;  %v4043_v39 = vmul.f32 %v1366_v53, %v3845_v14 }
  0xeb   : > { %5040 = vst [vmem:[#allocation14_spill] sm:$0xff] %v4037_v1  ;;  %v4045_v36 = vmul.f32 %v1366_v53, %v1366_v53  ;;  %v1513_v35 = vadd.f32 %v1512_v17, %v1511_v32  ;;  %v1462_v33 = vadd.f32 %v1461_v62, %v1460_v44  ;;  %v1312_v27 = vrot.slane %v1311_v28, 4  ;;  %v1007_v53 = vpop.permute.xlu0 %1006  ;;  %v5044_v17 = vld [vmem:[#allocation15_spill] sm:$0xff]  ;;  %v5045_v62 = vld [vmem:[#allocation16_spill] sm:$0xff] }
  0xec   : > { %5041 = vst [vmem:[#allocation45_spill] sm:$0xff] %v4043_v39  ;;  %v1559_v59 = vrot.slane %v1558_v25, 2  ;;  %v1552_v0 = vrot.slane %v1551_v20, 2  ;;  %v1369_v48 = vadd.f32 %v1368_v26, %v1367_v30  ;;  %v1232_v30 = vmul.f32 %v958_v22, %v5044_v17 }
  0xed   : > { %v4051_v15 = vmul.f32 %v1513_v35, %v3897_v3  ;;  %v4053_v51 = vmul.f32 %v1513_v35, %v1513_v35  ;;  %v1463_v43 = vrot.slane %v1462_v33, 1  ;;  %v1313_v44 = vadd.f32 %v1312_v27, %v1311_v28 }
  0xee   : > { %v1560_v12 = vadd.f32 %v1559_v59, %v1558_v25  ;;  %v1553_v29 = vadd.f32 %v1552_v0, %v1551_v20  ;;  %v1370_v34 = vrot.slane %v1369_v48, 2  ;;  %v1225_v26 = vmul.f32 %v909_v61, %v5045_v62  ;;  %v1105_v59 = vpop.permute.xlu1 %1104 }
  0xef   : > { %5042 = vst [vmem:[#allocation46_spill] sm:$0xff] %v4051_v15  ;;  %5043 = vst [vmem:[#allocation47_spill] sm:$0xff] %v4053_v51  ;;  %v1464_v45 = vadd.f32 %v1463_v43, %v1462_v33  ;;  %v1314_v35 = vrot.slane %v1313_v44, 2  ;;  %v1465_v1 = vsel %vm1268_vm1, %v1232_v30, 0.0  ;;  %v2213_v20 = vmul.f32 %v3831_v13, %v3831_v13 }
  0xf0   : > { %v1561_v9 = vrot.slane %v1560_v12, 1  ;;  %v1554_v39 = vrot.slane %v1553_v29, 1  ;;  %v1371_v5 = vadd.f32 %v1370_v34, %v1369_v48  ;;  %v1416_v25 = vsel %vm1268_vm1, %v1225_v26, 0.0  ;;  %v1098_v26 = vpop.permute.xlu0 %1097 }
  0xf1   : > { %v4063_v28 = vmul.f32 %v1464_v45, %v3843_v4  ;;  %v4065_v22 = vmul.f32 %v1464_v45, %v1464_v45  ;;  %v1315_v48 = vadd.f32 %v1314_v35, %v1313_v44  ;;  %v1466_v27 = vrot.slane %v1465_v1, 4 }
  0xf2   : > { %v1562_v61 = vadd.f32 %v1561_v9, %v1560_v12  ;;  %v1555_v33 = vadd.f32 %v1554_v39, %v1553_v29  ;;  %v1372_v0 = vrot.slane %v1371_v5, 1  ;;  %v1417_v43 = vrot.slane %v1416_v25, 4 }
  0xf3   : > { %5046 = vst [vmem:[#allocation15_spill] sm:$0xff] %v4063_v28  ;;  %v1316_v9 = vrot.slane %v1315_v48, 1  ;;  %v1467_v39 = vadd.f32 %v1466_v27, %v1465_v1  ;;  %v2214_v44 = vmul.f32 %v3845_v14, %v3845_v14  ;;  %v2215_v35 = vmul.f32 %v3829_v38, %v3829_v38  ;;  %v867_v27 = vpop.permute.xlu1 %866 }
  0xf4   : > { %v1758_v17 = vmul.f32 %v1562_v61, %v3925_v42  ;;  %v2038_v30 = vmul.f32 %v1562_v61, %v1562_v61  ;;  %v1757_v62 = vmul.f32 %v1555_v33, %v3925_v42  ;;  %v2037_v45 = vmul.f32 %v1555_v33, %v1555_v33  ;;  %v811_v14 = vpop.permute.xlu0 %810 }
  0xf5   : > { %v4070_v32 = vadd.f32 %v1372_v0, %v1371_v5  ;;  %v1418_v29 = vadd.f32 %v1417_v43, %v1416_v25  ;;  %v4079_v34 = vadd.f32 %v1316_v9, %v1315_v48  ;;  %v1468_v28 = vrot.slane %v1467_v39, 2  ;;  %v5050_v9 = vld [vmem:[#allocation17_spill] sm:$0xff] }
  0xf6   : > { %v1922_v12 = vrot.slane %v1758_v17, 7  ;;  %v4077_v61 = vsel %vm1846_vm2, %v2038_v30, %v2037_v45  ;;  %v2216_v5 = vmul.f32 %v3843_v4, %v3843_v4  ;;  %v2217_v25 = vmul.f32 %v3897_v3, %v3897_v3 }
  0xf7   : > { %5047 = vst [vmem:[#allocation16_spill] sm:$0xff] %v4077_v61  ;;  %5048 = vst [vmem:[#allocation48_spill] sm:$0xff] %v4079_v34  ;;  %v1419_v33 = vrot.slane %v1418_v29, 2  ;;  %v2218_v0 = vmul.f32 %v3925_v42, %v3925_v42  ;;  %v1469_v43 = vadd.f32 %v1468_v28, %v1467_v39  ;;  %v2219_v48 = vmul.f32 %v3960_v10, %v3960_v10  ;;  %v5052_v39 = vld [vmem:[#allocation19_spill] sm:$0xff] }
  0xf8   : > { %v4084_v1 = vsel %vm1846_vm2, %v1922_v12, %v1757_v62  ;;  %v2220_v17 = vmul.f32 %v4021_v23, %v4021_v23  ;;  %v2229_v30 = vsel %vm1846_vm2, %v2214_v44, %v2213_v20  ;;  %v1246_v12 = vmul.f32 %v4047_v56, %v5050_v9 }
  0xf9   : > { %5049 = vst [vmem:[#allocation49_spill] sm:$0xff] %v4084_v1  ;;  %v1420_v45 = vadd.f32 %v1419_v33, %v1418_v29  ;;  %v2230_v62 = vsel %vm1849_vm3, %v2215_v35, %v2229_v30  ;;  %v5051_v1 = vld [vmem:[#allocation18_spill] sm:$0xff]  ;;  %v1470_v40 = vrot.slane %v1469_v43, 1  ;;  %v1253_v63 = vmul.f32 %v1105_v59, %v5052_v39 }
  0xfa   : > { %v1239_v15 = vmul.f32 %v1007_v53, %v5051_v1  ;;  %v2231_v28 = vsel %vm1852_vm4, %v2216_v5, %v2230_v62  ;;  %v1252_v13 = vmul.f32 %v1098_v26, %v5053_v16  ;;  %v1563_v20 = vsel %vm1268_vm1, %v1246_v12, 0.0  ;;  %v965_v16 = vpop.permute.xlu1 %964 }
  0xfb   : > { %v1421_v61 = vrot.slane %v1420_v45, 1  ;;  %v2232_v51 = vsel %vm1855_vm5, %v2217_v25, %v2231_v28  ;;  %v1471_v44 = vadd.f32 %v1470_v40, %v1469_v43  ;;  %v1564_v35 = vrot.slane %v1563_v20, 4 }
  0xfc   : > { %v1514_v29 = vsel %vm1268_vm1, %v1239_v15, 0.0  ;;  %v2233_v56 = vsel %vm1858_vm6, %v2218_v0, %v2232_v51  ;;  %v1612_v5 = vsel %vm1268_vm1, %v1253_v63, 0.0  ;;  %v1605_v59 = vsel %vm1268_vm1, %v1252_v13, 0.0  ;;  %v916_v63 = vpop.permute.xlu0 %915 }
  0xfd   : > { %v1515_v53 = vrot.slane %v1514_v29, 4  ;;  %v1422_v1 = vadd.f32 %v1421_v61, %v1420_v45  ;;  %v2234_v33 = vsel %vm1861_vm7, %v2219_v48, %v2233_v56  ;;  %v4110_v26 = vmul.f32 %v1471_v44, %v3843_v4 }
  0xfe   : > { %v4112_v25 = vmul.f32 %v1471_v44, %v1471_v44  ;;  %v2235_v15 = vsel %vm1864_vm8, %v2220_v17, %v2234_v33  ;;  %v1565_v40 = vadd.f32 %v1564_v35, %v1563_v20  ;;  %v1613_v30 = vrot.slane %v1612_v5, 4  ;;  %v5056_v17 = vld [vmem:[#allocation21_spill] sm:$0xff]  ;;  %v1063_v33 = vpop.permute.xlu1 %1062 }
  0xff   : > { %5054 = vst [vmem:[#allocation17_spill] sm:$0xff] %v4110_v26  ;;  %v4116_v51 = vmul.f32 %v1422_v1, %v3829_v38  ;;  %v4118_v0 = vmul.f32 %v1422_v1, %v1422_v1  ;;  %v2237_v61 = vsel %vm1972_vm9, %v2235_v15, 0.0  ;;  %v1516_v43 = vadd.f32 %v1515_v53, %v1514_v29 }
 0x100   : > { %2238 = vadd.xlane.f32.xlu0 %v2237_v61  ;;  %v1566_v48 = vrot.slane %v1565_v40, 2  ;;  %v1606_v45 = vrot.slane %v1605_v59, 4  ;;  %v1219_v12 = vmul.f32 %v867_v27, %v5056_v17  ;;  %v1211_v28 = vmul.f32 %v811_v14, %v3808_v58 }
 0x101   : > { %5055 = vst [vmem:[#allocation18_spill] sm:$0xff] %v4116_v51  ;;  %v1517_v9 = vrot.slane %v1516_v43, 2  ;;  %v1614_v20 = vadd.f32 %v1613_v30, %v1612_v5  ;;  %v1233_v56 = vmul.f32 %v965_v16, %v3811_v50  ;;  %v1226_v1 = vmul.f32 %v916_v63, %v3822_v47  ;;  %v1014_v5 = vpop.permute.xlu0 %1013 }
 0x102   : > { %v1567_v39 = vadd.f32 %v1566_v48, %v1565_v40  ;;  %v1607_v44 = vadd.f32 %v1606_v45, %v1605_v59  ;;  %v1374_v35 = vsel %vm1268_vm1, %v1219_v12, 0.0  ;;  %v1318_v53 = vsel %vm1268_vm1, %v1211_v28, 0.0 }
 0x103   : > { %v1518_v29 = vadd.f32 %v1517_v9, %v1516_v43  ;;  %v1615_v61 = vrot.slane %v1614_v20, 2  ;;  %v1375_v62 = vrot.slane %v1374_v35, 4  ;;  %v1319_v17 = vrot.slane %v1318_v53, 4 }
 0x104   : > { %v1568_v15 = vrot.slane %v1567_v39, 1  ;;  %v1608_v13 = vrot.slane %v1607_v44, 2  ;;  %v1472_v58 = vsel %vm1268_vm1, %v1233_v56, 0.0  ;;  %v1423_v14 = vsel %vm1268_vm1, %v1226_v1, 0.0 }
 0x105   : > { %v1519_v27 = vrot.slane %v1518_v29, 1  ;;  %v1616_v59 = vadd.f32 %v1615_v61, %v1614_v20  ;;  %v1376_v40 = vadd.f32 %v1375_v62, %v1374_v35  ;;  %v1320_v48 = vadd.f32 %v1319_v17, %v1318_v53  ;;  %v1154_v62 = vpop.permute.xlu1 %1153  ;;  %v1112_v17 = vpop.permute.xlu0 %1111  ;;  %v543_v20 = vld [vmem:[%s3557_s18 + $0x1c0] sm:$0x3f] }
 0x106   : > { %v1569_v50 = vadd.f32 %v1568_v15, %v1567_v39  ;;  %v1609_v16 = vadd.f32 %v1608_v13, %v1607_v44  ;;  %v1473_v30 = vrot.slane %v1472_v58, 4  ;;  %v1424_v47 = vrot.slane %v1423_v14, 4 }
 0x107   : > { %v1520_v43 = vadd.f32 %v1519_v27, %v1518_v29  ;;  %v1617_v9 = vrot.slane %v1616_v59, 1  ;;  %v1377_v39 = vrot.slane %v1376_v40, 2  ;;  %v1321_v13 = vrot.slane %v1320_v48, 2  ;;  %v523_v27 = vld [vmem:[%s3557_s18 + $0x120] sm:$0x3f] }
 0x108   : > { %v4132_v63 = vmul.f32 %v1569_v50, %v3925_v42  ;;  %v4134_v45 = vmul.f32 %v1569_v50, %v1569_v50  ;;  %v1610_v12 = vrot.slane %v1609_v16, 1  ;;  %v1474_v35 = vadd.f32 %v1473_v30, %v1472_v58 }
 0x109   : > { %v4137_v28 = vmul.f32 %v1520_v43, %v3897_v3  ;;  %v4139_v56 = vmul.f32 %v1520_v43, %v1520_v43  ;;  %v1618_v44 = vadd.f32 %v1617_v9, %v1616_v59  ;;  %v4143_v1 = vadd.f32 %v1377_v39, %v1376_v40  ;;  %v537_v40 = vld [vmem:[%s3557_s18 + $0x190] sm:$0x3f]  ;;  %v510_v59 = vld [vmem:[%s3557_s18 + $0xb8] sm:$0x3f] }
 0x10a   : > { %5057 = vst [vmem:[#allocation19_spill] sm:$0xff] %v4132_v63  ;;  %v1611_v29 = vadd.f32 %v1610_v12, %v1609_v16  ;;  %v1322_v15 = vadd.f32 %v1321_v13, %v1320_v48  ;;  %v1425_v61 = vadd.f32 %v1424_v47, %v1423_v14  ;;  %v1475_v16 = vrot.slane %v1474_v35, 2  ;;  %v5059_v48 = vld [vmem:[#allocation22_spill] sm:$0xff]  ;;  %v4158_v12 = vld [vmem:[%s4927_s5] sm:$0x3f] }
 0x10b   : > { %5058 = vst [vmem:[#allocation20_spill] sm:$0xff] %v4137_v28  ;;  %v1766_v50 = vmul.f32 %v1618_v44, %v3960_v10  ;;  %v2046_v43 = vmul.f32 %v1618_v44, %v1618_v44  ;;  %v1247_v47 = vmul.f32 %v1063_v33, %v5059_v48  ;;  %v728_v39 = vmul.f32 %v4158_v12, %v523_v27  ;;  %v544_v63 = vld [vmem:[%s3557_s18 + $0x1c8] sm:$0x3f] }
 0x10c   : > { %v1765_v26 = vmul.f32 %v1611_v29, %v3960_v10  ;;  %v2045_v51 = vmul.f32 %v1611_v29, %v1611_v29  ;;  %v1323_v58 = vrot.slane %v1322_v15, 1  ;;  %v1426_v30 = vrot.slane %v1425_v61, 2 }
 0x10d   : > { %v1936_v9 = vrot.slane %v1766_v50, 7  ;;  %v1476_v44 = vadd.f32 %v1475_v16, %v1474_v35  ;;  %v748_v53 = vmul.f32 %v4158_v12, %v543_v20  ;;  %v923_v50 = vpop.permute.xlu1 %922  ;;  %v1570_v33 = vsel %vm1268_vm1, %v1247_v47, 0.0  ;;  %v1161_v35 = vpop.permute.xlu0 %1160 }
 0x10e   : > { %v4152_v14 = vsel %vm1846_vm2, %v2046_v43, %v2045_v51  ;;  %v4161_v13 = vadd.f32 %v1323_v58, %v1322_v15  ;;  %v1427_v29 = vadd.f32 %v1426_v30, %v1425_v61  ;;  %v1240_v43 = vmul.f32 %v1014_v5, %v728_v39  ;;  %v524_v39 = vld [vmem:[%s3557_s18 + $0x128] sm:$0x3f] }
 0x10f   : > { %v4167_v51 = vsel %vm1846_vm2, %v1936_v9, %v1765_v26  ;;  %v742_v48 = vmul.f32 %v4158_v12, %v537_v40  ;;  %v1477_v28 = vrot.slane %v1476_v44, 1  ;;  %v1571_v15 = vrot.slane %v1570_v33, 4 }
 0x110   : > { %5060 = vst [vmem:[#allocation21_spill] sm:$0xff] %v4161_v13  ;;  %5061 = vst [vmem:[#allocation22_spill] sm:$0xff] %v4167_v51  ;;  %v1428_v27 = vrot.slane %v1427_v29, 1  ;;  %v1260_v58 = vmul.f32 %v1154_v62, %v748_v53  ;;  %v1521_v61 = vsel %vm1268_vm1, %v1240_v43, 0.0  ;;  %v715_v16 = vmul.f32 %v4158_v12, %v510_v59 }
 0x111   : > { %v1254_v20 = vmul.f32 %v1112_v17, %v742_v48  ;;  %v749_v30 = vmul.f32 %v4158_v12, %v544_v63  ;;  %v4174_v26 = vadd.f32 %v1477_v28, %v1476_v44  ;;  %v1572_v47 = vadd.f32 %v1571_v15, %v1570_v33  ;;  %v1021_v28 = vpop.permute.xlu1 %1020 }
 0x112   : > { %v4176_v9 = vadd.f32 %v1428_v27, %v1427_v29  ;;  %v1522_v5 = vrot.slane %v1521_v61, 4  ;;  %v1661_v40 = vsel %vm1268_vm1, %v1260_v58, 0.0  ;;  %v1227_v62 = vmul.f32 %v923_v50, %v715_v16 }
 0x113   : > { %v1619_v51 = vsel %vm1268_vm1, %v1254_v20, 0.0  ;;  %v1261_v53 = vmul.f32 %v1161_v35, %v749_v30  ;;  %v4183_v17 = vmul.f32 %v4174_v26, %v3843_v4  ;;  %v1573_v59 = vrot.slane %v1572_v47, 2 }
 0x114   : > { %v1523_v43 = vadd.f32 %v1522_v5, %v1521_v61  ;;  %v1662_v63 = vrot.slane %v1661_v40, 4  ;;  %v1620_v44 = vrot.slane %v1619_v51, 4  ;;  %v1430_v29 = vsel %vm1268_vm1, %v1227_v62, 0.0 }
 0x115   : > { %5062 = vst [vmem:[#allocation50_spill] sm:$0xff] %v4183_v17  ;;  %v1668_v33 = vsel %vm1268_vm1, %v1261_v53, 0.0  ;;  %v729_v48 = vmul.f32 %v4158_v12, %v524_v39  ;;  %v1574_v27 = vadd.f32 %v1573_v59, %v1572_v47  ;;  %v1431_v50 = vrot.slane %v1430_v29, 4 }
 0x116   : > { %v1524_v15 = vrot.slane %v1523_v43, 2  ;;  %v1663_v58 = vadd.f32 %v1662_v63, %v1661_v40  ;;  %v1621_v35 = vadd.f32 %v1620_v44, %v1619_v51  ;;  %v1669_v20 = vrot.slane %v1668_v33, 4  ;;  %v972_v44 = vpop.permute.xlu0 %971 }
 0x117   : > { %v1241_v16 = vmul.f32 %v1021_v28, %v729_v48  ;;  %v4190_v30 = vmul.f32 %v4018_v46, %v4018_v46  ;;  %v1575_v61 = vrot.slane %v1574_v27, 1  ;;  %v1432_v4 = vadd.f32 %v1431_v50, %v1430_v29 }
 0x118   : > { %v1525_v5 = vadd.f32 %v1524_v15, %v1523_v43  ;;  %v1664_v17 = vrot.slane %v1663_v58, 2  ;;  %v1622_v62 = vrot.slane %v1621_v35, 2  ;;  %v1670_v38 = vadd.f32 %v1669_v20, %v1668_v33 }
 0x119   : > { %v1528_v53 = vsel %vm1268_vm1, %v1241_v16, 0.0  ;;  %v4195_v47 = vmul.f32 %v4079_v34, %v4079_v34  ;;  %v1576_v39 = vadd.f32 %v1575_v61, %v1574_v27  ;;  %v1433_v59 = vrot.slane %v1432_v4, 2 }
 0x11a   : > { %v1526_v51 = vrot.slane %v1525_v5, 1  ;;  %v1665_v40 = vadd.f32 %v1664_v17, %v1663_v58  ;;  %v1623_v63 = vadd.f32 %v1622_v62, %v1621_v35  ;;  %v1671_v28 = vrot.slane %v1670_v38, 2  ;;  %v1119_v35 = vpop.permute.xlu1 %1118 }
 0x11b   : > { %v1529_v46 = vrot.slane %v1528_v53, 4  ;;  %v2004_v43 = vmul.f32 %v4161_v13, %v4161_v13  ;;  %v4200_v29 = vmul.f32 %v1576_v39, %v3925_v42  ;;  %v4202_v33 = vmul.f32 %v1576_v39, %v1576_v39  ;;  %v531_v39 = vld [vmem:[%s3557_s18 + $0x160] sm:$0x3f] }
 0x11c   : > { %v1527_v48 = vadd.f32 %v1526_v51, %v1525_v5  ;;  %v1666_v15 = vrot.slane %v1665_v40, 1  ;;  %v1624_v50 = vrot.slane %v1623_v63, 1  ;;  %v4204_v27 = vadd.f32 %v1433_v59, %v1432_v4  ;;  %v517_v51 = vld [vmem:[%s3557_s18 + $0xf0] sm:$0x3f] }
 0x11d   : > { %v1672_v17 = vadd.f32 %v1671_v28, %v1670_v38  ;;  %v1530_v58 = vadd.f32 %v1529_v46, %v1528_v53  ;;  %v2125_v59 = vsel %vm1846_vm2, %v3868_v57, %v3873_v49  ;;  %v2011_v57 = vmul.f32 %v4070_v32, %v4070_v32 }
 0x11e   : > { %v4208_v16 = vmul.f32 %v1527_v48, %v3897_v3  ;;  %v4210_v61 = vmul.f32 %v1527_v48, %v1527_v48  ;;  %v1667_v62 = vadd.f32 %v1666_v15, %v1665_v40  ;;  %v1625_v13 = vadd.f32 %v1624_v50, %v1623_v63  ;;  %v1070_v48 = vpop.permute.xlu0 %1069 }
 0x11f   : > { %v1673_v34 = vrot.slane %v1672_v17, 1  ;;  %v1531_v5 = vrot.slane %v1530_v58, 2  ;;  %v2126_v15 = vsel %vm1849_vm3, %v3905_v21, %v2125_v59  ;;  %v722_v50 = vmul.f32 %v4158_v12, %v517_v51  ;;  %v979_v21 = vpop.permute.xlu1 %978 }
 0x120   : > { %v1773_v38 = vmul.f32 %v1667_v62, %v4021_v23  ;;  %v2053_v53 = vmul.f32 %v1667_v62, %v1667_v62  ;;  %v4220_v28 = vmul.f32 %v1625_v13, %v3960_v10  ;;  %v4222_v40 = vmul.f32 %v1625_v13, %v1625_v13 }
 0x121   : > { %v1674_v63 = vadd.f32 %v1673_v34, %v1672_v17  ;;  %v1532_v46 = vadd.f32 %v1531_v5, %v1530_v58  ;;  %v5063_v62 = vrot.slane %v4143_v1, 1  ;;  %v538_v58 = vld [vmem:[%s3557_s18 + $0x198] sm:$0x3f]  ;;  %v2127_v5 = vsel %vm1852_vm4, %v3947_v11, %v2126_v15 }
 0x122   : > { %v1234_v51 = vmul.f32 %v972_v44, %v722_v50  ;;  %v2132_v59 = vsel %vm1846_vm2, %v3886_v6, %v3891_v2  ;;  %v2128_v4 = vsel %vm1855_vm5, %v3986_v54, %v2127_v5  ;;  %v743_v6 = vmul.f32 %v4158_v12, %v538_v58  ;;  %v518_v2 = vld [vmem:[%s3557_s18 + $0xf8] sm:$0x3f]  ;;  %v1168_v50 = vpop.permute.xlu0 %1167 }
 0x123   : > { %v4230_v20 = vadd.f32 %v5063_v62, %v4143_v1  ;;  %v1774_v34 = vmul.f32 %v1674_v63, %v4021_v23  ;;  %v2054_v13 = vmul.f32 %v1674_v63, %v1674_v63  ;;  %v1533_v17 = vrot.slane %v1532_v46, 1 }
 0x124   : > { %v2129_v11 = vsel %vm1858_vm6, %v4190_v30, %v2128_v4  ;;  %v1479_v44 = vsel %vm1268_vm1, %v1234_v51, 0.0  ;;  %v2133_v15 = vsel %vm1849_vm3, %v3920_v41, %v2132_v59  ;;  %v545_v4 = vld [vmem:[%s3557_s18 + $0x1d0] sm:$0x3f]  ;;  %v532_v51 = vld [vmem:[%s3557_s18 + $0x168] sm:$0x3f]  ;;  %v1077_v59 = vpop.permute.xlu1 %1076 }
 0x125   : > { %v2012_v1 = vmul.f32 %v4230_v20, %v4230_v20  ;;  %v1950_v62 = vrot.slane %v1774_v34, 7  ;;  %v4245_v49 = vsel %vm1846_vm2, %v2054_v13, %v2053_v53  ;;  %v4247_v63 = vadd.f32 %v1533_v17, %v1532_v46 }
 0x126   : > { %v2130_v54 = vsel %vm1861_vm7, %v4195_v47, %v2129_v11  ;;  %v1480_v30 = vrot.slane %v1479_v44, 4  ;;  %v2134_v41 = vsel %vm1852_vm4, %v3939_v60, %v2133_v15  ;;  %v1255_v13 = vmul.f32 %v1119_v35, %v743_v6 }
 0x127   : > { %v4260_v53 = vsel %vm1846_vm2, %v1950_v62, %v1773_v38  ;;  %v4264_v46 = vmul.f32 %v4247_v63, %v3897_v3  ;;  %v2131_v34 = vsel %vm1864_vm8, %v2004_v43, %v2130_v54  ;;  %v736_v17 = vmul.f32 %v4158_v12, %v531_v39 }
 0x128   : > { %5064 = vst [vmem:[#allocation51_spill] sm:$0xff] %v4260_v53  ;;  %v2189_v38 = vsel %vm1972_vm9, %v2131_v34, 0.0  ;;  %v1481_v58 = vadd.f32 %v1480_v30, %v1479_v44  ;;  %v2135_v5 = vsel %vm1855_vm5, %v3976_v37, %v2134_v41  ;;  %v723_v47 = vmul.f32 %v4158_v12, %v518_v2  ;;  %v525_v37 = vld [vmem:[%s3557_s18 + $0x130] sm:$0x3f] }
 0x129   : > { %2190 = vadd.xlane.f32.xlu1 %v2189_v38  ;;  %v2136_v43 = vsel %vm1858_vm6, %v4045_v36, %v2135_v5  ;;  %v1626_v60 = vsel %vm1268_vm1, %v1255_v13, 0.0  ;;  %v1248_v35 = vmul.f32 %v1070_v48, %v736_v17  ;;  %v750_v39 = vmul.f32 %v4158_v12, %v545_v4  ;;  %v1028_v13 = vpop.permute.xlu0 %1027  ;;  %v546_v4 = vld [vmem:[%s3557_s18 + $0x1d8] sm:$0x3f] }
 0x12a   : > { %v1482_v62 = vrot.slane %v1481_v58, 2  ;;  %v2137_v11 = vsel %vm1861_vm7, %v2011_v57, %v2136_v43  ;;  %v1627_v44 = vrot.slane %v1626_v60, 4  ;;  %v1235_v15 = vmul.f32 %v979_v21, %v723_v47 }
 0x12b   : > { %v2138_v6 = vsel %vm1864_vm8, %v2012_v1, %v2137_v11  ;;  %v1577_v2 = vsel %vm1268_vm1, %v1248_v35, 0.0  ;;  %v1262_v54 = vmul.f32 %v1168_v50, %v750_v39  ;;  %v737_v30 = vmul.f32 %v4158_v12, %v532_v51 }
 0x12c   : > { %v1483_v36 = vadd.f32 %v1482_v62, %v1481_v58  ;;  %v2192_v34 = vsel %vm1972_vm9, %v2138_v6, 0.0  ;;  %v1628_v48 = vadd.f32 %v1627_v44, %v1626_v60  ;;  %v1578_v41 = vrot.slane %v1577_v2, 4  ;;  %v1175_v58 = vpop.permute.xlu1 %1174 }
 0x12d   : > { %2193 = vadd.xlane.f32.xlu0 %v2192_v34  ;;  %v1486_v57 = vsel %vm1268_vm1, %v1235_v15, 0.0  ;;  %v1675_v21 = vsel %vm1268_vm1, %v1262_v54, 0.0  ;;  %v1249_v17 = vmul.f32 %v1077_v59, %v737_v30  ;;  %v730_v1 = vmul.f32 %v4158_v12, %v525_v37  ;;  %v539_v15 = vld [vmem:[%s3557_s18 + $0x1a0] sm:$0x3f]  ;;  %v1126_v53 = vpop.permute.xlu0 %1125 }
 0x12e   : > { %v1484_v38 = vrot.slane %v1483_v36, 1  ;;  %v1629_v50 = vrot.slane %v1628_v48, 2  ;;  %v1579_v5 = vadd.f32 %v1578_v41, %v1577_v2  ;;  %v1487_v47 = vrot.slane %v1486_v57, 4 }
 0x12f   : > { %v1676_v51 = vrot.slane %v1675_v21, 4  ;;  %v1584_v43 = vsel %vm1268_vm1, %v1249_v17, 0.0  ;;  %v1242_v60 = vmul.f32 %v1028_v13, %v730_v1  ;;  %v751_v35 = vmul.f32 %v4158_v12, %v546_v4 }
 0x130   : > { %v4294_v39 = vadd.f32 %v1484_v38, %v1483_v36  ;;  %v1630_v62 = vadd.f32 %v1629_v50, %v1628_v48  ;;  %v1580_v11 = vrot.slane %v1579_v5, 2  ;;  %v1488_v44 = vadd.f32 %v1487_v47, %v1486_v57 }
 0x131   : > { %v1677_v59 = vadd.f32 %v1676_v51, %v1675_v21  ;;  %v1585_v6 = vrot.slane %v1584_v43, 4  ;;  %v1535_v37 = vsel %vm1268_vm1, %v1242_v60, 0.0  ;;  %v1263_v54 = vmul.f32 %v1175_v58, %v751_v35 }
 0x132   : > { %v1631_v2 = vrot.slane %v1630_v62, 1  ;;  %v1581_v30 = vadd.f32 %v1580_v11, %v1579_v5  ;;  %v1489_v34 = vrot.slane %v1488_v44, 2  ;;  %v1536_v41 = vrot.slane %v1535_v37, 4 }
 0x133   : > { %v1678_v17 = vrot.slane %v1677_v59, 2  ;;  %v1586_v13 = vadd.f32 %v1585_v6, %v1584_v43  ;;  %v1682_v4 = vsel %vm1268_vm1, %v1263_v54, 0.0  ;;  %v744_v36 = vmul.f32 %v4158_v12, %v539_v15  ;;  %v1035_v54 = vpop.permute.xlu0 %1034 }
 0x134   : > { %v1632_v48 = vadd.f32 %v1631_v2, %v1630_v62  ;;  %v1582_v1 = vrot.slane %v1581_v30, 1  ;;  %v4300_v57 = vadd.f32 %v1489_v34, %v1488_v44  ;;  %v1537_v21 = vadd.f32 %v1536_v41, %v1535_v37  ;;  %v1084_v37 = vpop.permute.xlu1 %1083 }
 0x135   : > { %v1679_v38 = vadd.f32 %v1678_v17, %v1677_v59  ;;  %v1587_v50 = vrot.slane %v1586_v13, 2  ;;  %v1683_v47 = vrot.slane %v1682_v4, 4  ;;  %v1256_v58 = vmul.f32 %v1126_v53, %v744_v36  ;;  %v540_v17 = vld [vmem:[%s3557_s18 + $0x1a8] sm:$0x3f] }
 0x136   : > { %v4303_v5 = vmul.f32 %v1632_v48, %v3960_v10  ;;  %v4305_v51 = vmul.f32 %v1632_v48, %v1632_v48  ;;  %v1583_v60 = vadd.f32 %v1582_v1, %v1581_v30  ;;  %v1538_v15 = vrot.slane %v1537_v21, 2 }
 0x137   : > { %v1680_v35 = vrot.slane %v1679_v38, 1  ;;  %v1588_v11 = vadd.f32 %v1587_v50, %v1586_v13  ;;  %v1684_v62 = vadd.f32 %v1683_v47, %v1682_v4  ;;  %v1633_v53 = vsel %vm1268_vm1, %v1256_v58, 0.0  ;;  %v533_v47 = vld [vmem:[%s3557_s18 + $0x170] sm:$0x3f] }
 0x138   : > { %v4310_v6 = vmul.f32 %v1583_v60, %v3925_v42  ;;  %v4312_v59 = vmul.f32 %v1583_v60, %v1583_v60  ;;  %v1539_v34 = vadd.f32 %v1538_v15, %v1537_v21  ;;  %v1634_v13 = vrot.slane %v1633_v53, 4  ;;  %v526_v15 = vld [vmem:[%s3557_s18 + $0x138] sm:$0x3f] }
 0x139   : > { %v1681_v2 = vadd.f32 %v1680_v35, %v1679_v38  ;;  %v1589_v30 = vrot.slane %v1588_v11, 1  ;;  %v1685_v41 = vrot.slane %v1684_v62, 2  ;;  %v5066_v4 = vrot.slane %v4204_v27, 1 }
 0x13a   : > { %5065 = vst [vmem:[#allocation52_spill] sm:$0xff] %v4310_v6  ;;  %v2019_v48 = vmul.f32 %v4176_v9, %v4176_v9  ;;  %v1540_v50 = vrot.slane %v1539_v34, 1  ;;  %v1635_v60 = vadd.f32 %v1634_v13, %v1633_v53  ;;  %v1133_v13 = vpop.permute.xlu0 %1132  ;;  %v731_v43 = vmul.f32 %v4158_v12, %v526_v15 }
 0x13b   : > { %v4319_v36 = vadd.f32 %v5066_v4, %v4204_v27  ;;  %v4324_v1 = vmul.f32 %v1681_v2, %v4021_v23  ;;  %v4326_v38 = vmul.f32 %v1681_v2, %v1681_v2  ;;  %v4328_v21 = vadd.f32 %v1589_v30, %v1588_v11  ;;  %v547_v4 = vld [vmem:[%s3557_s18 + $0x1e0] sm:$0x3f] }
 0x13c   : > { %v1686_v58 = vadd.f32 %v1685_v41, %v1684_v62  ;;  %v2139_v27 = vsel %vm1846_vm2, %v3934_v8, %v3915_v24  ;;  %v4344_v2 = vadd.f32 %v1540_v50, %v1539_v34  ;;  %v1636_v30 = vrot.slane %v1635_v60, 2  ;;  %v1182_v8 = vpop.permute.xlu1 %1181 }
 0x13d   : > { %5067 = vst [vmem:[#allocation53_spill] sm:$0xff] %v4324_v1  ;;  %v2020_v35 = vmul.f32 %v4319_v36, %v4319_v36  ;;  %v4342_v11 = vmul.f32 %v4328_v21, %v3925_v42  ;;  %v2140_v62 = vsel %vm1849_vm3, %v3958_v31, %v2139_v27  ;;  %v738_v24 = vmul.f32 %v4158_v12, %v533_v47 }
 0x13e   : > { %v1687_v53 = vrot.slane %v1686_v58, 1  ;;  %v2141_v41 = vsel %vm1852_vm4, %v4003_v7, %v2140_v62  ;;  %v752_v34 = vmul.f32 %v4158_v12, %v547_v4  ;;  %v745_v50 = vmul.f32 %v4158_v12, %v540_v17  ;;  %v541_v17 = vld [vmem:[%s3557_s18 + $0x1b0] sm:$0x3f] }
 0x13f   : > { %5068 = vst [vmem:[#allocation54_spill] sm:$0xff] %v4342_v11  ;;  %v2142_v44 = vsel %vm1855_vm5, %v4039_v52, %v2141_v41  ;;  %v1637_v27 = vadd.f32 %v1636_v30, %v1635_v60  ;;  %v1250_v7 = vmul.f32 %v1084_v37, %v738_v24  ;;  %v1243_v62 = vmul.f32 %v1035_v54, %v731_v43 }
 0x140   : > { %v1688_v31 = vadd.f32 %v1687_v53, %v1686_v58  ;;  %v2143_v1 = vsel %vm1858_vm6, %v4118_v0, %v2142_v44  ;;  %v1264_v6 = vmul.f32 %v1182_v8, %v752_v34  ;;  %v1257_v11 = vmul.f32 %v1133_v13, %v745_v50 }
 0x141   : > { %v2144_v47 = vsel %vm1861_vm7, %v2019_v48, %v2143_v1  ;;  %v1638_v15 = vrot.slane %v1637_v27, 1  ;;  %v1591_v60 = vsel %vm1268_vm1, %v1250_v7, 0.0  ;;  %v1542_v0 = vsel %vm1268_vm1, %v1243_v62, 0.0  ;;  %v1140_v1 = vpop.permute.xlu1 %1139 }
 0x142   : > { %v4360_v52 = vmul.f32 %v1688_v31, %v4021_v23  ;;  %v4362_v41 = vmul.f32 %v1688_v31, %v1688_v31  ;;  %v2145_v4 = vsel %vm1864_vm8, %v2020_v35, %v2144_v47  ;;  %v1689_v44 = vsel %vm1268_vm1, %v1264_v6, 0.0 }
 0x143   : > { %v2195_v58 = vsel %vm1972_vm9, %v2145_v4, 0.0  ;;  %v1639_v37 = vadd.f32 %v1638_v15, %v1637_v27  ;;  %v1592_v54 = vrot.slane %v1591_v60, 4  ;;  %v1543_v48 = vrot.slane %v1542_v0, 4  ;;  %v534_v4 = vld [vmem:[%s3557_s18 + $0x178] sm:$0x3f] }
 0x144   : > { %2196 = vadd.xlane.f32.xlu0 %v2195_v58  ;;  %v1690_v53 = vrot.slane %v1689_v44, 4  ;;  %v1640_v35 = vsel %vm1268_vm1, %v1257_v11, 0.0  ;;  %v746_v30 = vmul.f32 %v4158_v12, %v541_v17  ;;  %v5069_v24 = vrot.slane %v4300_v57, 1  ;;  %v1091_v17 = vpop.permute.xlu0 %1090 }
 0x145   : > { %v4379_v6 = vmul.f32 %v1639_v37, %v3960_v10  ;;  %v4381_v13 = vmul.f32 %v1639_v37, %v1639_v37  ;;  %v1593_v34 = vadd.f32 %v1592_v54, %v1591_v60  ;;  %v1544_v50 = vadd.f32 %v1543_v48, %v1542_v0 }
 0x146   : > { %v4376_v8 = vadd.f32 %v5069_v24, %v4300_v57  ;;  %v1691_v31 = vadd.f32 %v1690_v53, %v1689_v44  ;;  %v1641_v27 = vrot.slane %v1640_v35, 4  ;;  %v1258_v7 = vmul.f32 %v1140_v1, %v746_v30  ;;  %v1147_v24 = vpop.permute.xlu1 %1146 }
 0x147   : > { %v2026_v11 = vmul.f32 %v4174_v26, %v4174_v26  ;;  %v1594_v62 = vrot.slane %v1593_v34, 2  ;;  %v1545_v15 = vrot.slane %v1544_v50, 2  ;;  %v2027_v57 = vmul.f32 %v4294_v39, %v4294_v39 }
 0x148   : > { %v1692_v58 = vrot.slane %v1691_v31, 2  ;;  %v1642_v37 = vadd.f32 %v1641_v27, %v1640_v35  ;;  %v1647_v60 = vsel %vm1268_vm1, %v1258_v7, 0.0  ;;  %v2028_v0 = vmul.f32 %v4376_v8, %v4376_v8  ;;  %v1189_v47 = vpop.permute.xlu0 %1188 }
 0x149   : > { %v1595_v44 = vadd.f32 %v1594_v62, %v1593_v34  ;;  %v1546_v54 = vadd.f32 %v1545_v15, %v1544_v50  ;;  %v1648_v26 = vrot.slane %v1647_v60, 4  ;;  %v2147_v48 = vsel %vm1849_vm3, %v3994_v19, %v3971_v18 }
 0x14a   : > { %v1693_v1 = vadd.f32 %v1692_v58, %v1691_v31  ;;  %v1643_v53 = vrot.slane %v1642_v37, 2  ;;  %v2148_v30 = vsel %vm1852_vm4, %v4065_v22, %v2147_v48  ;;  %v739_v35 = vmul.f32 %v4158_v12, %v534_v4  ;;  %v542_v31 = vld [vmem:[%s3557_s18 + $0x1b8] sm:$0x3f]  ;;  %v548_v48 = vld [vmem:[%s3557_s18 + $0x1e8] sm:$0x3f] }
 0x14b   : > { %v1596_v27 = vrot.slane %v1595_v44, 1  ;;  %v1547_v7 = vrot.slane %v1546_v54, 1  ;;  %v1649_v43 = vadd.f32 %v1648_v26, %v1647_v60  ;;  %v2149_v34 = vsel %vm1855_vm5, %v4112_v25, %v2148_v30 }
 0x14c   : > { %v1694_v50 = vrot.slane %v1693_v1, 1  ;;  %v1644_v62 = vadd.f32 %v1643_v53, %v1642_v37  ;;  %v2150_v18 = vsel %vm1858_vm6, %v2026_v11, %v2149_v34  ;;  %v1251_v19 = vmul.f32 %v1091_v17, %v739_v35  ;;  %v550_v37 = vld [vmem:[%s3557_s18 + $0x1f8] sm:$0x3f] }
 0x14d   : > { %v4402_v15 = vadd.f32 %v1596_v27, %v1595_v44  ;;  %v4404_v22 = vadd.f32 %v1547_v7, %v1546_v54  ;;  %v1650_v58 = vrot.slane %v1649_v43, 2  ;;  %v2151_v4 = vsel %vm1861_vm7, %v2027_v57, %v2150_v18 }
 0x14e   : > { %v1695_v60 = vadd.f32 %v1694_v50, %v1693_v1  ;;  %v1645_v26 = vrot.slane %v1644_v62, 1  ;;  %v2152_v25 = vsel %vm1864_vm8, %v2028_v0, %v2151_v4  ;;  %v1598_v30 = vsel %vm1268_vm1, %v1251_v19, 0.0  ;;  %v1203_v0 = vpop.permute.xlu1 %1202  ;;  %v549_v50 = vld [vmem:[%s3557_s18 + $0x1f0] sm:$0x3f]  ;;  %s478_s18 = scalar_lea.vmem %s4932_s10, %s3378_s27 }
 0x14f   : > { %v1651_v11 = vadd.f32 %v1650_v58, %v1649_v43  ;;  %v2198_v17 = vsel %vm1972_vm9, %v2152_v25, 0.0  ;;  %v1599_v44 = vrot.slane %v1598_v30, 4  ;;  %v747_v54 = vmul.f32 %v4158_v12, %v542_v31 }
 0x150   : > { %v4414_v53 = vmul.f32 %v1695_v60, %v4021_v23  ;;  %v4416_v57 = vmul.f32 %v1695_v60, %v1695_v60  ;;  %v1646_v35 = vadd.f32 %v1645_v26, %v1644_v62  ;;  %2199 = vadd.xlane.f32.xlu1 %v2198_v17  ;;  %v753_v1 = vmul.f32 %v4158_v12, %v548_v48  ;;  %v1196_v26 = vpop.permute.xlu0 %1195 }
 0x151   : > { %v1652_v27 = vrot.slane %v1651_v11, 1  ;;  %v1600_v7 = vadd.f32 %v1599_v44, %v1598_v30  ;;  %v1259_v34 = vmul.f32 %v1147_v24, %v747_v54  ;;  %v755_v43 = vmul.f32 %v4158_v12, %v550_v37 }
 0x152   : > { %v1956_v18 = vrot.slane %v4414_v53, 4  ;;  %v4423_v19 = vmul.f32 %v1646_v35, %v3960_v10  ;;  %v4425_v31 = vmul.f32 %v1646_v35, %v1646_v35  ;;  %v1265_v58 = vmul.f32 %v1189_v47, %v753_v1 }
 0x153   : > { %v4427_v4 = vadd.f32 %v1652_v27, %v1651_v11  ;;  %v1601_v62 = vrot.slane %v1600_v7, 2  ;;  %v1654_v48 = vsel %vm1268_vm1, %v1259_v34, 0.0  ;;  %v1267_v60 = vmul.f32 %v1203_v0, %v755_v43 }
 0x154   : > { %v1944_v24 = vrot.slane %v4423_v19, 3  ;;  %v1655_v25 = vrot.slane %v1654_v48, 4  ;;  %v1696_v30 = vsel %vm1268_vm1, %v1265_v58, 0.0  ;;  %v754_v37 = vmul.f32 %v4158_v12, %v549_v50  ;;  %v5070_v12 = vld [vmem:[#allocation47_spill] sm:$0xff] }
 0x155   : > { %v1602_v17 = vadd.f32 %v1601_v62, %v1600_v7  ;;  %v1697_v44 = vrot.slane %v1696_v30, 4  ;;  %v1710_v54 = vsel %vm1268_vm1, %v1267_v60, 0.0  ;;  %v2034_v47 = vmul.f32 %v4247_v63, %v4247_v63 }
 0x156   : > { %v1656_v11 = vadd.f32 %v1655_v25, %v1654_v48  ;;  %v1711_v35 = vrot.slane %v1710_v54, 4  ;;  %v1266_v1 = vmul.f32 %v1196_v26, %v754_v37  ;;  %v2035_v0 = vmul.f32 %v4344_v2, %v4344_v2 }
 0x157   : > { %v1603_v27 = vrot.slane %v1602_v17, 1  ;;  %v1698_v34 = vadd.f32 %v1697_v44, %v1696_v30  ;;  %v2036_v43 = vmul.f32 %v4404_v22, %v4404_v22  ;;  %v2154_v7 = vsel %vm1849_vm3, %v5070_v12, %v4016_v55 }
 0x158   : > { %v1657_v50 = vrot.slane %v1656_v11, 2  ;;  %v1712_v58 = vadd.f32 %v1711_v35, %v1710_v54  ;;  %v1703_v62 = vsel %vm1268_vm1, %v1266_v1, 0.0  ;;  %v2155_v63 = vsel %vm1852_vm4, %v4139_v56, %v2154_v7 }
 0x159   : > { %v4446_v48 = vadd.f32 %v1603_v27, %v1602_v17  ;;  %v1699_v60 = vrot.slane %v1698_v34, 2  ;;  %v1704_v26 = vrot.slane %v1703_v62, 4  ;;  %v2156_v25 = vsel %vm1855_vm5, %v4210_v61, %v2155_v63 }
 0x15a   : > { %v1658_v30 = vadd.f32 %v1657_v50, %v1656_v11  ;;  %v1713_v37 = vrot.slane %v1712_v58, 2  ;;  %v2157_v44 = vsel %vm1858_vm6, %v2034_v47, %v2156_v25  ;;  %v2042_v55 = vmul.f32 %v4328_v21, %v4328_v21  ;;  %v5071_v50 = vld [vmem:[#allocation16_spill] sm:$0xff] }
 0x15b   : > { %v1700_v54 = vadd.f32 %v1699_v60, %v1698_v34  ;;  %v1705_v35 = vadd.f32 %v1704_v26, %v1703_v62  ;;  %v2158_v1 = vsel %vm1861_vm7, %v2035_v0, %v2157_v44  ;;  %v2043_v56 = vmul.f32 %v4402_v15, %v4402_v15 }
 0x15c   : > { %v1659_v17 = vrot.slane %v1658_v30, 1  ;;  %v1714_v27 = vadd.f32 %v1713_v37, %v1712_v58  ;;  %v2159_v12 = vsel %vm1864_vm8, %v2036_v43, %v2158_v1  ;;  %v2044_v61 = vmul.f32 %v4446_v48, %v4446_v48 }
 0x15d   : > { %v1701_v11 = vrot.slane %v1700_v54, 1  ;;  %v1706_v7 = vrot.slane %v1705_v35, 2  ;;  %v2201_v47 = vsel %vm1972_vm9, %v2159_v12, 0.0  ;;  %v2161_v21 = vsel %vm1849_vm3, %v4134_v45, %v5071_v50 }
 0x15e   : > { %v4463_v34 = vadd.f32 %v1659_v17, %v1658_v30  ;;  %v1715_v0 = vrot.slane %v1714_v27, 1  ;;  %2202 = vadd.xlane.f32.xlu0 %v2201_v47  ;;  %v2162_v58 = vsel %vm1852_vm4, %v4202_v33, %v2161_v21  ;;  %v2051_v43 = vmul.f32 %v4427_v4, %v4427_v4  ;;  %v5074_v17 = vld [vmem:[#allocation21_spill] sm:$0xff]  ;;  %v5078_v21 = vld [vmem:[#allocation44_spill] sm:$0xff] }
 0x15f   : > { %v1702_v62 = vadd.f32 %v1701_v11, %v1700_v54  ;;  %v1707_v63 = vadd.f32 %v1706_v7, %v1705_v35  ;;  %v2163_v60 = vsel %vm1855_vm5, %v4312_v59, %v2162_v58  ;;  %v2168_v26 = vsel %vm1849_vm3, %v4222_v40, %v4152_v14  ;;  %v5072_v40 = vld [vmem:[#allocation24_spill] sm:$0xff] }
 0x160   : > { %v4474_v45 = vadd.f32 %v1715_v0, %v1714_v27  ;;  %v2164_v25 = vsel %vm1858_vm6, %v2042_v55, %v2163_v60  ;;  %v2052_v30 = vmul.f32 %v4463_v34, %v4463_v34  ;;  %v2169_v33 = vsel %vm1852_vm4, %v4305_v51, %v2168_v26  ;;  %v5073_v55 = vld [vmem:[#allocation48_spill] sm:$0xff] }
 0x161   : > { %v4482_v37 = vmul.f32 %v1702_v62, %v4021_v23  ;;  %v2058_v44 = vmul.f32 %v1702_v62, %v1702_v62  ;;  %v1708_v54 = vrot.slane %v1707_v63, 1  ;;  %v2165_v59 = vsel %vm1861_vm7, %v2043_v56, %v2164_v25  ;;  %v5075_v7 = vld [vmem:[#allocation28_spill] sm:$0xff] }
 0x162   : > { %v2166_v35 = vsel %vm1864_vm8, %v2044_v61, %v2165_v59  ;;  %v2170_v14 = vsel %vm1855_vm5, %v4381_v13, %v2169_v33  ;;  %v1723_v1 = vmul.f32 %v5073_v55, %v5072_v40  ;;  %v1724_v27 = vmul.f32 %v5074_v17, %v5072_v40  ;;  %v5076_v13 = vld [vmem:[#allocation27_spill] sm:$0xff]  ;;  %v5081_v33 = vld [vmem:[#allocation36_spill] sm:$0xff] }
 0x163   : > { %v1958_v51 = vrot.slane %v4482_v37, 3  ;;  %v4493_v12 = vadd.f32 %v1708_v54, %v1707_v63  ;;  %v2204_v11 = vsel %vm1972_vm9, %v2166_v35, 0.0  ;;  %v2171_v56 = vsel %vm1858_vm6, %v4425_v31, %v2170_v14  ;;  %v5079_v63 = vld [vmem:[#allocation31_spill] sm:$0xff]  ;;  %v5083_v14 = vld [vmem:[#allocation40_spill] sm:$0xff]  ;;  %v5140_v37 = vld [vmem:[#allocation9_spill] sm:$0xff] }
 0x164   : > { %2205 = vadd.xlane.f32.xlu1 %v2204_v11  ;;  %v2172_v61 = vsel %vm1861_vm7, %v2051_v43, %v2171_v56  ;;  %v5077_v47 = vrot.slane %v5076_v13, 7  ;;  %v1857_v0 = vrot.slane %v5078_v21, 3  ;;  %v1860_v58 = vrot.slane %v1723_v1, 2  ;;  %v5085_v17 = vld [vmem:[#allocation23_spill] sm:$0xff]  ;;  %v5090_v21 = vld [vmem:[#allocation37_spill] sm:$0xff] }
 0x165   : > { %v2173_v62 = vsel %vm1864_vm8, %v2052_v30, %v2172_v61  ;;  %v5080_v60 = vrot.slane %v5079_v63, 6  ;;  %v1863_v25 = vrot.slane %v1724_v27, 1  ;;  %v2059_v31 = vmul.f32 %v4493_v12, %v4493_v12 }
 0x166   : > { %v1847_v50 = vsel %vm1846_vm2, %v5077_v47, %v5075_v7  ;;  %v2207_v43 = vsel %vm1972_vm9, %v2173_v62, 0.0  ;;  %v5082_v54 = vrot.slane %v5081_v33, 5  ;;  %v2060_v35 = vmul.f32 %v4474_v45, %v4474_v45  ;;  %v5089_v47 = vld [vmem:[#allocation26_spill] sm:$0xff] }
 0x167   : > { %v1850_v26 = vsel %vm1849_vm3, %v5080_v60, %v1847_v50  ;;  %v2175_v30 = vsel %vm1849_vm3, %v4326_v38, %v4245_v49  ;;  %2208 = vadd.xlane.f32.xlu0 %v2207_v43  ;;  %v5084_v40 = vrot.slane %v5083_v14, 4  ;;  %v1739_v27 = vmul.f32 %v4176_v9, %v5085_v17  ;;  %v5086_v49 = vld [vmem:[#allocation32_spill] sm:$0xff]  ;;  %v5087_v38 = vld [vmem:[#allocation34_spill] sm:$0xff] }
 0x168   : > { %v1853_v59 = vsel %vm1852_vm4, %v5082_v54, %v1850_v26  ;;  %v2176_v1 = vsel %vm1852_vm4, %v4362_v41, %v2175_v30  ;;  %v1740_v11 = vmul.f32 %v4319_v36, %v5085_v17  ;;  %v5088_v7 = vrot.slane %v5087_v38, 7  ;;  %v5092_v60 = vld [vmem:[#allocation42_spill] sm:$0xff] }
 0x169   : > { %v1856_v55 = vsel %vm1855_vm5, %v5084_v40, %v1853_v59  ;;  %v2177_v61 = vsel %vm1855_vm5, %v4416_v57, %v2176_v1  ;;  %v1731_v50 = vmul.f32 %v4070_v32, %v5089_v47  ;;  %v5091_v62 = vrot.slane %v5090_v21, 6  ;;  %v5094_v54 = vld [vmem:[#allocation14_spill] sm:$0xff]  ;;  %v5099_v1 = vld [vmem:[#allocation29_spill] sm:$0xff] }
 0x16a   : > { %v1859_v56 = vsel %vm1858_vm6, %v1857_v0, %v1856_v55  ;;  %v1881_v13 = vsel %vm1846_vm2, %v5088_v7, %v5086_v49  ;;  %v2178_v9 = vsel %vm1858_vm6, %v2058_v44, %v2177_v61  ;;  %v1890_v0 = vrot.slane %v1739_v27, 2  ;;  %v5098_v55 = vld [vmem:[#allocation30_spill] sm:$0xff] }
 0x16b   : > { %v1862_v41 = vsel %vm1861_vm7, %v1860_v58, %v1859_v56  ;;  %v1883_v36 = vsel %vm1849_vm3, %v5091_v62, %v1881_v13  ;;  %v2179_v57 = vsel %vm1861_vm7, %v2059_v31, %v2178_v9  ;;  %v5093_v26 = vrot.slane %v5092_v60, 5  ;;  %v5096_v31 = vld [vmem:[#allocation18_spill] sm:$0xff]  ;;  %v5101_v56 = vld [vmem:[#allocation33_spill] sm:$0xff]  ;;  %v5103_v13 = vld [vmem:[#allocation35_spill] sm:$0xff] }
 0x16c   : > { %v1865_v63 = vsel %vm1864_vm8, %v1863_v25, %v1862_v41  ;;  %v1892_v33 = vrot.slane %v1740_v11, 1  ;;  %v2180_v58 = vsel %vm1864_vm8, %v2060_v35, %v2179_v57  ;;  %v5095_v44 = vrot.slane %v5094_v54, 4  ;;  %v5105_v9 = vld [vmem:[#allocation43_spill] sm:$0xff]  ;;  %v5106_v21 = vld [vmem:[#allocation46_spill] sm:$0xff]  ;;  %v5110_v60 = vld [vmem:[#allocation20_spill] sm:$0xff] }
 0x16d   : > { %v1885_v43 = vsel %vm1852_vm4, %v5093_v26, %v1883_v36  ;;  %v1973_v32 = vsel %vm1972_vm9, %v1865_v63, 0.0  ;;  %v1732_v30 = vmul.f32 %v4230_v20, %v5089_v47  ;;  %v2210_v25 = vsel %vm1972_vm9, %v2180_v58, 0.0  ;;  %v5108_v63 = vld [vmem:[#allocation38_spill] sm:$0xff] }
 0x16e   : > { %v1887_v59 = vsel %vm1855_vm5, %v5095_v44, %v1885_v43  ;;  %1974 = vadd.xlane.f32.xlu0 %v1973_v32  ;;  %v5097_v14 = vrot.slane %v5096_v31, 3  ;;  %v5100_v17 = vrot.slane %v5099_v1, 7  ;;  %v1876_v35 = vrot.slane %v1731_v50, 2  ;;  %2211 = vadd.xlane.f32.xlu1 %v2210_v25  ;;  %v5112_v32 = vld [vmem:[#allocation45_spill] sm:$0xff]  ;;  %v5116_v1 = vld [vmem:[#allocation39_spill] sm:$0xff] }
 0x16f   : > { %v5102_v61 = vrot.slane %v5101_v56, 6  ;;  %v1878_v49 = vrot.slane %v1732_v30, 1  ;;  %v1755_v38 = vmul.f32 %v4344_v2, %v3897_v3  ;;  %v5104_v47 = vrot.slane %v5103_v13, 5  ;;  %v5115_v31 = vld [vmem:[#allocation25_spill] sm:$0xff] }
 0x170   : > { %v1889_v40 = vsel %vm1858_vm6, %v5097_v14, %v1887_v59  ;;  %v1867_v27 = vsel %vm1846_vm2, %v5100_v17, %v5098_v55  ;;  %v1756_v50 = vmul.f32 %v4404_v22, %v3897_v3  ;;  %v5107_v62 = vrot.slane %v5106_v21, 6 }
 0x171   : > { %v1891_v11 = vsel %vm1861_vm7, %v1890_v0, %v1889_v40  ;;  %v1869_v20 = vsel %vm1849_vm3, %v5102_v61, %v1867_v27  ;;  %v5109_v57 = vrot.slane %v5108_v63, 4  ;;  %v5111_v26 = vrot.slane %v5110_v60, 5 }
 0x172   : > { %v1893_v7 = vsel %vm1864_vm8, %v1892_v33, %v1891_v11  ;;  %v1871_v41 = vsel %vm1852_vm4, %v5104_v47, %v1869_v20  ;;  %v1911_v36 = vsel %vm1849_vm3, %v5107_v62, %v5105_v9  ;;  %v1916_v33 = vrot.slane %v4264_v46, 3  ;;  %v5119_v11 = vld [vmem:[#allocation50_spill] sm:$0xff]  ;;  %v5120_v20 = vld [vmem:[#allocation15_spill] sm:$0xff] }
 0x173   : > { %v1979_v0 = vsel %vm1972_vm9, %v1893_v7, 0.0  ;;  %v1873_v2 = vsel %vm1855_vm5, %v5109_v57, %v1871_v41  ;;  %v1913_v43 = vsel %vm1852_vm4, %v5111_v26, %v1911_v36  ;;  %v5113_v3 = vrot.slane %v5112_v32, 3  ;;  %v5122_v7 = vld [vmem:[#allocation17_spill] sm:$0xff]  ;;  %v5124_v62 = vld [vmem:[#allocation22_spill] sm:$0xff]  ;;  %v5129_v32 = vld [vmem:[#allocation19_spill] sm:$0xff] }
 0x174   : > { %1980 = vadd.xlane.f32.xlu0 %v1979_v0  ;;  %v5114_v58 = vrot.slane %v4208_v16, 4  ;;  %v1918_v44 = vrot.slane %v1755_v38, 2  ;;  %v1920_v59 = vrot.slane %v1756_v50, 1  ;;  %v1747_v14 = vmul.f32 %v4294_v39, %v5115_v31  ;;  %v5117_v16 = vld [vmem:[#allocation41_spill] sm:$0xff] }
 0x175   : > { %v1875_v22 = vsel %vm1858_vm6, %v5113_v3, %v1873_v2  ;;  %v1748_v46 = vmul.f32 %v4376_v8, %v5115_v31  ;;  %v5118_v17 = vrot.slane %v5117_v16, 6  ;;  %v1902_v56 = vrot.slane %v5119_v11, 3 }
 0x176   : > { %v1915_v54 = vsel %vm1855_vm5, %v5114_v58, %v1913_v43  ;;  %v1877_v30 = vsel %vm1861_vm7, %v1876_v35, %v1875_v22  ;;  %v5121_v39 = vrot.slane %v5120_v20, 5  ;;  %v1904_v8 = vrot.slane %v1747_v14, 2  ;;  %v5132_v58 = vld [vmem:[#allocation54_spill] sm:$0xff] }
 0x177   : > { %v1917_v25 = vsel %vm1858_vm6, %v1916_v33, %v1915_v54  ;;  %v1879_v40 = vsel %vm1864_vm8, %v1878_v49, %v1877_v30  ;;  %v1897_v27 = vsel %vm1849_vm3, %v5118_v17, %v5116_v1  ;;  %v5123_v13 = vrot.slane %v5122_v7, 4  ;;  %v5128_v33 = vld [vmem:[#allocation49_spill] sm:$0xff] }
 0x178   : > { %v1919_v55 = vsel %vm1861_vm7, %v1918_v44, %v1917_v25  ;;  %v1976_v35 = vsel %vm1972_vm9, %v1879_v40, 0.0  ;;  %v1899_v38 = vsel %vm1852_vm4, %v5121_v39, %v1897_v27  ;;  %v1906_v41 = vrot.slane %v1748_v46, 1  ;;  %v5133_v44 = vld [vmem:[#allocation52_spill] sm:$0xff]  ;;  %v5136_v1 = vld [vmem:[#allocation53_spill] sm:$0xff] }
 0x179   : > { %v1921_v61 = vsel %vm1864_vm8, %v1920_v59, %v1919_v55  ;;  %1977 = vadd.xlane.f32.xlu1 %v1976_v35  ;;  %v1901_v47 = vsel %vm1855_vm5, %v5123_v13, %v1899_v38  ;;  %v1771_v50 = vmul.f32 %v4427_v4, %v3960_v10  ;;  %v1772_v21 = vmul.f32 %v4463_v34, %v3960_v10  ;;  %v5135_v55 = vld [vmem:[#allocation51_spill] sm:$0xff]  ;;  %v5141_v13 = vld [vmem:[#allocation8_spill] sm:$0xff] }
 0x17a   : > { %v1985_v49 = vsel %vm1972_vm9, %v1921_v61, 0.0  ;;  %v1903_v9 = vsel %vm1858_vm6, %v1902_v56, %v1901_v47  ;;  %v5125_v36 = vrot.slane %v4220_v28, 6  ;;  %v1763_v63 = vmul.f32 %v4402_v15, %v3925_v42  ;;  %v560_v38 = vld [vmem:[%s466_s29] sm:$0xff]  ;;  %s474_s29 = scalar_lea.vmem %s4931_s9, %s3378_s27 }
 0x17b   : > { %1986 = vadd.xlane.f32.xlu0 %v1985_v49  ;;  %v1905_v57 = vsel %vm1861_vm7, %v1904_v8, %v1903_v9  ;;  %v5126_v2 = vrot.slane %v4303_v5, 5  ;;  %v1946_v60 = vrot.slane %v1771_v50, 2  ;;  %v1764_v26 = vmul.f32 %v4446_v48, %v3925_v42  ;;  %v5139_v8 = vld [vmem:[#allocation7_spill] sm:$0xff] }
 0x17c   : > { %v1939_v0 = vsel %vm1849_vm3, %v5125_v36, %v5124_v62  ;;  %v1907_v10 = vsel %vm1864_vm8, %v1906_v41, %v1905_v57  ;;  %v5127_v34 = vrot.slane %v4379_v6, 4  ;;  %v1948_v43 = vrot.slane %v1772_v21, 1  ;;  %v5142_v41 = vld [vmem:[#allocation6_spill] sm:$0xff]  ;;  %v5143_v9 = vld [vmem:[#allocation11_spill] sm:$0xff]  ;;  %v5146_v57 = vld [vmem:[#allocation12_spill] sm:$0xff] }
 0x17d   : > { %v1941_v4 = vsel %vm1852_vm4, %v5126_v2, %v1939_v0  ;;  %v5130_v15 = vrot.slane %v5129_v32, 6  ;;  %v1982_v5 = vsel %vm1972_vm9, %v1907_v10, 0.0  ;;  %v5131_v42 = vrot.slane %v4200_v29, 5  ;;  %v5144_v62 = vld [vmem:[#allocation10_spill] sm:$0xff]  ;;  %v5145_v0 = vld [vmem:[#allocation13_spill] sm:$0xff] }
 0x17e   : > { %v1943_v28 = vsel %vm1855_vm5, %v5127_v34, %v1941_v4  ;;  %v1930_v6 = vrot.slane %v5132_v58, 3  ;;  %1983 = vadd.xlane.f32.xlu1 %v1982_v5  ;;  %v5134_v59 = vrot.slane %v5133_v44, 4  ;;  %v1932_v25 = vrot.slane %v1763_v63, 2 }
 0x17f   : > { %v1925_v3 = vsel %vm1849_vm3, %v5130_v15, %v5128_v33  ;;  %v1945_v22 = vsel %vm1858_vm6, %v1944_v24, %v1943_v28  ;;  %v1934_v31 = vrot.slane %v1764_v26, 1  ;;  %v1779_v29 = vmul.f32 %v4493_v12, %v4021_v23 }
 0x180   : > { %v1927_v48 = vsel %vm1852_vm4, %v5131_v42, %v1925_v3  ;;  %v1947_v54 = vsel %vm1861_vm7, %v1946_v60, %v1945_v22  ;;  %v1780_v24 = vmul.f32 %v4474_v45, %v4021_v23  ;;  %v5137_v16 = vrot.slane %v5136_v1, 6 }
 0x181   : > { %v1929_v30 = vsel %vm1855_vm5, %v5134_v59, %v1927_v48  ;;  %v1949_v14 = vsel %vm1864_vm8, %v1948_v43, %v1947_v54  ;;  %v5138_v11 = vrot.slane %v4360_v52, 5  ;;  %v1960_v56 = vrot.slane %v1779_v29, 2 }
 0x182   : > { %v1931_v19 = vsel %vm1858_vm6, %v1930_v6, %v1929_v30  ;;  %v1991_v46 = vsel %vm1972_vm9, %v1949_v14, 0.0  ;;  %v1953_v17 = vsel %vm1849_vm3, %v5137_v16, %v5135_v55  ;;  %v1962_v35 = vrot.slane %v1780_v24, 1 }
 0x183   : > { %v1933_v40 = vsel %vm1861_vm7, %v1932_v25, %v1931_v19  ;;  %1992 = vadd.xlane.f32.xlu0 %v1991_v46  ;;  %v1955_v12 = vsel %vm1852_vm4, %v5138_v11, %v1953_v17  ;;  %vm2323_vm10 = vcmp.gt.f32.partialorder %v560_v38, 0.0  ;;  %v3264_v53 = vmov -1e+30  }
 0x184   : > { %v1935_v27 = vsel %vm1864_vm8, %v1934_v31, %v1933_v40  ;;  %v1957_v45 = vsel %vm1855_vm5, %v1956_v18, %v1955_v12  ;;  %v2324_v18 = vsel %vm2323_vm10, 0.0, %v3264_v53 }
 0x185   : > { %v1988_v23 = vsel %vm1972_vm9, %v1935_v27, 0.0  ;;  %v1959_v61 = vsel %vm1858_vm6, %v1958_v51, %v1957_v45  ;;  %v2329_v49 = vrot.slane %v2324_v18, %v5139_v8  ;;  %v2336_v7 = vrot.slane %v2324_v18, %v5140_v37 }
 0x186   : > { %1989 = vadd.xlane.f32.xlu1 %v1988_v23  ;;  %v1961_v20 = vsel %vm1861_vm7, %v1960_v56, %v1959_v61  ;;  %v3265_v51 = vmov 0   ;;  %v2350_v47 = vrot.slane %v2324_v18, %v5141_v13  ;;  %v2343_v50 = vrot.slane %v2324_v18, %v5142_v41 }
 0x187   : > { %v1963_v39 = vsel %vm1864_vm8, %v1962_v35, %v1961_v20  ;;  %3161 = vset.pattern.permute.xlu1 %v3265_v51  ;;  %3162 = vset.pattern.permute.xlu0 %v3265_v51  ;;  %v2364_v21 = vrot.slane %v2324_v18, %v5143_v9  ;;  %v2357_v36 = vrot.slane %v2324_v18, %v5144_v62 }
 0x188   : > { %v1994_v52 = vsel %vm1972_vm9, %v1963_v39, 0.0  ;;  %v2378_v63 = vrot.slane %v2324_v18, %v5145_v0  ;;  %v2371_v2 = vrot.slane %v2324_v18, %v5146_v57 }
 0x18a   : > { %1995 = vadd.xlane.f32.xlu1 %v1994_v52 }
 0x18d   : > { %v2239_v4 = vpop.xlane.xlu0 %2238 }
 0x18e   : > { %v2256_v28 = vmax.f32 %v2239_v4, 1e-38 }
 0x190   : > { %3163 = vrsqrt.f32 %v2256_v28 }
 0x199   : > { %2331 = vbcast.lane.b32.xlu0 %v2329_v49, 256 }
 0x19a   : > { %v3164_v58 = vpop.eup %3163 }
 0x19b   : > { %2338 = vbcast.lane.b32.xlu1 %v2336_v7, 256  ;;  %v2262_v25 = vrot.slane %v3164_v58, %v5139_v8  ;;  %v2266_v1 = vrot.slane %v3164_v58, %v5140_v37  ;;  %v2270_v56 = vrot.slane %v3164_v58, %v5142_v41  ;;  %v2278_v38 = vrot.slane %v3164_v58, %v5144_v62 }
 0x19c   : > { %v2274_v53 = vrot.slane %v3164_v58, %v5141_v13  ;;  %v2286_v49 = vrot.slane %v3164_v58, %v5146_v57 }
 0x19d   : > { %2352 = vbcast.lane.b32.xlu0 %v2350_v47, 256 }
 0x19f   : > { %2345 = vbcast.lane.b32.xlu1 %v2343_v50, 256 }
 0x1a1   : > { %2366 = vbcast.lane.b32.xlu0 %v2364_v21, 256 }
 0x1a3   : > { %2359 = vbcast.lane.b32.xlu1 %v2357_v36, 256 }
 0x1a5   : > { %2380 = vbcast.lane.b32.xlu0 %v2378_v63, 256 }
 0x1a7   : > { %2373 = vbcast.lane.b32.xlu1 %v2371_v2, 256 }
 0x1b6   : > { %v2191_v10 = vpop.xlane.xlu1 %2190 }
 0x1b7   : > { %v2240_v32 = vmax.f32 %v2191_v10, 1e-38  ;;  %v2290_v10 = vrot.slane %v3164_v58, %v5145_v0 }
 0x1b9   : > { %3165 = vrsqrt.f32 %v2240_v32 }
 0x1ba   : > { %v2194_v60 = vpop.xlane.xlu0 %2193 }
 0x1bb   : > { %v2241_v5 = vmax.f32 %v2194_v60, 1e-38  ;;  %v2282_v60 = vrot.slane %v3164_v58, %v5143_v9 }
 0x1bd   : > { %3167 = vrsqrt.f32 %v2241_v5 }
 0x1c3   : > { %v3166_v44 = vpop.eup %3165 }
 0x1c4   : > { %v2299_v14 = vmul.f32 %v3166_v44, %v2262_v25 }
 0x1c6   : > { %v2307_v55 = vmin.f32 %v2299_v14, 1e+08 }
 0x1c7   : > { %v3168_v24 = vpop.eup %3167 }
 0x1c8   : > { %v2300_v27 = vmul.f32 %v3168_v24, %v2266_v1 }
 0x1ca   : > { %v2308_v20 = vmin.f32 %v2300_v27, 1e+08 }
 0x1d1   : > { %v2197_v26 = vpop.xlane.xlu0 %2196 }
 0x1d2   : > { %v2242_v48 = vmax.f32 %v2197_v26, 1e-38 }
 0x1d4   : > { %3169 = vrsqrt.f32 %v2242_v48 }
 0x1dd   : > { %v2200_v43 = vpop.xlane.xlu1 %2199 }
 0x1de   : > { %v2243_v54 = vmax.f32 %v2200_v43, 1e-38  ;;  %v3170_v11 = vpop.eup %3169 }
 0x1df   : > { %v2301_v61 = vmul.f32 %v3170_v11, %v2270_v56 }
 0x1e0   : > { %3171 = vrsqrt.f32 %v2243_v54 }
 0x1e1   : > { %v2309_v51 = vmin.f32 %v2301_v61, 1e+08 }
 0x1ea   : > { %v3172_v45 = vpop.eup %3171 }
 0x1eb   : > { %v2203_v34 = vpop.xlane.xlu0 %2202  ;;  %v2302_v50 = vmul.f32 %v3172_v45, %v2274_v53 }
 0x1ec   : > { %v2244_v59 = vmax.f32 %v2203_v34, 1e-38 }
 0x1ed   : > { %v2310_v43 = vmin.f32 %v2302_v50, 1e+08 }
 0x1ee   : > { %3173 = vrsqrt.f32 %v2244_v59 }
 0x1f1   : > { %v2206_v15 = vpop.xlane.xlu1 %2205 }
 0x1f2   : > { %v2245_v29 = vmax.f32 %v2206_v15, 1e-38 }
 0x1f4   : > { %v2209_v33 = vpop.xlane.xlu0 %2208 }
 0x1f5   : > { %v2246_v31 = vmax.f32 %v2209_v33, 1e-38 }
 0x1f7   : > { %3175 = vrsqrt.f32 %v2246_v31 }
 0x1f8   : > { %3177 = vrsqrt.f32 %v2245_v29  ;;  %v3174_v39 = vpop.eup %3173 }
 0x1f9   : > { %v2303_v47 = vmul.f32 %v3174_v39, %v2278_v38 }
 0x1fb   : > { %v1975_v3 = vpop.xlane.xlu0 %1974  ;;  %v2212_v22 = vpop.xlane.xlu1 %2211  ;;  %v2311_v28 = vmin.f32 %v2303_v47, 1e+08 }
 0x1fc   : > { %v2247_v46 = vmax.f32 %v2212_v22, 1e-38  ;;  %v2315_v17 = vmul.f32 %v2307_v55, %v1975_v3 }
 0x1fe   : > { %3179 = vrsqrt.f32 %v2247_v46  ;;  %v5147_v46 = vlaneseq }
 0x201   : > { %v1981_v42 = vpop.xlane.xlu0 %1980  ;;  %v3176_v18 = vpop.eup %3175 }
 0x202   : > { %v3178_v36 = vpop.eup %3177  ;;  %v2317_v2 = vmul.f32 %v2309_v51, %v1981_v42  ;;  %v2305_v4 = vmul.f32 %v3176_v18, %v2286_v49 }
 0x203   : > { %v2304_v33 = vmul.f32 %v3178_v36, %v2282_v60 }
 0x204   : > { %v2313_v5 = vmin.f32 %v2305_v4, 1e+08 }
 0x206   : > { %v1978_v6 = vpop.xlane.xlu1 %1977 }
 0x207   : > { %v2316_v52 = vmul.f32 %v2308_v20, %v1978_v6  ;;  %v2312_v6 = vmin.f32 %v2304_v33, 1e+08 }
 0x208   : > { %v1987_v30 = vpop.xlane.xlu0 %1986  ;;  %v3180_v26 = vpop.eup %3179 }
 0x209   : > { %v2319_v15 = vmul.f32 %v2311_v28, %v1987_v30  ;;  %v2306_v22 = vmul.f32 %v3180_v26, %v2290_v10 }
 0x20b   : > { %v1984_v19 = vpop.xlane.xlu1 %1983  ;;  %v2314_v25 = vmin.f32 %v2306_v22, 1e+08 }
 0x20c   : > { %v2318_v3 = vmul.f32 %v2310_v43, %v1984_v19 }
 0x210   : > { %v1993_v40 = vpop.xlane.xlu0 %1992 }
 0x211   : > { %v2321_v58 = vmul.f32 %v2313_v5, %v1993_v40  ;;  %v4722_v40 = vand.u32 127, %v5147_v46 }
 0x213   : > { %v1990_v16 = vpop.xlane.xlu1 %1989 }
 0x214   : > { %v2332_v12 = vpop.permute.xlu0 %2331  ;;  %v2320_v59 = vmul.f32 %v2312_v6, %v1990_v16  ;;  %v5148_v16 = vld [vmem:[#allocation5_spill] sm:$0xff] }
 0x215   : > { %v4692_v35 = vadd.f32 %v2332_v12, %v2315_v17  ;;  %v4726_v17 = vsub.s32 %v4722_v40, %v5148_v16 }
 0x217   : > { %v1996_v23 = vpop.xlane.xlu1 %1995  ;;  %2407 = vperm.xlu1 %3161, %v4692_v35  }
 0x218   : > { %v2353_v63 = vpop.permute.xlu0 %2352  ;;  %v2322_v29 = vmul.f32 %v2314_v25, %v1996_v23 }
 0x219   : > { %v4706_v54 = vadd.f32 %v2353_v63, %v2318_v3 }
 0x21b   : > { %v2339_v7 = vpop.permute.xlu1 %2338 }
 0x21c   : > { %v4698_v21 = vadd.f32 %v2339_v7, %v2316_v52  ;;  %v2367_v42 = vpop.permute.xlu0 %2366 }
 0x21d   : > { %v4712_v31 = vadd.f32 %v2367_v42, %v2320_v59 }
 0x21e   : > { %2410 = vperm.xlu0 %3162, %v4698_v21  }
 0x21f   : > { %v2346_v34 = vpop.permute.xlu1 %2345 }
 0x220   : > { %v4703_v32 = vadd.f32 %v2346_v34, %v2317_v2  ;;  %v2381_v19 = vpop.permute.xlu0 %2380 }
 0x221   : > { %v4718_v24 = vadd.f32 %v2381_v19, %v2322_v29 }
 0x222   : > { %2413 = vperm.xlu1 %3161, %v4703_v32  }
 0x223   : > { %v2360_v48 = vpop.permute.xlu1 %2359 }
 0x224   : > { %v4708_v44 = vadd.f32 %v2360_v48, %v2319_v15 }
 0x226   : > { %2419 = vperm.xlu0 %3162, %v4708_v44   ;;  %2416 = vperm.xlu1 %3161, %v4706_v54  }
 0x227   : > { %v2374_v30 = vpop.permute.xlu1 %2373 }
 0x228   : > { %v4714_v14 = vadd.f32 %v2374_v30, %v2321_v58 }
 0x22a   : > { %2425 = vperm.xlu0 %3162, %v4714_v14   ;;  %2422 = vperm.xlu1 %3161, %v4712_v31  }
 0x22e   : > { %2428 = vperm.xlu1 %3161, %v4718_v24  }
 0x296   : > { %v2408_v55 = vpop.permute.xlu1 %2407 }
 0x297   : > { %v2435_v56 = vrot.slane %v2408_v55, %v4726_v17 }
 0x29d   : > { %v2411_v1 = vpop.permute.xlu0 %2410 }
 0x29e   : > { %v2439_v11 = vrot.slane %v2411_v1, %v4726_v17 }
 0x2a0   : > { %v2464_v61 = vsel %vm1846_vm2, %v2439_v11, %v2435_v56 }
 0x2a1   : > { %v2414_v27 = vpop.permute.xlu1 %2413 }
 0x2a2   : > { %v2443_v12 = vrot.slane %v2414_v27, %v4726_v17 }
 0x2a4   : > { %v2465_v39 = vsel %vm1849_vm3, %v2443_v12, %v2464_v61 }
 0x2a5   : > { %v2417_v23 = vpop.permute.xlu1 %2416  ;;  %v2420_v45 = vpop.permute.xlu0 %2419 }
 0x2a6   : > { %v2447_v20 = vrot.slane %v2417_v23, %v4726_v17  ;;  %v2451_v52 = vrot.slane %v2420_v45, %v4726_v17 }
 0x2a8   : > { %v2466_v38 = vsel %vm1852_vm4, %v2447_v20, %v2465_v39 }
 0x2a9   : > { %v2423_v53 = vpop.permute.xlu1 %2422  ;;  %v2426_v18 = vpop.permute.xlu0 %2425  ;;  %v2467_v7 = vsel %vm1855_vm5, %v2451_v52, %v2466_v38 }
 0x2aa   : > { %v2455_v49 = vrot.slane %v2423_v53, %v4726_v17  ;;  %v2459_v51 = vrot.slane %v2426_v18, %v4726_v17 }
 0x2ac   : > { %v2468_v47 = vsel %vm1858_vm6, %v2455_v49, %v2467_v7 }
 0x2ad   : > { %v2429_v50 = vpop.permute.xlu1 %2428  ;;  %v2469_v63 = vsel %vm1861_vm7, %v2459_v51, %v2468_v47 }
 0x2ae   : > { %v2463_v36 = vrot.slane %v2429_v50, %v4726_v17 }
 0x2b0   : > { %v2470_v2 = vsel %vm1864_vm8, %v2463_v36, %v2469_v63 }
 0x2b1   : > { %v2473_v4 = vsel %vm2472_vm11, %v2470_v2, -inf }
 0x2b2   : > { %2474 = vmax.xlane.f32.xlu0 %v2473_v4 }
 0x33f   : > { %v4744_v60 = vpop.xlane.xlu0 %2474 }
 0x340   : > { %v2480_v26 = vrot.slane %v4744_v60, %v5139_v8  ;;  %v2484_v10 = vrot.slane %v4744_v60, %v5140_v37  ;;  %v2488_v34 = vrot.slane %v4744_v60, %v5142_v41  ;;  %v2492_v15 = vrot.slane %v4744_v60, %v5141_v13 }
 0x341   : > { %v2496_v22 = vrot.slane %v4744_v60, %v5144_v62  ;;  %v2500_v6 = vrot.slane %v4744_v60, %v5143_v9  ;;  %v2504_v30 = vrot.slane %v4744_v60, %v5146_v57  ;;  %v2508_v55 = vrot.slane %v4744_v60, %v5145_v0 }
 0x342   : > { %v2517_v28 = vsub.f32 %v4692_v35, %v2480_v26  ;;  %v2518_v43 = vsub.f32 %v4698_v21, %v2484_v10  ;;  %v2519_v3 = vsub.f32 %v4703_v32, %v2488_v34  ;;  %v2520_v42 = vsub.f32 %v4706_v54, %v2492_v15 }
 0x343   : > { %v2521_v58 = vsub.f32 %v4708_v44, %v2496_v22  ;;  %v2522_v19 = vsub.f32 %v4712_v31, %v2500_v6  ;;  %v2523_v1 = vsub.f32 %v4714_v14, %v2504_v30  ;;  %v2524_v11 = vsub.f32 %v4718_v24, %v2508_v55 }
 0x344   : > { %v2525_v33 = vmul.f32 1.442695, %v2517_v28  ;;  %v2527_v5 = vmul.f32 1.442695, %v2518_v43  ;;  %v2529_v48 = vmul.f32 1.442695, %v2519_v3 }
 0x345   : > { %v2531_v59 = vmul.f32 1.442695, %v2520_v42  ;;  %v2533_v29 = vmul.f32 1.442695, %v2521_v58  ;;  %v2535_v16 = vmul.f32 1.442695, %v2522_v19 }
 0x346   : > { %3181 = vpow2.f32 %v2525_v33  ;;  %v2537_v12 = vmul.f32 1.442695, %v2523_v1  ;;  %v2539_v23 = vmul.f32 1.442695, %v2524_v11 }
 0x347   : > { %3183 = vpow2.f32 %v2527_v5 }
 0x348   : > { %3185 = vpow2.f32 %v2529_v48 }
 0x349   : > { %3187 = vpow2.f32 %v2531_v59 }
 0x34a   : > { %3189 = vpow2.f32 %v2533_v29 }
 0x34b   : > { %3191 = vpow2.f32 %v2535_v16 }
 0x34c   : > { %3193 = vpow2.f32 %v2537_v12 }
 0x34d   : > { %3195 = vpow2.f32 %v2539_v23 }
 0x350   : > { %v3182_v25 = vpop.eup %3181 }
 0x351   : > { %2550 = vperm.xlu1 %3161, %v3182_v25   ;;  %v3184_v46 = vpop.eup %3183 }
 0x352   : > { %v3186_v27 = vpop.eup %3185 }
 0x353   : > { %v3188_v56 = vpop.eup %3187 }
 0x354   : > { %v3190_v45 = vpop.eup %3189 }
 0x355   : > { %2553 = vperm.xlu1 %3161, %v3184_v46   ;;  %v3192_v61 = vpop.eup %3191 }
 0x356   : > { %v3194_v20 = vpop.eup %3193 }
 0x357   : > { %v3196_v39 = vpop.eup %3195 }
 0x359   : > { %2556 = vperm.xlu1 %3161, %v3186_v27  }
 0x35d   : > { %2559 = vperm.xlu1 %3161, %v3188_v56  }
 0x361   : > { %2562 = vperm.xlu1 %3161, %v3190_v45  }
 0x365   : > { %2565 = vperm.xlu1 %3161, %v3192_v61  }
 0x369   : > { %2568 = vperm.xlu1 %3161, %v3194_v20  }
 0x36d   : > { %2571 = vperm.xlu1 %3161, %v3196_v39  }
 0x3d0   : > { %v2551_v52 = vpop.permute.xlu1 %2550 }
 0x3d1   : > { %v2576_v50 = vrot.slane %v2551_v52, %v4726_v17 }
 0x3d4   : > { %v2554_v38 = vpop.permute.xlu1 %2553 }
 0x3d5   : > { %v2580_v51 = vrot.slane %v2554_v38, %v4726_v17 }
 0x3d7   : > { %v2605_v4 = vsel %vm1846_vm2, %v2580_v51, %v2576_v50 }
 0x3d8   : > { %v2557_v53 = vpop.permute.xlu1 %2556 }
 0x3d9   : > { %v2584_v47 = vrot.slane %v2557_v53, %v4726_v17 }
 0x3db   : > { %v2606_v10 = vsel %vm1849_vm3, %v2584_v47, %v2605_v4 }
 0x3dc   : > { %v2560_v18 = vpop.permute.xlu1 %2559 }
 0x3dd   : > { %v2588_v36 = vrot.slane %v2560_v18, %v4726_v17 }
 0x3df   : > { %v2607_v28 = vsel %vm1852_vm4, %v2588_v36, %v2606_v10 }
 0x3e0   : > { %v2563_v49 = vpop.permute.xlu1 %2562 }
 0x3e1   : > { %v2592_v63 = vrot.slane %v2563_v49, %v4726_v17 }
 0x3e3   : > { %v2608_v43 = vsel %vm1855_vm5, %v2592_v63, %v2607_v28 }
 0x3e4   : > { %v2566_v7 = vpop.permute.xlu1 %2565 }
 0x3e5   : > { %v2596_v26 = vrot.slane %v2566_v7, %v4726_v17 }
 0x3e7   : > { %v2609_v15 = vsel %vm1858_vm6, %v2596_v26, %v2608_v43 }
 0x3e8   : > { %v2569_v2 = vpop.permute.xlu1 %2568 }
 0x3e9   : > { %v2600_v34 = vrot.slane %v2569_v2, %v4726_v17 }
 0x3eb   : > { %v2610_v5 = vsel %vm1861_vm7, %v2600_v34, %v2609_v15 }
 0x3ec   : > { %v2572_v33 = vpop.permute.xlu1 %2571 }
 0x3ed   : > { %v2604_v3 = vrot.slane %v2572_v33, %v4726_v17 }
 0x3ef   : > { %v2611_v22 = vsel %vm1864_vm8, %v2604_v3, %v2610_v5 }
 0x3f0   : > { %v2613_v42 = vsel %vm2472_vm11, %v2611_v22, 0.0 }
 0x3f1   : > { %2614 = vadd.xlane.f32.xlu0 %v2613_v42 }
 0x47e   : > { %v2615_v48 = vpop.xlane.xlu0 %2614 }
 0x47f   : > { %3197 = vlog2.f32 %v2615_v48 }
 0x489   : > { %v3198_v6 = vpop.eup %3197 }
 0x48a   : > { %v2617_v58 = vmul.f32 0.6931472, %v3198_v6 }
 0x48c   : > { %v2618_v59 = vadd.f32 %v2617_v58, %v4744_v60 }
 0x48e   : > { %v2627_v25 = vrot.slane %v2618_v59, %v5140_v37  ;;  %v2623_v30 = vrot.slane %v2618_v59, %v5139_v8  ;;  %v2631_v46 = vrot.slane %v2618_v59, %v5142_v41  ;;  %v2635_v1 = vrot.slane %v2618_v59, %v5141_v13 }
 0x48f   : > { %v2639_v60 = vrot.slane %v2618_v59, %v5144_v62  ;;  %v2647_v11 = vrot.slane %v2618_v59, %v5146_v57  ;;  %v2651_v12 = vrot.slane %v2618_v59, %v5145_v0 }
 0x490   : > { %v2661_v19 = vsub.f32 %v4698_v21, %v2627_v25  ;;  %v2660_v29 = vsub.f32 %v4692_v35, %v2623_v30  ;;  %v2662_v55 = vsub.f32 %v4703_v32, %v2631_v46  ;;  %v2663_v16 = vsub.f32 %v4706_v54, %v2635_v1 }
 0x491   : > { %v2664_v27 = vsub.f32 %v4708_v44, %v2639_v60  ;;  %v2643_v21 = vrot.slane %v2618_v59, %v5143_v9  ;;  %v2666_v32 = vsub.f32 %v4714_v14, %v2647_v11  ;;  %v2667_v54 = vsub.f32 %v4718_v24, %v2651_v12 }
 0x492   : > { %2680 = vperm.xlu0 %3162, %v2661_v19   ;;  %2677 = vperm.xlu1 %3161, %v2660_v29  }
 0x493   : > { %v4799_v35 = vsub.f32 %v4712_v31, %v2643_v21 }
 0x496   : > { %2683 = vperm.xlu1 %3161, %v2662_v55  }
 0x49a   : > { %2686 = vperm.xlu1 %3161, %v2663_v16  }
 0x49e   : > { %2689 = vperm.xlu1 %3161, %v2664_v27  }
 0x4a2   : > { %2692 = vperm.xlu1 %3161, %v4799_v35  }
 0x4a6   : > { %2695 = vperm.xlu1 %3161, %v2666_v32  }
 0x4aa   : > { %2698 = vperm.xlu1 %3161, %v2667_v54  }
 0x4ae   : > { %2793 = vbcast.lane.b32.xlu1 %v4722_v40, 256 }
 0x511   : > { %v2678_v44 = vpop.permute.xlu1 %2677  ;;  %v2681_v31 = vpop.permute.xlu0 %2680 }
 0x512   : > { %v2707_v20 = vrot.slane %v2681_v31, %v4726_v17  ;;  %v2703_v39 = vrot.slane %v2678_v44, %v4726_v17 }
 0x514   : > { %v2732_v53 = vsel %vm1846_vm2, %v2707_v20, %v2703_v39 }
 0x515   : > { %v2684_v56 = vpop.permute.xlu1 %2683 }
 0x516   : > { %v2711_v14 = vrot.slane %v2684_v56, %v4726_v17 }
 0x518   : > { %v2733_v49 = vsel %vm1849_vm3, %v2711_v14, %v2732_v53 }
 0x519   : > { %v2687_v23 = vpop.permute.xlu1 %2686 }
 0x51a   : > { %v2715_v52 = vrot.slane %v2687_v23, %v4726_v17 }
 0x51c   : > { %v2734_v51 = vsel %vm1852_vm4, %v2715_v52, %v2733_v49 }
 0x51d   : > { %v2690_v45 = vpop.permute.xlu1 %2689 }
 0x51e   : > { %v2719_v24 = vrot.slane %v2690_v45, %v4726_v17 }
 0x520   : > { %v2735_v47 = vsel %vm1855_vm5, %v2719_v24, %v2734_v51 }
 0x521   : > { %v2693_v61 = vpop.permute.xlu1 %2692 }
 0x522   : > { %v2723_v18 = vrot.slane %v2693_v61, %v4726_v17 }
 0x524   : > { %v2736_v36 = vsel %vm1858_vm6, %v2723_v18, %v2735_v47  ;;  %v2882_v18 = vld [vmem:[%s470_s25] sm:$0xff]  ;;  %s4879_s25 = scalar_lea.hbm %s4930_s8, %s3116_s30 }
 0x525   : > { %v2696_v38 = vpop.permute.xlu1 %2695 }
 0x526   : > { %v2727_v7 = vrot.slane %v2696_v38, %v4726_v17 }
 0x528   : > { %v2737_v2 = vsel %vm1861_vm7, %v2727_v7, %v2736_v36 }
 0x529   : > { %v2699_v50 = vpop.permute.xlu1 %2698 }
 0x52a   : > { %v2731_v63 = vrot.slane %v2699_v50, %v4726_v17 }
 0x52c   : > { %v2738_v4 = vsel %vm1864_vm8, %v2731_v63, %v2737_v2 }
 0x52d   : > { %v2740_v26 = vsel %vm2472_vm11, %v2738_v4, -inf  ;;  %2902 = vst.msk [vmem:[%s478_s18] sm:$0xff] %vm2472_vm11, %v2738_v4  ;;  %v2794_v34 = vpop.permute.xlu1 %2793  ;;  %s2925_s18 = sshll.u32 %s427_s12, 4  ;;  %s4881_s18 = int_to_ptr.vmem [resolvable:$true] %s2925_s18 }
 0x52e   : > { %2741 = vmax.xlane.f32.xlu0 %v2740_v26  ;;  %s3200_s27 = scalar_lea.vmem %s4881_s18, 128  ;;  %p3207_p1 = scmp.lt.s32.totalorder %s4881_s18, %s3205_s26 }
 0x52f   : > { %p3201_p12 = scmp.ne.s32.totalorder %s4881_s18, %s3200_s27  ;;  %p3208_p2 = scmp.lt.s32.totalorder %s3206_s28, %s3200_s27 }
 0x531   : > { %p3202_p13 = pnand %p3201_p12, %p3360_p5  ;;  %p3209_p3 = por %p3208_p2, %p3207_p1 }
 0x533   : > { %p3203_p0 = pneg %p3202_p13 }
 0x535   : > { %p3210_p4 = pnand %p3209_p3, %p3203_p0 }
 0x5bb   : > { %v4828_v10 = vpop.xlane.xlu0 %2741 }
 0x5bc   : > { %v2771_v28 = vrot.slane %v4828_v10, %v5146_v57  ;;  %v2747_v43 = vrot.slane %v4828_v10, %v5139_v8  ;;  %v2751_v33 = vrot.slane %v4828_v10, %v5140_v37  ;;  %v2755_v5 = vrot.slane %v4828_v10, %v5142_v41 }
 0x5bd   : > { %v2759_v57 = vrot.slane %v4828_v10, %v5141_v13  ;;  %v2763_v37 = vrot.slane %v4828_v10, %v5144_v62  ;;  %v2767_v48 = vrot.slane %v4828_v10, %v5143_v9  ;;  %v2775_v41 = vrot.slane %v4828_v10, %v5145_v0 }
 0x5be   : > { %vm2790_vm12 = vcmp.eq.f32.partialorder %v2666_v32, %v2771_v28  ;;  %vm2784_vm13 = vcmp.eq.f32.partialorder %v2660_v29, %v2747_v43  ;;  %vm2785_vm14 = vcmp.eq.f32.partialorder %v2661_v19, %v2751_v33  ;;  %vm2786_vm15 = vcmp.eq.f32.partialorder %v2662_v55, %v2755_v5 }
 0x5bf   : > { %v2801_v15 = vsel %vm2790_vm12, %v2794_v34, 8  ;;  %v2795_v3 = vsel %vm2784_vm13, %v2794_v34, 8  ;;  %v2796_v22 = vsel %vm2785_vm14, %v2794_v34, 8  ;;  %v2797_v8 = vsel %vm2786_vm15, %v2794_v34, 8 }
 0x5c0   : > { %2822 = vperm.xlu0 %3162, %v2801_v15   ;;  %2804 = vperm.xlu1 %3161, %v2795_v3   ;;  %vm2787_vm0 = vcmp.eq.f32.partialorder %v2663_v16, %v2759_v57  ;;  %vm2788_vm1 = vcmp.eq.f32.partialorder %v2664_v27, %v2763_v37  ;;  %vm2789_vm9 = vcmp.eq.f32.partialorder %v4799_v35, %v2767_v48 }
 0x5c1   : > { %v2798_v42 = vsel %vm2787_vm0, %v2794_v34, 8  ;;  %v2799_v6 = vsel %vm2788_vm1, %v2794_v34, 8  ;;  %v2800_v13 = vsel %vm2789_vm9, %v2794_v34, 8  ;;  %vm2791_vm10 = vcmp.eq.f32.partialorder %v2667_v54, %v2775_v41 }
 0x5c2   : > { %v2802_v58 = vsel %vm2791_vm10, %v2794_v34, 8 }
 0x5c4   : > { %2807 = vperm.xlu1 %3161, %v2796_v22  }
 0x5c8   : > { %2810 = vperm.xlu1 %3161, %v2797_v8  }
 0x5cc   : > { %2813 = vperm.xlu1 %3161, %v2798_v42  }
 0x5d0   : > { %2816 = vperm.xlu1 %3161, %v2799_v6  }
 0x5d4   : > { %2819 = vperm.xlu1 %3161, %v2800_v13  }
 0x5d8   : > { %2825 = vperm.xlu1 %3161, %v2802_v58  }
 0x63f   : > { %v2805_v59 = vpop.permute.xlu1 %2804  ;;  %v2823_v27 = vpop.permute.xlu0 %2822 }
 0x640   : > { %v2830_v46 = vrot.slane %v2805_v59, %v4726_v17  ;;  %v2854_v12 = vrot.slane %v2823_v27, %v4726_v17 }
 0x643   : > { %v2808_v62 = vpop.permute.xlu1 %2807 }
 0x644   : > { %v2834_v19 = vrot.slane %v2808_v62, %v4726_v17 }
 0x646   : > { %v2859_v1 = vsel %vm1846_vm2, %v2834_v19, %v2830_v46 }
 0x647   : > { %v2811_v25 = vpop.permute.xlu1 %2810 }
 0x648   : > { %v2838_v9 = vrot.slane %v2811_v25, %v4726_v17 }
 0x64a   : > { %v2860_v16 = vsel %vm1849_vm3, %v2838_v9, %v2859_v1 }
 0x64b   : > { %v2814_v30 = vpop.permute.xlu1 %2813 }
 0x64c   : > { %v2842_v55 = vrot.slane %v2814_v30, %v4726_v17 }
 0x64e   : > { %v2861_v21 = vsel %vm1852_vm4, %v2842_v55, %v2860_v16  ;;  %vm2900_vm4 = vcmask 7168  }
 0x64f   : > { %v2817_v29 = vpop.permute.xlu1 %2816 }
 0x650   : > { %v2846_v0 = vrot.slane %v2817_v29, %v4726_v17 }
 0x652   : > { %v2862_v11 = vsel %vm1855_vm5, %v2846_v0, %v2861_v21 }
 0x653   : > { %v2820_v60 = vpop.permute.xlu1 %2819 }
 0x654   : > { %v2850_v35 = vrot.slane %v2820_v60, %v4726_v17 }
 0x656   : > { %v2863_v32 = vsel %vm1858_vm6, %v2850_v35, %v2862_v11 }
 0x657   : > { %v2826_v54 = vpop.permute.xlu1 %2825  ;;  %v2864_v56 = vsel %vm1861_vm7, %v2854_v12, %v2863_v32 }
 0x658   : > { %v2858_v44 = vrot.slane %v2826_v54, %v4726_v17 }
 0x65a   : > { %v2865_v23 = vsel %vm1864_vm8, %v2858_v44, %v2864_v56 }
 0x65b   : > { %v2866_v45 = vsel %vm2472_vm11, %v2865_v23, 2147483647 }
 0x65c   : > { %v2868_v31 = vshra.s32 %v2866_v45, 16  ;;  %v2867_v20 = vand.u32 65535, %v2866_v45 }
 0x65e   : > { %v2870_v61 = vcvt.s32.f32 %v2868_v31  ;;  %v2869_v14 = vcvt.s32.f32 %v2867_v20 }
 0x660   : > { %2871 = vmin.xlane.f32.xlu1 %v2870_v61 }
 0x6ed   : > { %v2872_v39 = vpop.xlane.xlu1 %2871 }
 0x6ee   : > { %vm2873_vm2 = vcmp.eq.f32.partialorder %v2870_v61, %v2872_v39  ;;  %v2878_v24 = vcvt.f32.s32 %v2872_v39 }
 0x6ef   : > { %v2874_v52 = vsel %vm2873_vm2, %v2869_v14, inf }
 0x6f0   : > { %2875 = vmin.xlane.f32.xlu0 %v2874_v52  ;;  %v2879_v38 = vshll.u32 %v2878_v24, 16 }
 0x77d   : > { %v2876_v17 = vpop.xlane.xlu0 %2875 }
 0x77e   : > { %v2877_v53 = vcvt.f32.s32 %v2876_v17 }
 0x780   : > { %v2880_v49 = vadd.s32 %v2879_v38, %v2877_v53 }
 0x782   : > { %vm2881_vm3 = vcmp.eq.s32.totalorder %v4722_v40, %v2880_v49 }
 0x783   : > { %v2883_v7 = vsel %vm2881_vm3, %v2882_v18, 0 }
 0x784   : > { %v2884_v51 = vsel %vm2472_vm11, %v2883_v7, 0 }
 0x785   : > { %v2886_v47 = vshrl.u32 %v2884_v51, 16  ;;  %v2885_v36 = vand.u32 65535, %v2884_v51 }
 0x787   : > { %v2888_v50 = vcvt.s32.f32 %v2886_v47  ;;  %v2887_v63 = vcvt.s32.f32 %v2885_v36 }
 0x789   : > { %2891 = vadd.xlane.f32.xlu1 %v2888_v50 }
 0x78d   : > { %2889 = vadd.xlane.f32.xlu1 %v2887_v63 }
 0x816   : > { %v2892_v2 = vpop.xlane.xlu1 %2891 }
 0x817   : > { %v2894_v4 = vcvt.f32.s32 %v2892_v2 }
 0x819   : > { %v2895_v34 = vshll.u32 %v2894_v4, 16 }
 0x81a   : > { %v2890_v26 = vpop.xlane.xlu1 %2889 }
 0x81b   : > { %v2893_v28 = vcvt.f32.s32 %v2890_v26 }
 0x81d   : > { %v2896_v43 = vadd.s32 %v2895_v34, %v2893_v28 }
 0x81f   : > { %vm2897_vm5 = vcmp.eq.s32.totalorder %v4722_v40, %v2896_v43  ;;  %2901 = vst.msk [vmem:[%s474_s29] sm:$0xff] %vm2900_vm4, %v2896_v43 }
 0x820   : > { %v2898_v33 = vsel %vm2897_vm5, %v4828_v10, -100.0 }
 0x821   : > { %2899 = vst [vmem:[%s427_s12] sm:$0xff] %v2898_v33 }
 0x822   : > { %3213 = shalt.err (!%p3210_p4)
}
 0x823   : > { %s3214_s11 = scalar_lea.hbm %s4879_s25, 128  ;;  %s3218_s12 = scalar_lea.hbm %s4930_s8, 384 }
 0x824   : > { %p3215_p7 = scmp.ne.s32.totalorder %s4879_s25, %s3214_s11  ;;  %p3219_p10 = scmp.lt.u32.totalorder %s4879_s25, %s4930_s8 }
 0x825   : > { %p3220_p11 = scmp.lt.u32.totalorder %s3218_s12, %s3214_s11  ;;  %p3222_p13 = scmp.lt.u32.totalorder %s3214_s11, %s4879_s25 }
 0x826   : > { %p3216_p8 = pnand %p3215_p7, %p3360_p5 }
 0x827   : > { %p3221_p12 = por %p3220_p11, %p3219_p10 }
 0x828   : > { %p3217_p9 = pneg %p3216_p8 }
 0x829   : > { %p3223_p0 = por %p3222_p13, %p3221_p12 }
 0x82b   : > { %p3224_p1 = pnand %p3223_p0, %p3217_p9 }
 0x82d   : > { %3227 = shalt.err (!%p3224_p1)
}
 0x82e   : > { %3120 = dma.vmem_to_hbm [thread:$0]  (%p3360_p5), %s4881_s18, 128, %s4879_s25, %s2904_s17  }
 0x82f PF: > { %p3126_p2 = scmp.ge.s32.totalorder %s3262_s16, 2  ;;  %s2943_s27 = sand.u32 1, %s3250_s13  }
 0x830   : > { %s2944_s21 = scalar_lea.sflag [#allocation3], %s2943_s27 }
 0x831   : > { %p3123_p3 = pnand %p3126_p2, %p3364_p6 }
 0x833   : > { %3245 = dma.done.wait (!%p3123_p3), %s2944_s21, 128  }
 0x834   : > { %3247 = vsyncadd (!%p3123_p3), %s2944_s21, 4294967168  ;;  %p21_p4 = scmp.ge.s32.totalorder %s3347_s19, 5   ;;  %s5149_s13 = smov %s3254_s14 }
 0x835   : > { %s5150_s14 = smov %s3258_s15  ;;  %s5151_s15 = smov %s3358_s22 }
 0x836   : > { %s5152_s16 = smov %s3347_s19  ;;  %23 = sbr.rel (!%p21_p4) target bundleno = 5 (0x5), region = 126 }
 0x83d   :  { %2963 = vsyncpa [#allocation3], 1 }
 0x83e   :  { %2965 = vsyncpa [#allocation3 + $0x1], 1 }

</bundles_post_ra>
